<compile_context>
chip_gen: v5e
topology: v5e:2x2
jax: 0.10.0
libtpu: 0.0.40
codegen_flags: <defaults>
</compile_context>

<pallas_src>
import functools
import math

import jax
import jax.numpy as jnp
from jax.experimental import pallas as pl
from jax.experimental.pallas import tpu as pltpu


# --------------------------------------------------------------------------- slab layouts
def _round8(n):
    return ((n + 7) // 8) * 8


def _w_slab_layout(num_layers, input_size, input_size_dec, hidden_size):
    """Row offsets of every (·, 4H) block inside the recurrent-weight slab."""
    H = hidden_size
    off, rows = {}, 0
    for stack, in0 in (("enc", input_size), ("dec", input_size_dec)):
        for l in range(num_layers):
            din = in0 if l == 0 else H
            for name, nrows in ((f"{stack}_ih_{l}", _round8(din)),
                                (f"{stack}_hh_{l}", H),
                                (f"{stack}_b_{l}", 8)):
                off[name] = rows
                rows += nrows
    off["_rows"] = rows
    return off


def _af_slab_layout(sequence_length, hidden_size):
    """Row offsets inside the attention/v/fc slab (lane width = H)."""
    S, H = sequence_length, hidden_size
    return {"attn": 0, "v": S * H, "fc_w": S * H + H, "fc_b": S * H + 2 * H,
            "_rows": S * H + 2 * H + 8}


# --------------------------------------------------------------------------- fused kernel
def _make_fused_kernel(num_layers, B, S, Din, H, O, woff, afoff):
    """Builds the fully fused forward kernel. All loops are statically unrolled."""
    f32 = jnp.float32
    L = num_layers

    def kernel(x_ref, w_ref, af_ref, out_ref, enc_scr):
        def wblk(name, rows):
            o = woff[name]
            return w_ref[o:o + rows, :]

        def cell(gates, c_prev):
            # Full-vreg activations (2 EUP pushes on the chain), slices after.
            # PyTorch gate order: i, f, g, o.
            sg = jax.nn.sigmoid(gates)
            tg = jnp.tanh(gates)
            i_g = sg[:, 0 * H:1 * H]
            f_g = sg[:, 1 * H:2 * H]
            g_g = tg[:, 2 * H:3 * H]
            o_g = sg[:, 3 * H:4 * H]
            c_new = f_g * c_prev + i_g * g_g
            h_new = o_g * jnp.tanh(c_new)
            return h_new, c_new

        zero_h = jnp.zeros((B, H), f32)

        def run_stack(prefix, n_steps, layer0_in, on_top=None):
            # Wavefront over (time, layer): wave wv computes layer l at t = wv - l.
            # All cells in a wave read only the previous wave's snapshot, so their
            # matmuls are independent; serialized chain length = n_steps + L - 1.
            h = [zero_h] * L
            c = [zero_h] * L
            for wv in range(n_steps + L - 1):
                h_prev = list(h)
                c_prev = list(c)
                for l in range(L):
                    t = wv - l
                    if not (0 <= t < n_steps):
                        continue
                    if l == 0:
                        # input-side projection (off the recurrence chain)
                        gates = layer0_in(t) + jnp.dot(
                            h_prev[0], wblk(f"{prefix}_hh_0", H),
                            preferred_element_type=f32)
                    else:
                        gates = (jnp.dot(h_prev[l - 1], wblk(f"{prefix}_ih_{l}", H),
                                         preferred_element_type=f32)
                                 + wblk(f"{prefix}_b_{l}", 1)
                                 + jnp.dot(h_prev[l], wblk(f"{prefix}_hh_{l}", H),
                                           preferred_element_type=f32))
                    h[l], c[l] = cell(gates, c_prev[l])
                    if l == L - 1 and on_top is not None:
                        on_top(t, h[l])
            return h

        # ------------------------------ Encoder ---------------------------------------
        energy_holder = [jnp.zeros((B, H), f32)]

        def enc_layer0_in(t):
            # x_t @ W_ih0 + b0 depends only on x -> not on the recurrence chain.
            x_t = x_ref[:, t, :]                                    # (B, Din)
            return (jnp.dot(x_t, wblk("enc_ih_0", Din), preferred_element_type=f32)
                    + wblk("enc_b_0", 1))

        def enc_on_top(t, h_top):
            enc_scr[t] = h_top                                      # stash for ctx / decoder
            a_t = af_ref[afoff["attn"] + t * H: afoff["attn"] + (t + 1) * H, :]
            # incremental attention energy: overlaps the recurrence, no (B, S*H) concat
            energy_holder[0] = energy_holder[0] + jnp.dot(
                h_top, a_t, preferred_element_type=f32)

        run_stack("enc", S, enc_layer0_in, enc_on_top)

        # ------------------------------ Soft attention --------------------------------
        # h_0[0] is freshly-zeroed in the reference, so its slice of the attn Linear
        # contributes exactly 0 and is dropped.
        v_w = af_ref[afoff["v"]: afoff["v"] + H, :]                  # (H, H), cols >= S are 0
        scores = jnp.dot(energy_holder[0], v_w, preferred_element_type=f32)[:, :S]
        scores = scores - jnp.max(scores, axis=1, keepdims=True)
        e = jnp.exp(scores)
        w_soft = e / jnp.sum(e, axis=1, keepdims=True)               # exact softmax
        ctx = zero_h
        for t in range(S):                                           # bmm unrolled on the VPU
            ctx = ctx + w_soft[:, t:t + 1] * enc_scr[t]

        # ------------------------------ Decoder ----------------------------------------
        def dec_layer0_in(t):
            # decoder input sequence = [ctx, enc_0, ..., enc_{S-1}]; its W_ih projection
            # depends only on pre-decoder data -> off the decoder chain.
            inp = ctx if t == 0 else enc_scr[t - 1]
            return (jnp.dot(inp, wblk("dec_ih_0", H), preferred_element_type=f32)
                    + wblk("dec_b_0", 1))

        h_dec = run_stack("dec", S + 1, dec_layer0_in)

        # ------------------------------ Final FC ---------------------------------------
        fc_w = af_ref[afoff["fc_w"]: afoff["fc_w"] + H, :]           # (H, H), cols >= O are 0
        fc_b = af_ref[afoff["fc_b"]: afoff["fc_b"] + 1, :]
        out = jnp.dot(h_dec[L - 1], fc_w, preferred_element_type=f32) + fc_b
        out_ref[...] = out[:, :O]

    return kernel


# --------------------------------------------------------------------------- forward
def autoencoder_rnn_forward(x, params, *, num_layers, input_size, input_size_dec,
                            hidden_size, sequence_length, output_size):
    B, S, Din = x.shape
    H, O = hidden_size, output_size
    assert S == sequence_length and Din == input_size
    # The reference module's `input_lstm.reshape(B, -1, input_size_dec)` silently requires
    # input_size_dec == hidden_size; fail loudly instead of reshaping wrong.
    assert input_size_dec == H, "AttnDecoder implicitly requires input_size_dec == hidden_size"

    woff = _w_slab_layout(num_layers, input_size, input_size_dec, H)
    afoff = _af_slab_layout(S, H)
    kernel = _make_fused_kernel(num_layers, B, S, Din, H, O, woff, afoff)

    return pl.pallas_call(
        kernel,
        out_shape=jax.ShapeDtypeStruct((B, O), jnp.float32),
        in_specs=[pl.BlockSpec(memory_space=pltpu.MemorySpace.VMEM)] * 3,
        out_specs=pl.BlockSpec(memory_space=pltpu.MemorySpace.VMEM),
        scratch_shapes=[pltpu.VMEM((S, B, H), jnp.float32)],        # stashed encoder outputs
    )(x, params["w_slab"], params["af_slab"])


# --------------------------------------------------------------------------- params
def init_params(key, input_size, input_size_dec, hidden_size, num_layers,
                sequence_length, output_size):
    """Random params in the PyTorch module's native layouts (nn.LSTM / nn.Linear defaults)."""
    H = hidden_size
    keys = iter(jax.random.split(key, 8 * num_layers + 8))

    def uni(shape, bound):
        return jax.random.uniform(next(keys), shape, jnp.float32, -bound, bound)

    k = 1.0 / math.sqrt(H)
    raw = {}
    for stack, in0 in (("enc", input_size), ("dec", input_size_dec)):
        for l in range(num_layers):
            din = in0 if l == 0 else H
            raw[f"{stack}_w_ih_{l}"] = uni((4 * H, din), k)          # (4H, Din)
            raw[f"{stack}_w_hh_{l}"] = uni((4 * H, H), k)            # (4H, H)
            raw[f"{stack}_b_ih_{l}"] = uni((4 * H,), k)
            raw[f"{stack}_b_hh_{l}"] = uni((4 * H,), k)
    attn_in = sequence_length * input_size_dec + H
    raw["attn_w"] = uni((H, attn_in), 1.0 / math.sqrt(attn_in))      # SoftAttention.attn (no bias)
    raw["v_w"] = uni((sequence_length, H), 1.0 / math.sqrt(H))       # SoftAttention.v    (no bias)
    raw["fc_w"] = uni((output_size, H), 1.0 / math.sqrt(H))
    raw["fc_b"] = uni((output_size,), 1.0 / math.sqrt(H))
    return raw


def prepare_params(raw, *, input_size, input_size_dec, hidden_size, num_layers,
                   sequence_length, output_size):
    """Pack PyTorch-layout params into 2 tile-aligned VMEM slabs (done once)."""
    H, S, O = hidden_size, sequence_length, output_size
    assert input_size_dec == H
    assert H % 8 == 0 and S <= H and O <= H

    # Slab 1: all recurrent weights / combined biases at lane width 4H.
    blocks = []
    for stack, in0 in (("enc", input_size), ("dec", input_size_dec)):
        for l in range(num_layers):
            din = in0 if l == 0 else H
            wih = raw[f"{stack}_w_ih_{l}"].T                          # (Din, 4H)
            wih = jnp.pad(wih, ((0, _round8(din) - din), (0, 0)))
            whh = raw[f"{stack}_w_hh_{l}"].T                          # (H, 4H)
            b = (raw[f"{stack}_b_ih_{l}"] + raw[f"{stack}_b_hh_{l}"]).reshape(1, 4 * H)
            b = jnp.pad(b, ((0, 7), (0, 0)))
            blocks += [wih, whh, b]
    w_slab = jnp.concatenate(blocks, axis=0)
    woff = _w_slab_layout(num_layers, input_size, input_size_dec, H)
    assert w_slab.shape == (woff["_rows"], 4 * H)

    # Slab 2: attention / v / fc at lane width H.
    attn_enc = raw["attn_w"][:, : S * H].T                            # (S*H, H); zero h_0 slice dropped
    v_w = jnp.pad(raw["v_w"].T, ((0, 0), (0, H - S)))                 # (H, H)
    fc_w = jnp.pad(raw["fc_w"].T, ((0, 0), (0, H - O)))               # (H, H)
    fc_b = jnp.pad(raw["fc_b"].reshape(1, O), ((0, 7), (0, H - O)))   # (8, H)
    af_slab = jnp.concatenate([attn_enc, v_w, fc_w, fc_b], axis=0)
    assert af_slab.shape == (_af_slab_layout(S, H)["_rows"], H)

    return {"w_slab": w_slab, "af_slab": af_slab}


# --------------------------------------------------------------------------- main
if __name__ == "__main__":
    B = 2
    input_size = 4
    hidden_size = 32
    input_size_dec = hidden_size      # required implicitly by the module's reshape
    num_layers = 2
    sequence_length = 8
    output_size = 8
    # dropout: nn.LSTM dropout is inactive in the eval-mode forward

    key = jax.random.PRNGKey(0)
    pkey, xkey = jax.random.split(key)
    raw = init_params(pkey, input_size, input_size_dec, hidden_size, num_layers,
                      sequence_length, output_size)
    params = prepare_params(raw, input_size=input_size, input_size_dec=input_size_dec,
                            hidden_size=hidden_size, num_layers=num_layers,
                            sequence_length=sequence_length, output_size=output_size)

    x = jax.random.normal(xkey, (B, sequence_length, input_size), jnp.float32)

    fwd = jax.jit(functools.partial(
        autoencoder_rnn_forward, num_layers=num_layers, input_size=input_size,
        input_size_dec=input_size_dec, hidden_size=hidden_size,
        sequence_length=sequence_length, output_size=output_size))
    y = fwd(x, params)
    y = jax.block_until_ready(y)
    assert y.shape == (B, output_size) and y.dtype == jnp.float32
    print("KERNEL_OK")
</pallas_src>

<mosaic_0001>
module attributes {stable_mosaic.version = 11 : i64} {
  func.func @kernel(%arg0: memref<2x8x4xf32, #tpu.memory_space<vmem>>, %arg1: memref<264x128xf32, #tpu.memory_space<vmem>>, %arg2: memref<328x32xf32, #tpu.memory_space<vmem>>, %arg3: memref<2x8xf32, #tpu.memory_space<vmem>>, %arg4: memref<8x2x32xf32, #tpu.memory_space<vmem>>) attributes {dimension_semantics = [], scalar_prefetch = 0 : i64, scratch_operands = 1 : i64, tpu.core_type = #tpu.core_type<tc>} {
    %cst = arith.constant 0.000000e+00 : f32
    %0 = vector.broadcast %cst : f32 to vector<2x32xf32>
    %cst_0 = arith.constant 0.000000e+00 : f32
    %1 = vector.broadcast %cst_0 : f32 to vector<2x32xf32>
    %c0 = arith.constant 0 : index
    %c0_1 = arith.constant 0 : index
    %c0_2 = arith.constant 0 : index
    %2 = vector.load %arg0[%c0, %c0_1, %c0_2] : memref<2x8x4xf32, #tpu.memory_space<vmem>>, vector<2x1x4xf32>
    %3 = vector.shape_cast %2 : vector<2x1x4xf32> to vector<2x4xf32>
    %c0_3 = arith.constant 0 : index
    %c0_4 = arith.constant 0 : index
    %4 = vector.load %arg1[%c0_3, %c0_4] : memref<264x128xf32, #tpu.memory_space<vmem>>, vector<4x128xf32>
    %cst_5 = arith.constant dense<0.000000e+00> : vector<2x128xf32>
    %5 = tpu.matmul %3, %4, %cst_5 {dimension_numbers = #tpu.dot_dimension_numbers<[1], [0], [0], [1], [0, 0, 1, 1], [], []>} : vector<2x4xf32>, vector<4x128xf32>, vector<2x128xf32> -> vector<2x128xf32>
    %c40 = arith.constant 40 : index
    %c0_6 = arith.constant 0 : index
    %6 = vector.load %arg1[%c40, %c0_6] : memref<264x128xf32, #tpu.memory_space<vmem>>, vector<1x128xf32>
    %7 = vector.broadcast %6 : vector<1x128xf32> to vector<2x128xf32>
    %8 = arith.addf %5, %7 : vector<2x128xf32>
    %c8 = arith.constant 8 : index
    %c0_7 = arith.constant 0 : index
    %9 = vector.load %arg1[%c8, %c0_7] : memref<264x128xf32, #tpu.memory_space<vmem>>, vector<32x128xf32>
    %cst_8 = arith.constant dense<0.000000e+00> : vector<2x128xf32>
    %10 = tpu.matmul %0, %9, %cst_8 {dimension_numbers = #tpu.dot_dimension_numbers<[1], [0], [0], [1], [0, 0, 1, 1], [], []>} : vector<2x32xf32>, vector<32x128xf32>, vector<2x128xf32> -> vector<2x128xf32>
    %11 = arith.addf %8, %10 : vector<2x128xf32>
    %12 = arith.negf %11 : vector<2x128xf32>
    %13 = math.exp %12 : vector<2x128xf32>
    %cst_9 = arith.constant 1.000000e+00 : f32
    %14 = vector.broadcast %cst_9 : f32 to vector<2x128xf32>
    %15 = arith.addf %14, %13 : vector<2x128xf32>
    %16 = arith.divf %14, %15 : vector<2x128xf32>
    %17 = math.tanh %11 : vector<2x128xf32>
    %18 = vector.extract_strided_slice %16 {offsets = [0, 0], sizes = [2, 32], strides = [1, 1]} : vector<2x128xf32> to vector<2x32xf32>
    %19 = vector.extract_strided_slice %16 {offsets = [0, 32], sizes = [2, 32], strides = [1, 1]} : vector<2x128xf32> to vector<2x32xf32>
    %20 = vector.extract_strided_slice %17 {offsets = [0, 64], sizes = [2, 32], strides = [1, 1]} : vector<2x128xf32> to vector<2x32xf32>
    %21 = vector.extract_strided_slice %16 {offsets = [0, 96], sizes = [2, 32], strides = [1, 1]} : vector<2x128xf32> to vector<2x32xf32>
    %22 = arith.mulf %19, %0 : vector<2x32xf32>
    %23 = arith.mulf %18, %20 : vector<2x32xf32>
    %24 = arith.addf %22, %23 : vector<2x32xf32>
    %25 = math.tanh %24 : vector<2x32xf32>
    %26 = arith.mulf %21, %25 : vector<2x32xf32>
    %c0_10 = arith.constant 0 : index
    %c1 = arith.constant 1 : index
    %c0_11 = arith.constant 0 : index
    %27 = vector.load %arg0[%c0_10, %c1, %c0_11] : memref<2x8x4xf32, #tpu.memory_space<vmem>>, vector<2x1x4xf32>
    %28 = vector.shape_cast %27 : vector<2x1x4xf32> to vector<2x4xf32>
    %c0_12 = arith.constant 0 : index
    %c0_13 = arith.constant 0 : index
    %29 = vector.load %arg1[%c0_12, %c0_13] : memref<264x128xf32, #tpu.memory_space<vmem>>, vector<4x128xf32>
    %cst_14 = arith.constant dense<0.000000e+00> : vector<2x128xf32>
    %30 = tpu.matmul %28, %29, %cst_14 {dimension_numbers = #tpu.dot_dimension_numbers<[1], [0], [0], [1], [0, 0, 1, 1], [], []>} : vector<2x4xf32>, vector<4x128xf32>, vector<2x128xf32> -> vector<2x128xf32>
    %c40_15 = arith.constant 40 : index
    %c0_16 = arith.constant 0 : index
    %31 = vector.load %arg1[%c40_15, %c0_16] : memref<264x128xf32, #tpu.memory_space<vmem>>, vector<1x128xf32>
    %32 = vector.broadcast %31 : vector<1x128xf32> to vector<2x128xf32>
    %33 = arith.addf %30, %32 : vector<2x128xf32>
    %c8_17 = arith.constant 8 : index
    %c0_18 = arith.constant 0 : index
    %34 = vector.load %arg1[%c8_17, %c0_18] : memref<264x128xf32, #tpu.memory_space<vmem>>, vector<32x128xf32>
    %cst_19 = arith.constant dense<0.000000e+00> : vector<2x128xf32>
    %35 = tpu.matmul %26, %34, %cst_19 {dimension_numbers = #tpu.dot_dimension_numbers<[1], [0], [0], [1], [0, 0, 1, 1], [], []>} : vector<2x32xf32>, vector<32x128xf32>, vector<2x128xf32> -> vector<2x128xf32>
    %36 = arith.addf %33, %35 : vector<2x128xf32>
    %37 = arith.negf %36 : vector<2x128xf32>
    %38 = math.exp %37 : vector<2x128xf32>
    %cst_20 = arith.constant 1.000000e+00 : f32
    %39 = vector.broadcast %cst_20 : f32 to vector<2x128xf32>
    %40 = arith.addf %39, %38 : vector<2x128xf32>
    %41 = arith.divf %39, %40 : vector<2x128xf32>
    %42 = math.tanh %36 : vector<2x128xf32>
    %43 = vector.extract_strided_slice %41 {offsets = [0, 0], sizes = [2, 32], strides = [1, 1]} : vector<2x128xf32> to vector<2x32xf32>
    %44 = vector.extract_strided_slice %41 {offsets = [0, 32], sizes = [2, 32], strides = [1, 1]} : vector<2x128xf32> to vector<2x32xf32>
    %45 = vector.extract_strided_slice %42 {offsets = [0, 64], sizes = [2, 32], strides = [1, 1]} : vector<2x128xf32> to vector<2x32xf32>
    %46 = vector.extract_strided_slice %41 {offsets = [0, 96], sizes = [2, 32], strides = [1, 1]} : vector<2x128xf32> to vector<2x32xf32>
    %47 = arith.mulf %44, %24 : vector<2x32xf32>
    %48 = arith.mulf %43, %45 : vector<2x32xf32>
    %49 = arith.addf %47, %48 : vector<2x32xf32>
    %50 = math.tanh %49 : vector<2x32xf32>
    %51 = arith.mulf %46, %50 : vector<2x32xf32>
    %c48 = arith.constant 48 : index
    %c0_21 = arith.constant 0 : index
    %52 = vector.load %arg1[%c48, %c0_21] : memref<264x128xf32, #tpu.memory_space<vmem>>, vector<32x128xf32>
    %cst_22 = arith.constant dense<0.000000e+00> : vector<2x128xf32>
    %53 = tpu.matmul %26, %52, %cst_22 {dimension_numbers = #tpu.dot_dimension_numbers<[1], [0], [0], [1], [0, 0, 1, 1], [], []>} : vector<2x32xf32>, vector<32x128xf32>, vector<2x128xf32> -> vector<2x128xf32>
    %c112 = arith.constant 112 : index
    %c0_23 = arith.constant 0 : index
    %54 = vector.load %arg1[%c112, %c0_23] : memref<264x128xf32, #tpu.memory_space<vmem>>, vector<1x128xf32>
    %55 = vector.broadcast %54 : vector<1x128xf32> to vector<2x128xf32>
    %56 = arith.addf %53, %55 : vector<2x128xf32>
    %c80 = arith.constant 80 : index
    %c0_24 = arith.constant 0 : index
    %57 = vector.load %arg1[%c80, %c0_24] : memref<264x128xf32, #tpu.memory_space<vmem>>, vector<32x128xf32>
    %cst_25 = arith.constant dense<0.000000e+00> : vector<2x128xf32>
    %58 = tpu.matmul %0, %57, %cst_25 {dimension_numbers = #tpu.dot_dimension_numbers<[1], [0], [0], [1], [0, 0, 1, 1], [], []>} : vector<2x32xf32>, vector<32x128xf32>, vector<2x128xf32> -> vector<2x128xf32>
    %59 = arith.addf %56, %58 : vector<2x128xf32>
    %60 = arith.negf %59 : vector<2x128xf32>
    %61 = math.exp %60 : vector<2x128xf32>
    %cst_26 = arith.constant 1.000000e+00 : f32
    %62 = vector.broadcast %cst_26 : f32 to vector<2x128xf32>
    %63 = arith.addf %62, %61 : vector<2x128xf32>
    %64 = arith.divf %62, %63 : vector<2x128xf32>
    %65 = math.tanh %59 : vector<2x128xf32>
    %66 = vector.extract_strided_slice %64 {offsets = [0, 0], sizes = [2, 32], strides = [1, 1]} : vector<2x128xf32> to vector<2x32xf32>
    %67 = vector.extract_strided_slice %64 {offsets = [0, 32], sizes = [2, 32], strides = [1, 1]} : vector<2x128xf32> to vector<2x32xf32>
    %68 = vector.extract_strided_slice %65 {offsets = [0, 64], sizes = [2, 32], strides = [1, 1]} : vector<2x128xf32> to vector<2x32xf32>
    %69 = vector.extract_strided_slice %64 {offsets = [0, 96], sizes = [2, 32], strides = [1, 1]} : vector<2x128xf32> to vector<2x32xf32>
    %70 = arith.mulf %67, %0 : vector<2x32xf32>
    %71 = arith.mulf %66, %68 : vector<2x32xf32>
    %72 = arith.addf %70, %71 : vector<2x32xf32>
    %73 = math.tanh %72 : vector<2x32xf32>
    %74 = arith.mulf %69, %73 : vector<2x32xf32>
    %c0_27 = arith.constant 0 : index
    %c0_28 = arith.constant 0 : index
    %c0_29 = arith.constant 0 : index
    %75 = vector.load %arg4[%c0_27, %c0_28, %c0_29] : memref<8x2x32xf32, #tpu.memory_space<vmem>>, vector<1x2x32xf32>
    %76 = vector.shape_cast %75 : vector<1x2x32xf32> to vector<2x32xf32>
    %77 = vector.shape_cast %74 : vector<2x32xf32> to vector<1x2x32xf32>
    tpu.vector_store %arg4[%c0_27, %c0_28, %c0_29], %77 {strides = array<i32>} : memref<8x2x32xf32, #tpu.memory_space<vmem>>, vector<1x2x32xf32>,
    %c0_30 = arith.constant 0 : index
    %c0_31 = arith.constant 0 : index
    %78 = vector.load %arg2[%c0_30, %c0_31] : memref<328x32xf32, #tpu.memory_space<vmem>>, vector<32x32xf32>
    %cst_32 = arith.constant dense<0.000000e+00> : vector<2x32xf32>
    %79 = tpu.matmul %74, %78, %cst_32 {dimension_numbers = #tpu.dot_dimension_numbers<[1], [0], [0], [1], [0, 0, 1, 1], [], []>} : vector<2x32xf32>, vector<32x32xf32>, vector<2x32xf32> -> vector<2x32xf32>
    %80 = arith.addf %1, %79 : vector<2x32xf32>
    %c0_33 = arith.constant 0 : index
    %c2 = arith.constant 2 : index
    %c0_34 = arith.constant 0 : index
    %81 = vector.load %arg0[%c0_33, %c2, %c0_34] : memref<2x8x4xf32, #tpu.memory_space<vmem>>, vector<2x1x4xf32>
    %82 = vector.shape_cast %81 : vector<2x1x4xf32> to vector<2x4xf32>
    %c0_35 = arith.constant 0 : index
    %c0_36 = arith.constant 0 : index
    %83 = vector.load %arg1[%c0_35, %c0_36] : memref<264x128xf32, #tpu.memory_space<vmem>>, vector<4x128xf32>
    %cst_37 = arith.constant dense<0.000000e+00> : vector<2x128xf32>
    %84 = tpu.matmul %82, %83, %cst_37 {dimension_numbers = #tpu.dot_dimension_numbers<[1], [0], [0], [1], [0, 0, 1, 1], [], []>} : vector<2x4xf32>, vector<4x128xf32>, vector<2x128xf32> -> vector<2x128xf32>
    %c40_38 = arith.constant 40 : index
    %c0_39 = arith.constant 0 : index
    %85 = vector.load %arg1[%c40_38, %c0_39] : memref<264x128xf32, #tpu.memory_space<vmem>>, vector<1x128xf32>
    %86 = vector.broadcast %85 : vector<1x128xf32> to vector<2x128xf32>
    %87 = arith.addf %84, %86 : vector<2x128xf32>
    %c8_40 = arith.constant 8 : index
    %c0_41 = arith.constant 0 : index
    %88 = vector.load %arg1[%c8_40, %c0_41] : memref<264x128xf32, #tpu.memory_space<vmem>>, vector<32x128xf32>
    %cst_42 = arith.constant dense<0.000000e+00> : vector<2x128xf32>
    %89 = tpu.matmul %51, %88, %cst_42 {dimension_numbers = #tpu.dot_dimension_numbers<[1], [0], [0], [1], [0, 0, 1, 1], [], []>} : vector<2x32xf32>, vector<32x128xf32>, vector<2x128xf32> -> vector<2x128xf32>
    %90 = arith.addf %87, %89 : vector<2x128xf32>
    %91 = arith.negf %90 : vector<2x128xf32>
    %92 = math.exp %91 : vector<2x128xf32>
    %cst_43 = arith.constant 1.000000e+00 : f32
    %93 = vector.broadcast %cst_43 : f32 to vector<2x128xf32>
    %94 = arith.addf %93, %92 : vector<2x128xf32>
    %95 = arith.divf %93, %94 : vector<2x128xf32>
    %96 = math.tanh %90 : vector<2x128xf32>
    %97 = vector.extract_strided_slice %95 {offsets = [0, 0], sizes = [2, 32], strides = [1, 1]} : vector<2x128xf32> to vector<2x32xf32>
    %98 = vector.extract_strided_slice %95 {offsets = [0, 32], sizes = [2, 32], strides = [1, 1]} : vector<2x128xf32> to vector<2x32xf32>
    %99 = vector.extract_strided_slice %96 {offsets = [0, 64], sizes = [2, 32], strides = [1, 1]} : vector<2x128xf32> to vector<2x32xf32>
    %100 = vector.extract_strided_slice %95 {offsets = [0, 96], sizes = [2, 32], strides = [1, 1]} : vector<2x128xf32> to vector<2x32xf32>
    %101 = arith.mulf %98, %49 : vector<2x32xf32>
    %102 = arith.mulf %97, %99 : vector<2x32xf32>
    %103 = arith.addf %101, %102 : vector<2x32xf32>
    %104 = math.tanh %103 : vector<2x32xf32>
    %105 = arith.mulf %100, %104 : vector<2x32xf32>
    %c48_44 = arith.constant 48 : index
    %c0_45 = arith.constant 0 : index
    %106 = vector.load %arg1[%c48_44, %c0_45] : memref<264x128xf32, #tpu.memory_space<vmem>>, vector<32x128xf32>
    %cst_46 = arith.constant dense<0.000000e+00> : vector<2x128xf32>
    %107 = tpu.matmul %51, %106, %cst_46 {dimension_numbers = #tpu.dot_dimension_numbers<[1], [0], [0], [1], [0, 0, 1, 1], [], []>} : vector<2x32xf32>, vector<32x128xf32>, vector<2x128xf32> -> vector<2x128xf32>
    %c112_47 = arith.constant 112 : index
    %c0_48 = arith.constant 0 : index
    %108 = vector.load %arg1[%c112_47, %c0_48] : memref<264x128xf32, #tpu.memory_space<vmem>>, vector<1x128xf32>
    %109 = vector.broadcast %108 : vector<1x128xf32> to vector<2x128xf32>
    %110 = arith.addf %107, %109 : vector<2x128xf32>
    %c80_49 = arith.constant 80 : index
    %c0_50 = arith.constant 0 : index
    %111 = vector.load %arg1[%c80_49, %c0_50] : memref<264x128xf32, #tpu.memory_space<vmem>>, vector<32x128xf32>
    %cst_51 = arith.constant dense<0.000000e+00> : vector<2x128xf32>
    %112 = tpu.matmul %74, %111, %cst_51 {dimension_numbers = #tpu.dot_dimension_numbers<[1], [0], [0], [1], [0, 0, 1, 1], [], []>} : vector<2x32xf32>, vector<32x128xf32>, vector<2x128xf32> -> vector<2x128xf32>
    %113 = arith.addf %110, %112 : vector<2x128xf32>
    %114 = arith.negf %113 : vector<2x128xf32>
    %115 = math.exp %114 : vector<2x128xf32>
    %cst_52 = arith.constant 1.000000e+00 : f32
    %116 = vector.broadcast %cst_52 : f32 to vector<2x128xf32>
    %117 = arith.addf %116, %115 : vector<2x128xf32>
    %118 = arith.divf %116, %117 : vector<2x128xf32>
    %119 = math.tanh %113 : vector<2x128xf32>
    %120 = vector.extract_strided_slice %118 {offsets = [0, 0], sizes = [2, 32], strides = [1, 1]} : vector<2x128xf32> to vector<2x32xf32>
    %121 = vector.extract_strided_slice %118 {offsets = [0, 32], sizes = [2, 32], strides = [1, 1]} : vector<2x128xf32> to vector<2x32xf32>
    %122 = vector.extract_strided_slice %119 {offsets = [0, 64], sizes = [2, 32], strides = [1, 1]} : vector<2x128xf32> to vector<2x32xf32>
    %123 = vector.extract_strided_slice %118 {offsets = [0, 96], sizes = [2, 32], strides = [1, 1]} : vector<2x128xf32> to vector<2x32xf32>
    %124 = arith.mulf %121, %72 : vector<2x32xf32>
    %125 = arith.mulf %120, %122 : vector<2x32xf32>
    %126 = arith.addf %124, %125 : vector<2x32xf32>
    %127 = math.tanh %126 : vector<2x32xf32>
    %128 = arith.mulf %123, %127 : vector<2x32xf32>
    %c1_53 = arith.constant 1 : index
    %c0_54 = arith.constant 0 : index
    %c0_55 = arith.constant 0 : index
    %129 = vector.load %arg4[%c1_53, %c0_54, %c0_55] : memref<8x2x32xf32, #tpu.memory_space<vmem>>, vector<1x2x32xf32>
    %130 = vector.shape_cast %129 : vector<1x2x32xf32> to vector<2x32xf32>
    %131 = vector.shape_cast %128 : vector<2x32xf32> to vector<1x2x32xf32>
    tpu.vector_store %arg4[%c1_53, %c0_54, %c0_55], %131 {strides = array<i32>} : memref<8x2x32xf32, #tpu.memory_space<vmem>>, vector<1x2x32xf32>,
    %c32 = arith.constant 32 : index
    %c0_56 = arith.constant 0 : index
    %132 = vector.load %arg2[%c32, %c0_56] : memref<328x32xf32, #tpu.memory_space<vmem>>, vector<32x32xf32>
    %cst_57 = arith.constant dense<0.000000e+00> : vector<2x32xf32>
    %133 = tpu.matmul %128, %132, %cst_57 {dimension_numbers = #tpu.dot_dimension_numbers<[1], [0], [0], [1], [0, 0, 1, 1], [], []>} : vector<2x32xf32>, vector<32x32xf32>, vector<2x32xf32> -> vector<2x32xf32>
    %134 = arith.addf %80, %133 : vector<2x32xf32>
    %c0_58 = arith.constant 0 : index
    %c3 = arith.constant 3 : index
    %c0_59 = arith.constant 0 : index
    %135 = vector.load %arg0[%c0_58, %c3, %c0_59] : memref<2x8x4xf32, #tpu.memory_space<vmem>>, vector<2x1x4xf32>
    %136 = vector.shape_cast %135 : vector<2x1x4xf32> to vector<2x4xf32>
    %c0_60 = arith.constant 0 : index
    %c0_61 = arith.constant 0 : index
    %137 = vector.load %arg1[%c0_60, %c0_61] : memref<264x128xf32, #tpu.memory_space<vmem>>, vector<4x128xf32>
    %cst_62 = arith.constant dense<0.000000e+00> : vector<2x128xf32>
    %138 = tpu.matmul %136, %137, %cst_62 {dimension_numbers = #tpu.dot_dimension_numbers<[1], [0], [0], [1], [0, 0, 1, 1], [], []>} : vector<2x4xf32>, vector<4x128xf32>, vector<2x128xf32> -> vector<2x128xf32>
    %c40_63 = arith.constant 40 : index
    %c0_64 = arith.constant 0 : index
    %139 = vector.load %arg1[%c40_63, %c0_64] : memref<264x128xf32, #tpu.memory_space<vmem>>, vector<1x128xf32>
    %140 = vector.broadcast %139 : vector<1x128xf32> to vector<2x128xf32>
    %141 = arith.addf %138, %140 : vector<2x128xf32>
    %c8_65 = arith.constant 8 : index
    %c0_66 = arith.constant 0 : index
    %142 = vector.load %arg1[%c8_65, %c0_66] : memref<264x128xf32, #tpu.memory_space<vmem>>, vector<32x128xf32>
    %cst_67 = arith.constant dense<0.000000e+00> : vector<2x128xf32>
    %143 = tpu.matmul %105, %142, %cst_67 {dimension_numbers = #tpu.dot_dimension_numbers<[1], [0], [0], [1], [0, 0, 1, 1], [], []>} : vector<2x32xf32>, vector<32x128xf32>, vector<2x128xf32> -> vector<2x128xf32>
    %144 = arith.addf %141, %143 : vector<2x128xf32>
    %145 = arith.negf %144 : vector<2x128xf32>
    %146 = math.exp %145 : vector<2x128xf32>
    %cst_68 = arith.constant 1.000000e+00 : f32
    %147 = vector.broadcast %cst_68 : f32 to vector<2x128xf32>
    %148 = arith.addf %147, %146 : vector<2x128xf32>
    %149 = arith.divf %147, %148 : vector<2x128xf32>
    %150 = math.tanh %144 : vector<2x128xf32>
    %151 = vector.extract_strided_slice %149 {offsets = [0, 0], sizes = [2, 32], strides = [1, 1]} : vector<2x128xf32> to vector<2x32xf32>
    %152 = vector.extract_strided_slice %149 {offsets = [0, 32], sizes = [2, 32], strides = [1, 1]} : vector<2x128xf32> to vector<2x32xf32>
    %153 = vector.extract_strided_slice %150 {offsets = [0, 64], sizes = [2, 32], strides = [1, 1]} : vector<2x128xf32> to vector<2x32xf32>
    %154 = vector.extract_strided_slice %149 {offsets = [0, 96], sizes = [2, 32], strides = [1, 1]} : vector<2x128xf32> to vector<2x32xf32>
    %155 = arith.mulf %152, %103 : vector<2x32xf32>
    %156 = arith.mulf %151, %153 : vector<2x32xf32>
    %157 = arith.addf %155, %156 : vector<2x32xf32>
    %158 = math.tanh %157 : vector<2x32xf32>
    %159 = arith.mulf %154, %158 : vector<2x32xf32>
    %c48_69 = arith.constant 48 : index
    %c0_70 = arith.constant 0 : index
    %160 = vector.load %arg1[%c48_69, %c0_70] : memref<264x128xf32, #tpu.memory_space<vmem>>, vector<32x128xf32>
    %cst_71 = arith.constant dense<0.000000e+00> : vector<2x128xf32>
    %161 = tpu.matmul %105, %160, %cst_71 {dimension_numbers = #tpu.dot_dimension_numbers<[1], [0], [0], [1], [0, 0, 1, 1], [], []>} : vector<2x32xf32>, vector<32x128xf32>, vector<2x128xf32> -> vector<2x128xf32>
    %c112_72 = arith.constant 112 : index
    %c0_73 = arith.constant 0 : index
    %162 = vector.load %arg1[%c112_72, %c0_73] : memref<264x128xf32, #tpu.memory_space<vmem>>, vector<1x128xf32>
    %163 = vector.broadcast %162 : vector<1x128xf32> to vector<2x128xf32>
    %164 = arith.addf %161, %163 : vector<2x128xf32>
    %c80_74 = arith.constant 80 : index
    %c0_75 = arith.constant 0 : index
    %165 = vector.load %arg1[%c80_74, %c0_75] : memref<264x128xf32, #tpu.memory_space<vmem>>, vector<32x128xf32>
    %cst_76 = arith.constant dense<0.000000e+00> : vector<2x128xf32>
    %166 = tpu.matmul %128, %165, %cst_76 {dimension_numbers = #tpu.dot_dimension_numbers<[1], [0], [0], [1], [0, 0, 1, 1], [], []>} : vector<2x32xf32>, vector<32x128xf32>, vector<2x128xf32> -> vector<2x128xf32>
    %167 = arith.addf %164, %166 : vector<2x128xf32>
    %168 = arith.negf %167 : vector<2x128xf32>
    %169 = math.exp %168 : vector<2x128xf32>
    %cst_77 = arith.constant 1.000000e+00 : f32
    %170 = vector.broadcast %cst_77 : f32 to vector<2x128xf32>
    %171 = arith.addf %170, %169 : vector<2x128xf32>
    %172 = arith.divf %170, %171 : vector<2x128xf32>
    %173 = math.tanh %167 : vector<2x128xf32>
    %174 = vector.extract_strided_slice %172 {offsets = [0, 0], sizes = [2, 32], strides = [1, 1]} : vector<2x128xf32> to vector<2x32xf32>
    %175 = vector.extract_strided_slice %172 {offsets = [0, 32], sizes = [2, 32], strides = [1, 1]} : vector<2x128xf32> to vector<2x32xf32>
    %176 = vector.extract_strided_slice %173 {offsets = [0, 64], sizes = [2, 32], strides = [1, 1]} : vector<2x128xf32> to vector<2x32xf32>
    %177 = vector.extract_strided_slice %172 {offsets = [0, 96], sizes = [2, 32], strides = [1, 1]} : vector<2x128xf32> to vector<2x32xf32>
    %178 = arith.mulf %175, %126 : vector<2x32xf32>
    %179 = arith.mulf %174, %176 : vector<2x32xf32>
    %180 = arith.addf %178, %179 : vector<2x32xf32>
    %181 = math.tanh %180 : vector<2x32xf32>
    %182 = arith.mulf %177, %181 : vector<2x32xf32>
    %c2_78 = arith.constant 2 : index
    %c0_79 = arith.constant 0 : index
    %c0_80 = arith.constant 0 : index
    %183 = vector.load %arg4[%c2_78, %c0_79, %c0_80] : memref<8x2x32xf32, #tpu.memory_space<vmem>>, vector<1x2x32xf32>
    %184 = vector.shape_cast %183 : vector<1x2x32xf32> to vector<2x32xf32>
    %185 = vector.shape_cast %182 : vector<2x32xf32> to vector<1x2x32xf32>
    tpu.vector_store %arg4[%c2_78, %c0_79, %c0_80], %185 {strides = array<i32>} : memref<8x2x32xf32, #tpu.memory_space<vmem>>, vector<1x2x32xf32>,
    %c64 = arith.constant 64 : index
    %c0_81 = arith.constant 0 : index
    %186 = vector.load %arg2[%c64, %c0_81] : memref<328x32xf32, #tpu.memory_space<vmem>>, vector<32x32xf32>
    %cst_82 = arith.constant dense<0.000000e+00> : vector<2x32xf32>
    %187 = tpu.matmul %182, %186, %cst_82 {dimension_numbers = #tpu.dot_dimension_numbers<[1], [0], [0], [1], [0, 0, 1, 1], [], []>} : vector<2x32xf32>, vector<32x32xf32>, vector<2x32xf32> -> vector<2x32xf32>
    %188 = arith.addf %134, %187 : vector<2x32xf32>
    %c0_83 = arith.constant 0 : index
    %c4 = arith.constant 4 : index
    %c0_84 = arith.constant 0 : index
    %189 = vector.load %arg0[%c0_83, %c4, %c0_84] : memref<2x8x4xf32, #tpu.memory_space<vmem>>, vector<2x1x4xf32>
    %190 = vector.shape_cast %189 : vector<2x1x4xf32> to vector<2x4xf32>
    %c0_85 = arith.constant 0 : index
    %c0_86 = arith.constant 0 : index
    %191 = vector.load %arg1[%c0_85, %c0_86] : memref<264x128xf32, #tpu.memory_space<vmem>>, vector<4x128xf32>
    %cst_87 = arith.constant dense<0.000000e+00> : vector<2x128xf32>
    %192 = tpu.matmul %190, %191, %cst_87 {dimension_numbers = #tpu.dot_dimension_numbers<[1], [0], [0], [1], [0, 0, 1, 1], [], []>} : vector<2x4xf32>, vector<4x128xf32>, vector<2x128xf32> -> vector<2x128xf32>
    %c40_88 = arith.constant 40 : index
    %c0_89 = arith.constant 0 : index
    %193 = vector.load %arg1[%c40_88, %c0_89] : memref<264x128xf32, #tpu.memory_space<vmem>>, vector<1x128xf32>
    %194 = vector.broadcast %193 : vector<1x128xf32> to vector<2x128xf32>
    %195 = arith.addf %192, %194 : vector<2x128xf32>
    %c8_90 = arith.constant 8 : index
    %c0_91 = arith.constant 0 : index
    %196 = vector.load %arg1[%c8_90, %c0_91] : memref<264x128xf32, #tpu.memory_space<vmem>>, vector<32x128xf32>
    %cst_92 = arith.constant dense<0.000000e+00> : vector<2x128xf32>
    %197 = tpu.matmul %159, %196, %cst_92 {dimension_numbers = #tpu.dot_dimension_numbers<[1], [0], [0], [1], [0, 0, 1, 1], [], []>} : vector<2x32xf32>, vector<32x128xf32>, vector<2x128xf32> -> vector<2x128xf32>
    %198 = arith.addf %195, %197 : vector<2x128xf32>
    %199 = arith.negf %198 : vector<2x128xf32>
    %200 = math.exp %199 : vector<2x128xf32>
    %cst_93 = arith.constant 1.000000e+00 : f32
    %201 = vector.broadcast %cst_93 : f32 to vector<2x128xf32>
    %202 = arith.addf %201, %200 : vector<2x128xf32>
    %203 = arith.divf %201, %202 : vector<2x128xf32>
    %204 = math.tanh %198 : vector<2x128xf32>
    %205 = vector.extract_strided_slice %203 {offsets = [0, 0], sizes = [2, 32], strides = [1, 1]} : vector<2x128xf32> to vector<2x32xf32>
    %206 = vector.extract_strided_slice %203 {offsets = [0, 32], sizes = [2, 32], strides = [1, 1]} : vector<2x128xf32> to vector<2x32xf32>
    %207 = vector.extract_strided_slice %204 {offsets = [0, 64], sizes = [2, 32], strides = [1, 1]} : vector<2x128xf32> to vector<2x32xf32>
    %208 = vector.extract_strided_slice %203 {offsets = [0, 96], sizes = [2, 32], strides = [1, 1]} : vector<2x128xf32> to vector<2x32xf32>
    %209 = arith.mulf %206, %157 : vector<2x32xf32>
    %210 = arith.mulf %205, %207 : vector<2x32xf32>
    %211 = arith.addf %209, %210 : vector<2x32xf32>
    %212 = math.tanh %211 : vector<2x32xf32>
    %213 = arith.mulf %208, %212 : vector<2x32xf32>
    %c48_94 = arith.constant 48 : index
    %c0_95 = arith.constant 0 : index
    %214 = vector.load %arg1[%c48_94, %c0_95] : memref<264x128xf32, #tpu.memory_space<vmem>>, vector<32x128xf32>
    %cst_96 = arith.constant dense<0.000000e+00> : vector<2x128xf32>
    %215 = tpu.matmul %159, %214, %cst_96 {dimension_numbers = #tpu.dot_dimension_numbers<[1], [0], [0], [1], [0, 0, 1, 1], [], []>} : vector<2x32xf32>, vector<32x128xf32>, vector<2x128xf32> -> vector<2x128xf32>
    %c112_97 = arith.constant 112 : index
    %c0_98 = arith.constant 0 : index
    %216 = vector.load %arg1[%c112_97, %c0_98] : memref<264x128xf32, #tpu.memory_space<vmem>>, vector<1x128xf32>
    %217 = vector.broadcast %216 : vector<1x128xf32> to vector<2x128xf32>
    %218 = arith.addf %215, %217 : vector<2x128xf32>
    %c80_99 = arith.constant 80 : index
    %c0_100 = arith.constant 0 : index
    %219 = vector.load %arg1[%c80_99, %c0_100] : memref<264x128xf32, #tpu.memory_space<vmem>>, vector<32x128xf32>
    %cst_101 = arith.constant dense<0.000000e+00> : vector<2x128xf32>
    %220 = tpu.matmul %182, %219, %cst_101 {dimension_numbers = #tpu.dot_dimension_numbers<[1], [0], [0], [1], [0, 0, 1, 1], [], []>} : vector<2x32xf32>, vector<32x128xf32>, vector<2x128xf32> -> vector<2x128xf32>
    %221 = arith.addf %218, %220 : vector<2x128xf32>
    %222 = arith.negf %221 : vector<2x128xf32>
    %223 = math.exp %222 : vector<2x128xf32>
    %cst_102 = arith.constant 1.000000e+00 : f32
    %224 = vector.broadcast %cst_102 : f32 to vector<2x128xf32>
    %225 = arith.addf %224, %223 : vector<2x128xf32>
    %226 = arith.divf %224, %225 : vector<2x128xf32>
    %227 = math.tanh %221 : vector<2x128xf32>
    %228 = vector.extract_strided_slice %226 {offsets = [0, 0], sizes = [2, 32], strides = [1, 1]} : vector<2x128xf32> to vector<2x32xf32>
    %229 = vector.extract_strided_slice %226 {offsets = [0, 32], sizes = [2, 32], strides = [1, 1]} : vector<2x128xf32> to vector<2x32xf32>
    %230 = vector.extract_strided_slice %227 {offsets = [0, 64], sizes = [2, 32], strides = [1, 1]} : vector<2x128xf32> to vector<2x32xf32>
    %231 = vector.extract_strided_slice %226 {offsets = [0, 96], sizes = [2, 32], strides = [1, 1]} : vector<2x128xf32> to vector<2x32xf32>
    %232 = arith.mulf %229, %180 : vector<2x32xf32>
    %233 = arith.mulf %228, %230 : vector<2x32xf32>
    %234 = arith.addf %232, %233 : vector<2x32xf32>
    %235 = math.tanh %234 : vector<2x32xf32>
    %236 = arith.mulf %231, %235 : vector<2x32xf32>
    %c3_103 = arith.constant 3 : index
    %c0_104 = arith.constant 0 : index
    %c0_105 = arith.constant 0 : index
    %237 = vector.load %arg4[%c3_103, %c0_104, %c0_105] : memref<8x2x32xf32, #tpu.memory_space<vmem>>, vector<1x2x32xf32>
    %238 = vector.shape_cast %237 : vector<1x2x32xf32> to vector<2x32xf32>
    %239 = vector.shape_cast %236 : vector<2x32xf32> to vector<1x2x32xf32>
    tpu.vector_store %arg4[%c3_103, %c0_104, %c0_105], %239 {strides = array<i32>} : memref<8x2x32xf32, #tpu.memory_space<vmem>>, vector<1x2x32xf32>,
    %c96 = arith.constant 96 : index
    %c0_106 = arith.constant 0 : index
    %240 = vector.load %arg2[%c96, %c0_106] : memref<328x32xf32, #tpu.memory_space<vmem>>, vector<32x32xf32>
    %cst_107 = arith.constant dense<0.000000e+00> : vector<2x32xf32>
    %241 = tpu.matmul %236, %240, %cst_107 {dimension_numbers = #tpu.dot_dimension_numbers<[1], [0], [0], [1], [0, 0, 1, 1], [], []>} : vector<2x32xf32>, vector<32x32xf32>, vector<2x32xf32> -> vector<2x32xf32>
    %242 = arith.addf %188, %241 : vector<2x32xf32>
    %c0_108 = arith.constant 0 : index
    %c5 = arith.constant 5 : index
    %c0_109 = arith.constant 0 : index
    %243 = vector.load %arg0[%c0_108, %c5, %c0_109] : memref<2x8x4xf32, #tpu.memory_space<vmem>>, vector<2x1x4xf32>
    %244 = vector.shape_cast %243 : vector<2x1x4xf32> to vector<2x4xf32>
    %c0_110 = arith.constant 0 : index
    %c0_111 = arith.constant 0 : index
    %245 = vector.load %arg1[%c0_110, %c0_111] : memref<264x128xf32, #tpu.memory_space<vmem>>, vector<4x128xf32>
    %cst_112 = arith.constant dense<0.000000e+00> : vector<2x128xf32>
    %246 = tpu.matmul %244, %245, %cst_112 {dimension_numbers = #tpu.dot_dimension_numbers<[1], [0], [0], [1], [0, 0, 1, 1], [], []>} : vector<2x4xf32>, vector<4x128xf32>, vector<2x128xf32> -> vector<2x128xf32>
    %c40_113 = arith.constant 40 : index
    %c0_114 = arith.constant 0 : index
    %247 = vector.load %arg1[%c40_113, %c0_114] : memref<264x128xf32, #tpu.memory_space<vmem>>, vector<1x128xf32>
    %248 = vector.broadcast %247 : vector<1x128xf32> to vector<2x128xf32>
    %249 = arith.addf %246, %248 : vector<2x128xf32>
    %c8_115 = arith.constant 8 : index
    %c0_116 = arith.constant 0 : index
    %250 = vector.load %arg1[%c8_115, %c0_116] : memref<264x128xf32, #tpu.memory_space<vmem>>, vector<32x128xf32>
    %cst_117 = arith.constant dense<0.000000e+00> : vector<2x128xf32>
    %251 = tpu.matmul %213, %250, %cst_117 {dimension_numbers = #tpu.dot_dimension_numbers<[1], [0], [0], [1], [0, 0, 1, 1], [], []>} : vector<2x32xf32>, vector<32x128xf32>, vector<2x128xf32> -> vector<2x128xf32>
    %252 = arith.addf %249, %251 : vector<2x128xf32>
    %253 = arith.negf %252 : vector<2x128xf32>
    %254 = math.exp %253 : vector<2x128xf32>
    %cst_118 = arith.constant 1.000000e+00 : f32
    %255 = vector.broadcast %cst_118 : f32 to vector<2x128xf32>
    %256 = arith.addf %255, %254 : vector<2x128xf32>
    %257 = arith.divf %255, %256 : vector<2x128xf32>
    %258 = math.tanh %252 : vector<2x128xf32>
    %259 = vector.extract_strided_slice %257 {offsets = [0, 0], sizes = [2, 32], strides = [1, 1]} : vector<2x128xf32> to vector<2x32xf32>
    %260 = vector.extract_strided_slice %257 {offsets = [0, 32], sizes = [2, 32], strides = [1, 1]} : vector<2x128xf32> to vector<2x32xf32>
    %261 = vector.extract_strided_slice %258 {offsets = [0, 64], sizes = [2, 32], strides = [1, 1]} : vector<2x128xf32> to vector<2x32xf32>
    %262 = vector.extract_strided_slice %257 {offsets = [0, 96], sizes = [2, 32], strides = [1, 1]} : vector<2x128xf32> to vector<2x32xf32>
    %263 = arith.mulf %260, %211 : vector<2x32xf32>
    %264 = arith.mulf %259, %261 : vector<2x32xf32>
    %265 = arith.addf %263, %264 : vector<2x32xf32>
    %266 = math.tanh %265 : vector<2x32xf32>
    %267 = arith.mulf %262, %266 : vector<2x32xf32>
    %c48_119 = arith.constant 48 : index
    %c0_120 = arith.constant 0 : index
    %268 = vector.load %arg1[%c48_119, %c0_120] : memref<264x128xf32, #tpu.memory_space<vmem>>, vector<32x128xf32>
    %cst_121 = arith.constant dense<0.000000e+00> : vector<2x128xf32>
    %269 = tpu.matmul %213, %268, %cst_121 {dimension_numbers = #tpu.dot_dimension_numbers<[1], [0], [0], [1], [0, 0, 1, 1], [], []>} : vector<2x32xf32>, vector<32x128xf32>, vector<2x128xf32> -> vector<2x128xf32>
    %c112_122 = arith.constant 112 : index
    %c0_123 = arith.constant 0 : index
    %270 = vector.load %arg1[%c112_122, %c0_123] : memref<264x128xf32, #tpu.memory_space<vmem>>, vector<1x128xf32>
    %271 = vector.broadcast %270 : vector<1x128xf32> to vector<2x128xf32>
    %272 = arith.addf %269, %271 : vector<2x128xf32>
    %c80_124 = arith.constant 80 : index
    %c0_125 = arith.constant 0 : index
    %273 = vector.load %arg1[%c80_124, %c0_125] : memref<264x128xf32, #tpu.memory_space<vmem>>, vector<32x128xf32>
    %cst_126 = arith.constant dense<0.000000e+00> : vector<2x128xf32>
    %274 = tpu.matmul %236, %273, %cst_126 {dimension_numbers = #tpu.dot_dimension_numbers<[1], [0], [0], [1], [0, 0, 1, 1], [], []>} : vector<2x32xf32>, vector<32x128xf32>, vector<2x128xf32> -> vector<2x128xf32>
    %275 = arith.addf %272, %274 : vector<2x128xf32>
    %276 = arith.negf %275 : vector<2x128xf32>
    %277 = math.exp %276 : vector<2x128xf32>
    %cst_127 = arith.constant 1.000000e+00 : f32
    %278 = vector.broadcast %cst_127 : f32 to vector<2x128xf32>
    %279 = arith.addf %278, %277 : vector<2x128xf32>
    %280 = arith.divf %278, %279 : vector<2x128xf32>
    %281 = math.tanh %275 : vector<2x128xf32>
    %282 = vector.extract_strided_slice %280 {offsets = [0, 0], sizes = [2, 32], strides = [1, 1]} : vector<2x128xf32> to vector<2x32xf32>
    %283 = vector.extract_strided_slice %280 {offsets = [0, 32], sizes = [2, 32], strides = [1, 1]} : vector<2x128xf32> to vector<2x32xf32>
    %284 = vector.extract_strided_slice %281 {offsets = [0, 64], sizes = [2, 32], strides = [1, 1]} : vector<2x128xf32> to vector<2x32xf32>
    %285 = vector.extract_strided_slice %280 {offsets = [0, 96], sizes = [2, 32], strides = [1, 1]} : vector<2x128xf32> to vector<2x32xf32>
    %286 = arith.mulf %283, %234 : vector<2x32xf32>
    %287 = arith.mulf %282, %284 : vector<2x32xf32>
    %288 = arith.addf %286, %287 : vector<2x32xf32>
    %289 = math.tanh %288 : vector<2x32xf32>
    %290 = arith.mulf %285, %289 : vector<2x32xf32>
    %c4_128 = arith.constant 4 : index
    %c0_129 = arith.constant 0 : index
    %c0_130 = arith.constant 0 : index
    %291 = vector.load %arg4[%c4_128, %c0_129, %c0_130] : memref<8x2x32xf32, #tpu.memory_space<vmem>>, vector<1x2x32xf32>
    %292 = vector.shape_cast %291 : vector<1x2x32xf32> to vector<2x32xf32>
    %293 = vector.shape_cast %290 : vector<2x32xf32> to vector<1x2x32xf32>
    tpu.vector_store %arg4[%c4_128, %c0_129, %c0_130], %293 {strides = array<i32>} : memref<8x2x32xf32, #tpu.memory_space<vmem>>, vector<1x2x32xf32>,
    %c128 = arith.constant 128 : index
    %c0_131 = arith.constant 0 : index
    %294 = vector.load %arg2[%c128, %c0_131] : memref<328x32xf32, #tpu.memory_space<vmem>>, vector<32x32xf32>
    %cst_132 = arith.constant dense<0.000000e+00> : vector<2x32xf32>
    %295 = tpu.matmul %290, %294, %cst_132 {dimension_numbers = #tpu.dot_dimension_numbers<[1], [0], [0], [1], [0, 0, 1, 1], [], []>} : vector<2x32xf32>, vector<32x32xf32>, vector<2x32xf32> -> vector<2x32xf32>
    %296 = arith.addf %242, %295 : vector<2x32xf32>
    %c0_133 = arith.constant 0 : index
    %c6 = arith.constant 6 : index
    %c0_134 = arith.constant 0 : index
    %297 = vector.load %arg0[%c0_133, %c6, %c0_134] : memref<2x8x4xf32, #tpu.memory_space<vmem>>, vector<2x1x4xf32>
    %298 = vector.shape_cast %297 : vector<2x1x4xf32> to vector<2x4xf32>
    %c0_135 = arith.constant 0 : index
    %c0_136 = arith.constant 0 : index
    %299 = vector.load %arg1[%c0_135, %c0_136] : memref<264x128xf32, #tpu.memory_space<vmem>>, vector<4x128xf32>
    %cst_137 = arith.constant dense<0.000000e+00> : vector<2x128xf32>
    %300 = tpu.matmul %298, %299, %cst_137 {dimension_numbers = #tpu.dot_dimension_numbers<[1], [0], [0], [1], [0, 0, 1, 1], [], []>} : vector<2x4xf32>, vector<4x128xf32>, vector<2x128xf32> -> vector<2x128xf32>
    %c40_138 = arith.constant 40 : index
    %c0_139 = arith.constant 0 : index
    %301 = vector.load %arg1[%c40_138, %c0_139] : memref<264x128xf32, #tpu.memory_space<vmem>>, vector<1x128xf32>
    %302 = vector.broadcast %301 : vector<1x128xf32> to vector<2x128xf32>
    %303 = arith.addf %300, %302 : vector<2x128xf32>
    %c8_140 = arith.constant 8 : index
    %c0_141 = arith.constant 0 : index
    %304 = vector.load %arg1[%c8_140, %c0_141] : memref<264x128xf32, #tpu.memory_space<vmem>>, vector<32x128xf32>
    %cst_142 = arith.constant dense<0.000000e+00> : vector<2x128xf32>
    %305 = tpu.matmul %267, %304, %cst_142 {dimension_numbers = #tpu.dot_dimension_numbers<[1], [0], [0], [1], [0, 0, 1, 1], [], []>} : vector<2x32xf32>, vector<32x128xf32>, vector<2x128xf32> -> vector<2x128xf32>
    %306 = arith.addf %303, %305 : vector<2x128xf32>
    %307 = arith.negf %306 : vector<2x128xf32>
    %308 = math.exp %307 : vector<2x128xf32>
    %cst_143 = arith.constant 1.000000e+00 : f32
    %309 = vector.broadcast %cst_143 : f32 to vector<2x128xf32>
    %310 = arith.addf %309, %308 : vector<2x128xf32>
    %311 = arith.divf %309, %310 : vector<2x128xf32>
    %312 = math.tanh %306 : vector<2x128xf32>
    %313 = vector.extract_strided_slice %311 {offsets = [0, 0], sizes = [2, 32], strides = [1, 1]} : vector<2x128xf32> to vector<2x32xf32>
    %314 = vector.extract_strided_slice %311 {offsets = [0, 32], sizes = [2, 32], strides = [1, 1]} : vector<2x128xf32> to vector<2x32xf32>
    %315 = vector.extract_strided_slice %312 {offsets = [0, 64], sizes = [2, 32], strides = [1, 1]} : vector<2x128xf32> to vector<2x32xf32>
    %316 = vector.extract_strided_slice %311 {offsets = [0, 96], sizes = [2, 32], strides = [1, 1]} : vector<2x128xf32> to vector<2x32xf32>
    %317 = arith.mulf %314, %265 : vector<2x32xf32>
    %318 = arith.mulf %313, %315 : vector<2x32xf32>
    %319 = arith.addf %317, %318 : vector<2x32xf32>
    %320 = math.tanh %319 : vector<2x32xf32>
    %321 = arith.mulf %316, %320 : vector<2x32xf32>
    %c48_144 = arith.constant 48 : index
    %c0_145 = arith.constant 0 : index
    %322 = vector.load %arg1[%c48_144, %c0_145] : memref<264x128xf32, #tpu.memory_space<vmem>>, vector<32x128xf32>
    %cst_146 = arith.constant dense<0.000000e+00> : vector<2x128xf32>
    %323 = tpu.matmul %267, %322, %cst_146 {dimension_numbers = #tpu.dot_dimension_numbers<[1], [0], [0], [1], [0, 0, 1, 1], [], []>} : vector<2x32xf32>, vector<32x128xf32>, vector<2x128xf32> -> vector<2x128xf32>
    %c112_147 = arith.constant 112 : index
    %c0_148 = arith.constant 0 : index
    %324 = vector.load %arg1[%c112_147, %c0_148] : memref<264x128xf32, #tpu.memory_space<vmem>>, vector<1x128xf32>
    %325 = vector.broadcast %324 : vector<1x128xf32> to vector<2x128xf32>
    %326 = arith.addf %323, %325 : vector<2x128xf32>
    %c80_149 = arith.constant 80 : index
    %c0_150 = arith.constant 0 : index
    %327 = vector.load %arg1[%c80_149, %c0_150] : memref<264x128xf32, #tpu.memory_space<vmem>>, vector<32x128xf32>
    %cst_151 = arith.constant dense<0.000000e+00> : vector<2x128xf32>
    %328 = tpu.matmul %290, %327, %cst_151 {dimension_numbers = #tpu.dot_dimension_numbers<[1], [0], [0], [1], [0, 0, 1, 1], [], []>} : vector<2x32xf32>, vector<32x128xf32>, vector<2x128xf32> -> vector<2x128xf32>
    %329 = arith.addf %326, %328 : vector<2x128xf32>
    %330 = arith.negf %329 : vector<2x128xf32>
    %331 = math.exp %330 : vector<2x128xf32>
    %cst_152 = arith.constant 1.000000e+00 : f32
    %332 = vector.broadcast %cst_152 : f32 to vector<2x128xf32>
    %333 = arith.addf %332, %331 : vector<2x128xf32>
    %334 = arith.divf %332, %333 : vector<2x128xf32>
    %335 = math.tanh %329 : vector<2x128xf32>
    %336 = vector.extract_strided_slice %334 {offsets = [0, 0], sizes = [2, 32], strides = [1, 1]} : vector<2x128xf32> to vector<2x32xf32>
    %337 = vector.extract_strided_slice %334 {offsets = [0, 32], sizes = [2, 32], strides = [1, 1]} : vector<2x128xf32> to vector<2x32xf32>
    %338 = vector.extract_strided_slice %335 {offsets = [0, 64], sizes = [2, 32], strides = [1, 1]} : vector<2x128xf32> to vector<2x32xf32>
    %339 = vector.extract_strided_slice %334 {offsets = [0, 96], sizes = [2, 32], strides = [1, 1]} : vector<2x128xf32> to vector<2x32xf32>
    %340 = arith.mulf %337, %288 : vector<2x32xf32>
    %341 = arith.mulf %336, %338 : vector<2x32xf32>
    %342 = arith.addf %340, %341 : vector<2x32xf32>
    %343 = math.tanh %342 : vector<2x32xf32>
    %344 = arith.mulf %339, %343 : vector<2x32xf32>
    %c5_153 = arith.constant 5 : index
    %c0_154 = arith.constant 0 : index
    %c0_155 = arith.constant 0 : index
    %345 = vector.load %arg4[%c5_153, %c0_154, %c0_155] : memref<8x2x32xf32, #tpu.memory_space<vmem>>, vector<1x2x32xf32>
    %346 = vector.shape_cast %345 : vector<1x2x32xf32> to vector<2x32xf32>
    %347 = vector.shape_cast %344 : vector<2x32xf32> to vector<1x2x32xf32>
    tpu.vector_store %arg4[%c5_153, %c0_154, %c0_155], %347 {strides = array<i32>} : memref<8x2x32xf32, #tpu.memory_space<vmem>>, vector<1x2x32xf32>,
    %c160 = arith.constant 160 : index
    %c0_156 = arith.constant 0 : index
    %348 = vector.load %arg2[%c160, %c0_156] : memref<328x32xf32, #tpu.memory_space<vmem>>, vector<32x32xf32>
    %cst_157 = arith.constant dense<0.000000e+00> : vector<2x32xf32>
    %349 = tpu.matmul %344, %348, %cst_157 {dimension_numbers = #tpu.dot_dimension_numbers<[1], [0], [0], [1], [0, 0, 1, 1], [], []>} : vector<2x32xf32>, vector<32x32xf32>, vector<2x32xf32> -> vector<2x32xf32>
    %350 = arith.addf %296, %349 : vector<2x32xf32>
    %c0_158 = arith.constant 0 : index
    %c7 = arith.constant 7 : index
    %c0_159 = arith.constant 0 : index
    %351 = vector.load %arg0[%c0_158, %c7, %c0_159] : memref<2x8x4xf32, #tpu.memory_space<vmem>>, vector<2x1x4xf32>
    %352 = vector.shape_cast %351 : vector<2x1x4xf32> to vector<2x4xf32>
    %c0_160 = arith.constant 0 : index
    %c0_161 = arith.constant 0 : index
    %353 = vector.load %arg1[%c0_160, %c0_161] : memref<264x128xf32, #tpu.memory_space<vmem>>, vector<4x128xf32>
    %cst_162 = arith.constant dense<0.000000e+00> : vector<2x128xf32>
    %354 = tpu.matmul %352, %353, %cst_162 {dimension_numbers = #tpu.dot_dimension_numbers<[1], [0], [0], [1], [0, 0, 1, 1], [], []>} : vector<2x4xf32>, vector<4x128xf32>, vector<2x128xf32> -> vector<2x128xf32>
    %c40_163 = arith.constant 40 : index
    %c0_164 = arith.constant 0 : index
    %355 = vector.load %arg1[%c40_163, %c0_164] : memref<264x128xf32, #tpu.memory_space<vmem>>, vector<1x128xf32>
    %356 = vector.broadcast %355 : vector<1x128xf32> to vector<2x128xf32>
    %357 = arith.addf %354, %356 : vector<2x128xf32>
    %c8_165 = arith.constant 8 : index
    %c0_166 = arith.constant 0 : index
    %358 = vector.load %arg1[%c8_165, %c0_166] : memref<264x128xf32, #tpu.memory_space<vmem>>, vector<32x128xf32>
    %cst_167 = arith.constant dense<0.000000e+00> : vector<2x128xf32>
    %359 = tpu.matmul %321, %358, %cst_167 {dimension_numbers = #tpu.dot_dimension_numbers<[1], [0], [0], [1], [0, 0, 1, 1], [], []>} : vector<2x32xf32>, vector<32x128xf32>, vector<2x128xf32> -> vector<2x128xf32>
    %360 = arith.addf %357, %359 : vector<2x128xf32>
    %361 = arith.negf %360 : vector<2x128xf32>
    %362 = math.exp %361 : vector<2x128xf32>
    %cst_168 = arith.constant 1.000000e+00 : f32
    %363 = vector.broadcast %cst_168 : f32 to vector<2x128xf32>
    %364 = arith.addf %363, %362 : vector<2x128xf32>
    %365 = arith.divf %363, %364 : vector<2x128xf32>
    %366 = math.tanh %360 : vector<2x128xf32>
    %367 = vector.extract_strided_slice %365 {offsets = [0, 0], sizes = [2, 32], strides = [1, 1]} : vector<2x128xf32> to vector<2x32xf32>
    %368 = vector.extract_strided_slice %365 {offsets = [0, 32], sizes = [2, 32], strides = [1, 1]} : vector<2x128xf32> to vector<2x32xf32>
    %369 = vector.extract_strided_slice %366 {offsets = [0, 64], sizes = [2, 32], strides = [1, 1]} : vector<2x128xf32> to vector<2x32xf32>
    %370 = vector.extract_strided_slice %365 {offsets = [0, 96], sizes = [2, 32], strides = [1, 1]} : vector<2x128xf32> to vector<2x32xf32>
    %371 = arith.mulf %368, %319 : vector<2x32xf32>
    %372 = arith.mulf %367, %369 : vector<2x32xf32>
    %373 = arith.addf %371, %372 : vector<2x32xf32>
    %374 = math.tanh %373 : vector<2x32xf32>
    %375 = arith.mulf %370, %374 : vector<2x32xf32>
    %c48_169 = arith.constant 48 : index
    %c0_170 = arith.constant 0 : index
    %376 = vector.load %arg1[%c48_169, %c0_170] : memref<264x128xf32, #tpu.memory_space<vmem>>, vector<32x128xf32>
    %cst_171 = arith.constant dense<0.000000e+00> : vector<2x128xf32>
    %377 = tpu.matmul %321, %376, %cst_171 {dimension_numbers = #tpu.dot_dimension_numbers<[1], [0], [0], [1], [0, 0, 1, 1], [], []>} : vector<2x32xf32>, vector<32x128xf32>, vector<2x128xf32> -> vector<2x128xf32>
    %c112_172 = arith.constant 112 : index
    %c0_173 = arith.constant 0 : index
    %378 = vector.load %arg1[%c112_172, %c0_173] : memref<264x128xf32, #tpu.memory_space<vmem>>, vector<1x128xf32>
    %379 = vector.broadcast %378 : vector<1x128xf32> to vector<2x128xf32>
    %380 = arith.addf %377, %379 : vector<2x128xf32>
    %c80_174 = arith.constant 80 : index
    %c0_175 = arith.constant 0 : index
    %381 = vector.load %arg1[%c80_174, %c0_175] : memref<264x128xf32, #tpu.memory_space<vmem>>, vector<32x128xf32>
    %cst_176 = arith.constant dense<0.000000e+00> : vector<2x128xf32>
    %382 = tpu.matmul %344, %381, %cst_176 {dimension_numbers = #tpu.dot_dimension_numbers<[1], [0], [0], [1], [0, 0, 1, 1], [], []>} : vector<2x32xf32>, vector<32x128xf32>, vector<2x128xf32> -> vector<2x128xf32>
    %383 = arith.addf %380, %382 : vector<2x128xf32>
    %384 = arith.negf %383 : vector<2x128xf32>
    %385 = math.exp %384 : vector<2x128xf32>
    %cst_177 = arith.constant 1.000000e+00 : f32
    %386 = vector.broadcast %cst_177 : f32 to vector<2x128xf32>
    %387 = arith.addf %386, %385 : vector<2x128xf32>
    %388 = arith.divf %386, %387 : vector<2x128xf32>
    %389 = math.tanh %383 : vector<2x128xf32>
    %390 = vector.extract_strided_slice %388 {offsets = [0, 0], sizes = [2, 32], strides = [1, 1]} : vector<2x128xf32> to vector<2x32xf32>
    %391 = vector.extract_strided_slice %388 {offsets = [0, 32], sizes = [2, 32], strides = [1, 1]} : vector<2x128xf32> to vector<2x32xf32>
    %392 = vector.extract_strided_slice %389 {offsets = [0, 64], sizes = [2, 32], strides = [1, 1]} : vector<2x128xf32> to vector<2x32xf32>
    %393 = vector.extract_strided_slice %388 {offsets = [0, 96], sizes = [2, 32], strides = [1, 1]} : vector<2x128xf32> to vector<2x32xf32>
    %394 = arith.mulf %391, %342 : vector<2x32xf32>
    %395 = arith.mulf %390, %392 : vector<2x32xf32>
    %396 = arith.addf %394, %395 : vector<2x32xf32>
    %397 = math.tanh %396 : vector<2x32xf32>
    %398 = arith.mulf %393, %397 : vector<2x32xf32>
    %c6_178 = arith.constant 6 : index
    %c0_179 = arith.constant 0 : index
    %c0_180 = arith.constant 0 : index
    %399 = vector.load %arg4[%c6_178, %c0_179, %c0_180] : memref<8x2x32xf32, #tpu.memory_space<vmem>>, vector<1x2x32xf32>
    %400 = vector.shape_cast %399 : vector<1x2x32xf32> to vector<2x32xf32>
    %401 = vector.shape_cast %398 : vector<2x32xf32> to vector<1x2x32xf32>
    tpu.vector_store %arg4[%c6_178, %c0_179, %c0_180], %401 {strides = array<i32>} : memref<8x2x32xf32, #tpu.memory_space<vmem>>, vector<1x2x32xf32>,
    %c192 = arith.constant 192 : index
    %c0_181 = arith.constant 0 : index
    %402 = vector.load %arg2[%c192, %c0_181] : memref<328x32xf32, #tpu.memory_space<vmem>>, vector<32x32xf32>
    %cst_182 = arith.constant dense<0.000000e+00> : vector<2x32xf32>
    %403 = tpu.matmul %398, %402, %cst_182 {dimension_numbers = #tpu.dot_dimension_numbers<[1], [0], [0], [1], [0, 0, 1, 1], [], []>} : vector<2x32xf32>, vector<32x32xf32>, vector<2x32xf32> -> vector<2x32xf32>
    %404 = arith.addf %350, %403 : vector<2x32xf32>
    %c48_183 = arith.constant 48 : index
    %c0_184 = arith.constant 0 : index
    %405 = vector.load %arg1[%c48_183, %c0_184] : memref<264x128xf32, #tpu.memory_space<vmem>>, vector<32x128xf32>
    %cst_185 = arith.constant dense<0.000000e+00> : vector<2x128xf32>
    %406 = tpu.matmul %375, %405, %cst_185 {dimension_numbers = #tpu.dot_dimension_numbers<[1], [0], [0], [1], [0, 0, 1, 1], [], []>} : vector<2x32xf32>, vector<32x128xf32>, vector<2x128xf32> -> vector<2x128xf32>
    %c112_186 = arith.constant 112 : index
    %c0_187 = arith.constant 0 : index
    %407 = vector.load %arg1[%c112_186, %c0_187] : memref<264x128xf32, #tpu.memory_space<vmem>>, vector<1x128xf32>
    %408 = vector.broadcast %407 : vector<1x128xf32> to vector<2x128xf32>
    %409 = arith.addf %406, %408 : vector<2x128xf32>
    %c80_188 = arith.constant 80 : index
    %c0_189 = arith.constant 0 : index
    %410 = vector.load %arg1[%c80_188, %c0_189] : memref<264x128xf32, #tpu.memory_space<vmem>>, vector<32x128xf32>
    %cst_190 = arith.constant dense<0.000000e+00> : vector<2x128xf32>
    %411 = tpu.matmul %398, %410, %cst_190 {dimension_numbers = #tpu.dot_dimension_numbers<[1], [0], [0], [1], [0, 0, 1, 1], [], []>} : vector<2x32xf32>, vector<32x128xf32>, vector<2x128xf32> -> vector<2x128xf32>
    %412 = arith.addf %409, %411 : vector<2x128xf32>
    %413 = arith.negf %412 : vector<2x128xf32>
    %414 = math.exp %413 : vector<2x128xf32>
    %cst_191 = arith.constant 1.000000e+00 : f32
    %415 = vector.broadcast %cst_191 : f32 to vector<2x128xf32>
    %416 = arith.addf %415, %414 : vector<2x128xf32>
    %417 = arith.divf %415, %416 : vector<2x128xf32>
    %418 = math.tanh %412 : vector<2x128xf32>
    %419 = vector.extract_strided_slice %417 {offsets = [0, 0], sizes = [2, 32], strides = [1, 1]} : vector<2x128xf32> to vector<2x32xf32>
    %420 = vector.extract_strided_slice %417 {offsets = [0, 32], sizes = [2, 32], strides = [1, 1]} : vector<2x128xf32> to vector<2x32xf32>
    %421 = vector.extract_strided_slice %418 {offsets = [0, 64], sizes = [2, 32], strides = [1, 1]} : vector<2x128xf32> to vector<2x32xf32>
    %422 = vector.extract_strided_slice %417 {offsets = [0, 96], sizes = [2, 32], strides = [1, 1]} : vector<2x128xf32> to vector<2x32xf32>
    %423 = arith.mulf %420, %396 : vector<2x32xf32>
    %424 = arith.mulf %419, %421 : vector<2x32xf32>
    %425 = arith.addf %423, %424 : vector<2x32xf32>
    %426 = math.tanh %425 : vector<2x32xf32>
    %427 = arith.mulf %422, %426 : vector<2x32xf32>
    %c7_192 = arith.constant 7 : index
    %c0_193 = arith.constant 0 : index
    %c0_194 = arith.constant 0 : index
    %428 = vector.load %arg4[%c7_192, %c0_193, %c0_194] : memref<8x2x32xf32, #tpu.memory_space<vmem>>, vector<1x2x32xf32>
    %429 = vector.shape_cast %428 : vector<1x2x32xf32> to vector<2x32xf32>
    %430 = vector.shape_cast %427 : vector<2x32xf32> to vector<1x2x32xf32>
    tpu.vector_store %arg4[%c7_192, %c0_193, %c0_194], %430 {strides = array<i32>} : memref<8x2x32xf32, #tpu.memory_space<vmem>>, vector<1x2x32xf32>,
    %c224 = arith.constant 224 : index
    %c0_195 = arith.constant 0 : index
    %431 = vector.load %arg2[%c224, %c0_195] : memref<328x32xf32, #tpu.memory_space<vmem>>, vector<32x32xf32>
    %cst_196 = arith.constant dense<0.000000e+00> : vector<2x32xf32>
    %432 = tpu.matmul %427, %431, %cst_196 {dimension_numbers = #tpu.dot_dimension_numbers<[1], [0], [0], [1], [0, 0, 1, 1], [], []>} : vector<2x32xf32>, vector<32x32xf32>, vector<2x32xf32> -> vector<2x32xf32>
    %433 = arith.addf %404, %432 : vector<2x32xf32>
    %c256 = arith.constant 256 : index
    %c0_197 = arith.constant 0 : index
    %434 = vector.load %arg2[%c256, %c0_197] : memref<328x32xf32, #tpu.memory_space<vmem>>, vector<32x32xf32>
    %cst_198 = arith.constant dense<0.000000e+00> : vector<2x32xf32>
    %435 = tpu.matmul %433, %434, %cst_198 {dimension_numbers = #tpu.dot_dimension_numbers<[1], [0], [0], [1], [0, 0, 1, 1], [], []>} : vector<2x32xf32>, vector<32x32xf32>, vector<2x32xf32> -> vector<2x32xf32>
    %436 = vector.extract_strided_slice %435 {offsets = [0, 0], sizes = [2, 8], strides = [1, 1]} : vector<2x32xf32> to vector<2x8xf32>
    %cst_199 = arith.constant dense<0xFF800000> : vector<2xf32>
    %437 = vector.multi_reduction <maximumf>, %436, %cst_199 [1] : vector<2x8xf32> to vector<2xf32>
    %438 = vector.shape_cast %437 : vector<2xf32> to vector<2x1xf32>
    %439 = vector.broadcast %438 : vector<2x1xf32> to vector<2x8xf32>
    %440 = arith.subf %436, %439 : vector<2x8xf32>
    %441 = math.exp %440 : vector<2x8xf32>
    %cst_200 = arith.constant dense<0.000000e+00> : vector<2xf32>
    %442 = vector.multi_reduction <add>, %441, %cst_200 [1] : vector<2x8xf32> to vector<2xf32>
    %443 = vector.shape_cast %442 : vector<2xf32> to vector<2x1xf32>
    %444 = vector.broadcast %443 : vector<2x1xf32> to vector<2x8xf32>
    %445 = arith.divf %441, %444 : vector<2x8xf32>
    %446 = vector.extract_strided_slice %445 {offsets = [0, 0], sizes = [2, 1], strides = [1, 1]} : vector<2x8xf32> to vector<2x1xf32>
    %c0_201 = arith.constant 0 : index
    %c0_202 = arith.constant 0 : index
    %c0_203 = arith.constant 0 : index
    %447 = vector.load %arg4[%c0_201, %c0_202, %c0_203] : memref<8x2x32xf32, #tpu.memory_space<vmem>>, vector<1x2x32xf32>
    %448 = vector.shape_cast %447 : vector<1x2x32xf32> to vector<2x32xf32>
    %449 = vector.broadcast %446 : vector<2x1xf32> to vector<2x32xf32>
    %450 = arith.mulf %449, %448 : vector<2x32xf32>
    %451 = arith.addf %0, %450 : vector<2x32xf32>
    %452 = vector.extract_strided_slice %445 {offsets = [0, 1], sizes = [2, 1], strides = [1, 1]} : vector<2x8xf32> to vector<2x1xf32>
    %c1_204 = arith.constant 1 : index
    %c0_205 = arith.constant 0 : index
    %c0_206 = arith.constant 0 : index
    %453 = vector.load %arg4[%c1_204, %c0_205, %c0_206] : memref<8x2x32xf32, #tpu.memory_space<vmem>>, vector<1x2x32xf32>
    %454 = vector.shape_cast %453 : vector<1x2x32xf32> to vector<2x32xf32>
    %455 = vector.broadcast %452 : vector<2x1xf32> to vector<2x32xf32>
    %456 = arith.mulf %455, %454 : vector<2x32xf32>
    %457 = arith.addf %451, %456 : vector<2x32xf32>
    %458 = vector.extract_strided_slice %445 {offsets = [0, 2], sizes = [2, 1], strides = [1, 1]} : vector<2x8xf32> to vector<2x1xf32>
    %c2_207 = arith.constant 2 : index
    %c0_208 = arith.constant 0 : index
    %c0_209 = arith.constant 0 : index
    %459 = vector.load %arg4[%c2_207, %c0_208, %c0_209] : memref<8x2x32xf32, #tpu.memory_space<vmem>>, vector<1x2x32xf32>
    %460 = vector.shape_cast %459 : vector<1x2x32xf32> to vector<2x32xf32>
    %461 = vector.broadcast %458 : vector<2x1xf32> to vector<2x32xf32>
    %462 = arith.mulf %461, %460 : vector<2x32xf32>
    %463 = arith.addf %457, %462 : vector<2x32xf32>
    %464 = vector.extract_strided_slice %445 {offsets = [0, 3], sizes = [2, 1], strides = [1, 1]} : vector<2x8xf32> to vector<2x1xf32>
    %c3_210 = arith.constant 3 : index
    %c0_211 = arith.constant 0 : index
    %c0_212 = arith.constant 0 : index
    %465 = vector.load %arg4[%c3_210, %c0_211, %c0_212] : memref<8x2x32xf32, #tpu.memory_space<vmem>>, vector<1x2x32xf32>
    %466 = vector.shape_cast %465 : vector<1x2x32xf32> to vector<2x32xf32>
    %467 = vector.broadcast %464 : vector<2x1xf32> to vector<2x32xf32>
    %468 = arith.mulf %467, %466 : vector<2x32xf32>
    %469 = arith.addf %463, %468 : vector<2x32xf32>
    %470 = vector.extract_strided_slice %445 {offsets = [0, 4], sizes = [2, 1], strides = [1, 1]} : vector<2x8xf32> to vector<2x1xf32>
    %c4_213 = arith.constant 4 : index
    %c0_214 = arith.constant 0 : index
    %c0_215 = arith.constant 0 : index
    %471 = vector.load %arg4[%c4_213, %c0_214, %c0_215] : memref<8x2x32xf32, #tpu.memory_space<vmem>>, vector<1x2x32xf32>
    %472 = vector.shape_cast %471 : vector<1x2x32xf32> to vector<2x32xf32>
    %473 = vector.broadcast %470 : vector<2x1xf32> to vector<2x32xf32>
    %474 = arith.mulf %473, %472 : vector<2x32xf32>
    %475 = arith.addf %469, %474 : vector<2x32xf32>
    %476 = vector.extract_strided_slice %445 {offsets = [0, 5], sizes = [2, 1], strides = [1, 1]} : vector<2x8xf32> to vector<2x1xf32>
    %c5_216 = arith.constant 5 : index
    %c0_217 = arith.constant 0 : index
    %c0_218 = arith.constant 0 : index
    %477 = vector.load %arg4[%c5_216, %c0_217, %c0_218] : memref<8x2x32xf32, #tpu.memory_space<vmem>>, vector<1x2x32xf32>
    %478 = vector.shape_cast %477 : vector<1x2x32xf32> to vector<2x32xf32>
    %479 = vector.broadcast %476 : vector<2x1xf32> to vector<2x32xf32>
    %480 = arith.mulf %479, %478 : vector<2x32xf32>
    %481 = arith.addf %475, %480 : vector<2x32xf32>
    %482 = vector.extract_strided_slice %445 {offsets = [0, 6], sizes = [2, 1], strides = [1, 1]} : vector<2x8xf32> to vector<2x1xf32>
    %c6_219 = arith.constant 6 : index
    %c0_220 = arith.constant 0 : index
    %c0_221 = arith.constant 0 : index
    %483 = vector.load %arg4[%c6_219, %c0_220, %c0_221] : memref<8x2x32xf32, #tpu.memory_space<vmem>>, vector<1x2x32xf32>
    %484 = vector.shape_cast %483 : vector<1x2x32xf32> to vector<2x32xf32>
    %485 = vector.broadcast %482 : vector<2x1xf32> to vector<2x32xf32>
    %486 = arith.mulf %485, %484 : vector<2x32xf32>
    %487 = arith.addf %481, %486 : vector<2x32xf32>
    %488 = vector.extract_strided_slice %445 {offsets = [0, 7], sizes = [2, 1], strides = [1, 1]} : vector<2x8xf32> to vector<2x1xf32>
    %c7_222 = arith.constant 7 : index
    %c0_223 = arith.constant 0 : index
    %c0_224 = arith.constant 0 : index
    %489 = vector.load %arg4[%c7_222, %c0_223, %c0_224] : memref<8x2x32xf32, #tpu.memory_space<vmem>>, vector<1x2x32xf32>
    %490 = vector.shape_cast %489 : vector<1x2x32xf32> to vector<2x32xf32>
    %491 = vector.broadcast %488 : vector<2x1xf32> to vector<2x32xf32>
    %492 = arith.mulf %491, %490 : vector<2x32xf32>
    %493 = arith.addf %487, %492 : vector<2x32xf32>
    %c120 = arith.constant 120 : index
    %c0_225 = arith.constant 0 : index
    %494 = vector.load %arg1[%c120, %c0_225] : memref<264x128xf32, #tpu.memory_space<vmem>>, vector<32x128xf32>
    %cst_226 = arith.constant dense<0.000000e+00> : vector<2x128xf32>
    %495 = tpu.matmul %493, %494, %cst_226 {dimension_numbers = #tpu.dot_dimension_numbers<[1], [0], [0], [1], [0, 0, 1, 1], [], []>} : vector<2x32xf32>, vector<32x128xf32>, vector<2x128xf32> -> vector<2x128xf32>
    %c184 = arith.constant 184 : index
    %c0_227 = arith.constant 0 : index
    %496 = vector.load %arg1[%c184, %c0_227] : memref<264x128xf32, #tpu.memory_space<vmem>>, vector<1x128xf32>
    %497 = vector.broadcast %496 : vector<1x128xf32> to vector<2x128xf32>
    %498 = arith.addf %495, %497 : vector<2x128xf32>
    %c152 = arith.constant 152 : index
    %c0_228 = arith.constant 0 : index
    %499 = vector.load %arg1[%c152, %c0_228] : memref<264x128xf32, #tpu.memory_space<vmem>>, vector<32x128xf32>
    %cst_229 = arith.constant dense<0.000000e+00> : vector<2x128xf32>
    %500 = tpu.matmul %0, %499, %cst_229 {dimension_numbers = #tpu.dot_dimension_numbers<[1], [0], [0], [1], [0, 0, 1, 1], [], []>} : vector<2x32xf32>, vector<32x128xf32>, vector<2x128xf32> -> vector<2x128xf32>
    %501 = arith.addf %498, %500 : vector<2x128xf32>
    %502 = arith.negf %501 : vector<2x128xf32>
    %503 = math.exp %502 : vector<2x128xf32>
    %cst_230 = arith.constant 1.000000e+00 : f32
    %504 = vector.broadcast %cst_230 : f32 to vector<2x128xf32>
    %505 = arith.addf %504, %503 : vector<2x128xf32>
    %506 = arith.divf %504, %505 : vector<2x128xf32>
    %507 = math.tanh %501 : vector<2x128xf32>
    %508 = vector.extract_strided_slice %506 {offsets = [0, 0], sizes = [2, 32], strides = [1, 1]} : vector<2x128xf32> to vector<2x32xf32>
    %509 = vector.extract_strided_slice %506 {offsets = [0, 32], sizes = [2, 32], strides = [1, 1]} : vector<2x128xf32> to vector<2x32xf32>
    %510 = vector.extract_strided_slice %507 {offsets = [0, 64], sizes = [2, 32], strides = [1, 1]} : vector<2x128xf32> to vector<2x32xf32>
    %511 = vector.extract_strided_slice %506 {offsets = [0, 96], sizes = [2, 32], strides = [1, 1]} : vector<2x128xf32> to vector<2x32xf32>
    %512 = arith.mulf %509, %0 : vector<2x32xf32>
    %513 = arith.mulf %508, %510 : vector<2x32xf32>
    %514 = arith.addf %512, %513 : vector<2x32xf32>
    %515 = math.tanh %514 : vector<2x32xf32>
    %516 = arith.mulf %511, %515 : vector<2x32xf32>
    %c0_231 = arith.constant 0 : index
    %c0_232 = arith.constant 0 : index
    %c0_233 = arith.constant 0 : index
    %517 = vector.load %arg4[%c0_231, %c0_232, %c0_233] : memref<8x2x32xf32, #tpu.memory_space<vmem>>, vector<1x2x32xf32>
    %518 = vector.shape_cast %517 : vector<1x2x32xf32> to vector<2x32xf32>
    %c120_234 = arith.constant 120 : index
    %c0_235 = arith.constant 0 : index
    %519 = vector.load %arg1[%c120_234, %c0_235] : memref<264x128xf32, #tpu.memory_space<vmem>>, vector<32x128xf32>
    %cst_236 = arith.constant dense<0.000000e+00> : vector<2x128xf32>
    %520 = tpu.matmul %518, %519, %cst_236 {dimension_numbers = #tpu.dot_dimension_numbers<[1], [0], [0], [1], [0, 0, 1, 1], [], []>} : vector<2x32xf32>, vector<32x128xf32>, vector<2x128xf32> -> vector<2x128xf32>
    %c184_237 = arith.constant 184 : index
    %c0_238 = arith.constant 0 : index
    %521 = vector.load %arg1[%c184_237, %c0_238] : memref<264x128xf32, #tpu.memory_space<vmem>>, vector<1x128xf32>
    %522 = vector.broadcast %521 : vector<1x128xf32> to vector<2x128xf32>
    %523 = arith.addf %520, %522 : vector<2x128xf32>
    %c152_239 = arith.constant 152 : index
    %c0_240 = arith.constant 0 : index
    %524 = vector.load %arg1[%c152_239, %c0_240] : memref<264x128xf32, #tpu.memory_space<vmem>>, vector<32x128xf32>
    %cst_241 = arith.constant dense<0.000000e+00> : vector<2x128xf32>
    %525 = tpu.matmul %516, %524, %cst_241 {dimension_numbers = #tpu.dot_dimension_numbers<[1], [0], [0], [1], [0, 0, 1, 1], [], []>} : vector<2x32xf32>, vector<32x128xf32>, vector<2x128xf32> -> vector<2x128xf32>
    %526 = arith.addf %523, %525 : vector<2x128xf32>
    %527 = arith.negf %526 : vector<2x128xf32>
    %528 = math.exp %527 : vector<2x128xf32>
    %cst_242 = arith.constant 1.000000e+00 : f32
    %529 = vector.broadcast %cst_242 : f32 to vector<2x128xf32>
    %530 = arith.addf %529, %528 : vector<2x128xf32>
    %531 = arith.divf %529, %530 : vector<2x128xf32>
    %532 = math.tanh %526 : vector<2x128xf32>
    %533 = vector.extract_strided_slice %531 {offsets = [0, 0], sizes = [2, 32], strides = [1, 1]} : vector<2x128xf32> to vector<2x32xf32>
    %534 = vector.extract_strided_slice %531 {offsets = [0, 32], sizes = [2, 32], strides = [1, 1]} : vector<2x128xf32> to vector<2x32xf32>
    %535 = vector.extract_strided_slice %532 {offsets = [0, 64], sizes = [2, 32], strides = [1, 1]} : vector<2x128xf32> to vector<2x32xf32>
    %536 = vector.extract_strided_slice %531 {offsets = [0, 96], sizes = [2, 32], strides = [1, 1]} : vector<2x128xf32> to vector<2x32xf32>
    %537 = arith.mulf %534, %514 : vector<2x32xf32>
    %538 = arith.mulf %533, %535 : vector<2x32xf32>
    %539 = arith.addf %537, %538 : vector<2x32xf32>
    %540 = math.tanh %539 : vector<2x32xf32>
    %541 = arith.mulf %536, %540 : vector<2x32xf32>
    %c192_243 = arith.constant 192 : index
    %c0_244 = arith.constant 0 : index
    %542 = vector.load %arg1[%c192_243, %c0_244] : memref<264x128xf32, #tpu.memory_space<vmem>>, vector<32x128xf32>
    %cst_245 = arith.constant dense<0.000000e+00> : vector<2x128xf32>
    %543 = tpu.matmul %516, %542, %cst_245 {dimension_numbers = #tpu.dot_dimension_numbers<[1], [0], [0], [1], [0, 0, 1, 1], [], []>} : vector<2x32xf32>, vector<32x128xf32>, vector<2x128xf32> -> vector<2x128xf32>
    %c256_246 = arith.constant 256 : index
    %c0_247 = arith.constant 0 : index
    %544 = vector.load %arg1[%c256_246, %c0_247] : memref<264x128xf32, #tpu.memory_space<vmem>>, vector<1x128xf32>
    %545 = vector.broadcast %544 : vector<1x128xf32> to vector<2x128xf32>
    %546 = arith.addf %543, %545 : vector<2x128xf32>
    %c224_248 = arith.constant 224 : index
    %c0_249 = arith.constant 0 : index
    %547 = vector.load %arg1[%c224_248, %c0_249] : memref<264x128xf32, #tpu.memory_space<vmem>>, vector<32x128xf32>
    %cst_250 = arith.constant dense<0.000000e+00> : vector<2x128xf32>
    %548 = tpu.matmul %0, %547, %cst_250 {dimension_numbers = #tpu.dot_dimension_numbers<[1], [0], [0], [1], [0, 0, 1, 1], [], []>} : vector<2x32xf32>, vector<32x128xf32>, vector<2x128xf32> -> vector<2x128xf32>
    %549 = arith.addf %546, %548 : vector<2x128xf32>
    %550 = arith.negf %549 : vector<2x128xf32>
    %551 = math.exp %550 : vector<2x128xf32>
    %cst_251 = arith.constant 1.000000e+00 : f32
    %552 = vector.broadcast %cst_251 : f32 to vector<2x128xf32>
    %553 = arith.addf %552, %551 : vector<2x128xf32>
    %554 = arith.divf %552, %553 : vector<2x128xf32>
    %555 = math.tanh %549 : vector<2x128xf32>
    %556 = vector.extract_strided_slice %554 {offsets = [0, 0], sizes = [2, 32], strides = [1, 1]} : vector<2x128xf32> to vector<2x32xf32>
    %557 = vector.extract_strided_slice %554 {offsets = [0, 32], sizes = [2, 32], strides = [1, 1]} : vector<2x128xf32> to vector<2x32xf32>
    %558 = vector.extract_strided_slice %555 {offsets = [0, 64], sizes = [2, 32], strides = [1, 1]} : vector<2x128xf32> to vector<2x32xf32>
    %559 = vector.extract_strided_slice %554 {offsets = [0, 96], sizes = [2, 32], strides = [1, 1]} : vector<2x128xf32> to vector<2x32xf32>
    %560 = arith.mulf %557, %0 : vector<2x32xf32>
    %561 = arith.mulf %556, %558 : vector<2x32xf32>
    %562 = arith.addf %560, %561 : vector<2x32xf32>
    %563 = math.tanh %562 : vector<2x32xf32>
    %564 = arith.mulf %559, %563 : vector<2x32xf32>
    %c1_252 = arith.constant 1 : index
    %c0_253 = arith.constant 0 : index
    %c0_254 = arith.constant 0 : index
    %565 = vector.load %arg4[%c1_252, %c0_253, %c0_254] : memref<8x2x32xf32, #tpu.memory_space<vmem>>, vector<1x2x32xf32>
    %566 = vector.shape_cast %565 : vector<1x2x32xf32> to vector<2x32xf32>
    %c120_255 = arith.constant 120 : index
    %c0_256 = arith.constant 0 : index
    %567 = vector.load %arg1[%c120_255, %c0_256] : memref<264x128xf32, #tpu.memory_space<vmem>>, vector<32x128xf32>
    %cst_257 = arith.constant dense<0.000000e+00> : vector<2x128xf32>
    %568 = tpu.matmul %566, %567, %cst_257 {dimension_numbers = #tpu.dot_dimension_numbers<[1], [0], [0], [1], [0, 0, 1, 1], [], []>} : vector<2x32xf32>, vector<32x128xf32>, vector<2x128xf32> -> vector<2x128xf32>
    %c184_258 = arith.constant 184 : index
    %c0_259 = arith.constant 0 : index
    %569 = vector.load %arg1[%c184_258, %c0_259] : memref<264x128xf32, #tpu.memory_space<vmem>>, vector<1x128xf32>
    %570 = vector.broadcast %569 : vector<1x128xf32> to vector<2x128xf32>
    %571 = arith.addf %568, %570 : vector<2x128xf32>
    %c152_260 = arith.constant 152 : index
    %c0_261 = arith.constant 0 : index
    %572 = vector.load %arg1[%c152_260, %c0_261] : memref<264x128xf32, #tpu.memory_space<vmem>>, vector<32x128xf32>
    %cst_262 = arith.constant dense<0.000000e+00> : vector<2x128xf32>
    %573 = tpu.matmul %541, %572, %cst_262 {dimension_numbers = #tpu.dot_dimension_numbers<[1], [0], [0], [1], [0, 0, 1, 1], [], []>} : vector<2x32xf32>, vector<32x128xf32>, vector<2x128xf32> -> vector<2x128xf32>
    %574 = arith.addf %571, %573 : vector<2x128xf32>
    %575 = arith.negf %574 : vector<2x128xf32>
    %576 = math.exp %575 : vector<2x128xf32>
    %cst_263 = arith.constant 1.000000e+00 : f32
    %577 = vector.broadcast %cst_263 : f32 to vector<2x128xf32>
    %578 = arith.addf %577, %576 : vector<2x128xf32>
    %579 = arith.divf %577, %578 : vector<2x128xf32>
    %580 = math.tanh %574 : vector<2x128xf32>
    %581 = vector.extract_strided_slice %579 {offsets = [0, 0], sizes = [2, 32], strides = [1, 1]} : vector<2x128xf32> to vector<2x32xf32>
    %582 = vector.extract_strided_slice %579 {offsets = [0, 32], sizes = [2, 32], strides = [1, 1]} : vector<2x128xf32> to vector<2x32xf32>
    %583 = vector.extract_strided_slice %580 {offsets = [0, 64], sizes = [2, 32], strides = [1, 1]} : vector<2x128xf32> to vector<2x32xf32>
    %584 = vector.extract_strided_slice %579 {offsets = [0, 96], sizes = [2, 32], strides = [1, 1]} : vector<2x128xf32> to vector<2x32xf32>
    %585 = arith.mulf %582, %539 : vector<2x32xf32>
    %586 = arith.mulf %581, %583 : vector<2x32xf32>
    %587 = arith.addf %585, %586 : vector<2x32xf32>
    %588 = math.tanh %587 : vector<2x32xf32>
    %589 = arith.mulf %584, %588 : vector<2x32xf32>
    %c192_264 = arith.constant 192 : index
    %c0_265 = arith.constant 0 : index
    %590 = vector.load %arg1[%c192_264, %c0_265] : memref<264x128xf32, #tpu.memory_space<vmem>>, vector<32x128xf32>
    %cst_266 = arith.constant dense<0.000000e+00> : vector<2x128xf32>
    %591 = tpu.matmul %541, %590, %cst_266 {dimension_numbers = #tpu.dot_dimension_numbers<[1], [0], [0], [1], [0, 0, 1, 1], [], []>} : vector<2x32xf32>, vector<32x128xf32>, vector<2x128xf32> -> vector<2x128xf32>
    %c256_267 = arith.constant 256 : index
    %c0_268 = arith.constant 0 : index
    %592 = vector.load %arg1[%c256_267, %c0_268] : memref<264x128xf32, #tpu.memory_space<vmem>>, vector<1x128xf32>
    %593 = vector.broadcast %592 : vector<1x128xf32> to vector<2x128xf32>
    %594 = arith.addf %591, %593 : vector<2x128xf32>
    %c224_269 = arith.constant 224 : index
    %c0_270 = arith.constant 0 : index
    %595 = vector.load %arg1[%c224_269, %c0_270] : memref<264x128xf32, #tpu.memory_space<vmem>>, vector<32x128xf32>
    %cst_271 = arith.constant dense<0.000000e+00> : vector<2x128xf32>
    %596 = tpu.matmul %564, %595, %cst_271 {dimension_numbers = #tpu.dot_dimension_numbers<[1], [0], [0], [1], [0, 0, 1, 1], [], []>} : vector<2x32xf32>, vector<32x128xf32>, vector<2x128xf32> -> vector<2x128xf32>
    %597 = arith.addf %594, %596 : vector<2x128xf32>
    %598 = arith.negf %597 : vector<2x128xf32>
    %599 = math.exp %598 : vector<2x128xf32>
    %cst_272 = arith.constant 1.000000e+00 : f32
    %600 = vector.broadcast %cst_272 : f32 to vector<2x128xf32>
    %601 = arith.addf %600, %599 : vector<2x128xf32>
    %602 = arith.divf %600, %601 : vector<2x128xf32>
    %603 = math.tanh %597 : vector<2x128xf32>
    %604 = vector.extract_strided_slice %602 {offsets = [0, 0], sizes = [2, 32], strides = [1, 1]} : vector<2x128xf32> to vector<2x32xf32>
    %605 = vector.extract_strided_slice %602 {offsets = [0, 32], sizes = [2, 32], strides = [1, 1]} : vector<2x128xf32> to vector<2x32xf32>
    %606 = vector.extract_strided_slice %603 {offsets = [0, 64], sizes = [2, 32], strides = [1, 1]} : vector<2x128xf32> to vector<2x32xf32>
    %607 = vector.extract_strided_slice %602 {offsets = [0, 96], sizes = [2, 32], strides = [1, 1]} : vector<2x128xf32> to vector<2x32xf32>
    %608 = arith.mulf %605, %562 : vector<2x32xf32>
    %609 = arith.mulf %604, %606 : vector<2x32xf32>
    %610 = arith.addf %608, %609 : vector<2x32xf32>
    %611 = math.tanh %610 : vector<2x32xf32>
    %612 = arith.mulf %607, %611 : vector<2x32xf32>
    %c2_273 = arith.constant 2 : index
    %c0_274 = arith.constant 0 : index
    %c0_275 = arith.constant 0 : index
    %613 = vector.load %arg4[%c2_273, %c0_274, %c0_275] : memref<8x2x32xf32, #tpu.memory_space<vmem>>, vector<1x2x32xf32>
    %614 = vector.shape_cast %613 : vector<1x2x32xf32> to vector<2x32xf32>
    %c120_276 = arith.constant 120 : index
    %c0_277 = arith.constant 0 : index
    %615 = vector.load %arg1[%c120_276, %c0_277] : memref<264x128xf32, #tpu.memory_space<vmem>>, vector<32x128xf32>
    %cst_278 = arith.constant dense<0.000000e+00> : vector<2x128xf32>
    %616 = tpu.matmul %614, %615, %cst_278 {dimension_numbers = #tpu.dot_dimension_numbers<[1], [0], [0], [1], [0, 0, 1, 1], [], []>} : vector<2x32xf32>, vector<32x128xf32>, vector<2x128xf32> -> vector<2x128xf32>
    %c184_279 = arith.constant 184 : index
    %c0_280 = arith.constant 0 : index
    %617 = vector.load %arg1[%c184_279, %c0_280] : memref<264x128xf32, #tpu.memory_space<vmem>>, vector<1x128xf32>
    %618 = vector.broadcast %617 : vector<1x128xf32> to vector<2x128xf32>
    %619 = arith.addf %616, %618 : vector<2x128xf32>
    %c152_281 = arith.constant 152 : index
    %c0_282 = arith.constant 0 : index
    %620 = vector.load %arg1[%c152_281, %c0_282] : memref<264x128xf32, #tpu.memory_space<vmem>>, vector<32x128xf32>
    %cst_283 = arith.constant dense<0.000000e+00> : vector<2x128xf32>
    %621 = tpu.matmul %589, %620, %cst_283 {dimension_numbers = #tpu.dot_dimension_numbers<[1], [0], [0], [1], [0, 0, 1, 1], [], []>} : vector<2x32xf32>, vector<32x128xf32>, vector<2x128xf32> -> vector<2x128xf32>
    %622 = arith.addf %619, %621 : vector<2x128xf32>
    %623 = arith.negf %622 : vector<2x128xf32>
    %624 = math.exp %623 : vector<2x128xf32>
    %cst_284 = arith.constant 1.000000e+00 : f32
    %625 = vector.broadcast %cst_284 : f32 to vector<2x128xf32>
    %626 = arith.addf %625, %624 : vector<2x128xf32>
    %627 = arith.divf %625, %626 : vector<2x128xf32>
    %628 = math.tanh %622 : vector<2x128xf32>
    %629 = vector.extract_strided_slice %627 {offsets = [0, 0], sizes = [2, 32], strides = [1, 1]} : vector<2x128xf32> to vector<2x32xf32>
    %630 = vector.extract_strided_slice %627 {offsets = [0, 32], sizes = [2, 32], strides = [1, 1]} : vector<2x128xf32> to vector<2x32xf32>
    %631 = vector.extract_strided_slice %628 {offsets = [0, 64], sizes = [2, 32], strides = [1, 1]} : vector<2x128xf32> to vector<2x32xf32>
    %632 = vector.extract_strided_slice %627 {offsets = [0, 96], sizes = [2, 32], strides = [1, 1]} : vector<2x128xf32> to vector<2x32xf32>
    %633 = arith.mulf %630, %587 : vector<2x32xf32>
    %634 = arith.mulf %629, %631 : vector<2x32xf32>
    %635 = arith.addf %633, %634 : vector<2x32xf32>
    %636 = math.tanh %635 : vector<2x32xf32>
    %637 = arith.mulf %632, %636 : vector<2x32xf32>
    %c192_285 = arith.constant 192 : index
    %c0_286 = arith.constant 0 : index
    %638 = vector.load %arg1[%c192_285, %c0_286] : memref<264x128xf32, #tpu.memory_space<vmem>>, vector<32x128xf32>
    %cst_287 = arith.constant dense<0.000000e+00> : vector<2x128xf32>
    %639 = tpu.matmul %589, %638, %cst_287 {dimension_numbers = #tpu.dot_dimension_numbers<[1], [0], [0], [1], [0, 0, 1, 1], [], []>} : vector<2x32xf32>, vector<32x128xf32>, vector<2x128xf32> -> vector<2x128xf32>
    %c256_288 = arith.constant 256 : index
    %c0_289 = arith.constant 0 : index
    %640 = vector.load %arg1[%c256_288, %c0_289] : memref<264x128xf32, #tpu.memory_space<vmem>>, vector<1x128xf32>
    %641 = vector.broadcast %640 : vector<1x128xf32> to vector<2x128xf32>
    %642 = arith.addf %639, %641 : vector<2x128xf32>
    %c224_290 = arith.constant 224 : index
    %c0_291 = arith.constant 0 : index
    %643 = vector.load %arg1[%c224_290, %c0_291] : memref<264x128xf32, #tpu.memory_space<vmem>>, vector<32x128xf32>
    %cst_292 = arith.constant dense<0.000000e+00> : vector<2x128xf32>
    %644 = tpu.matmul %612, %643, %cst_292 {dimension_numbers = #tpu.dot_dimension_numbers<[1], [0], [0], [1], [0, 0, 1, 1], [], []>} : vector<2x32xf32>, vector<32x128xf32>, vector<2x128xf32> -> vector<2x128xf32>
    %645 = arith.addf %642, %644 : vector<2x128xf32>
    %646 = arith.negf %645 : vector<2x128xf32>
    %647 = math.exp %646 : vector<2x128xf32>
    %cst_293 = arith.constant 1.000000e+00 : f32
    %648 = vector.broadcast %cst_293 : f32 to vector<2x128xf32>
    %649 = arith.addf %648, %647 : vector<2x128xf32>
    %650 = arith.divf %648, %649 : vector<2x128xf32>
    %651 = math.tanh %645 : vector<2x128xf32>
    %652 = vector.extract_strided_slice %650 {offsets = [0, 0], sizes = [2, 32], strides = [1, 1]} : vector<2x128xf32> to vector<2x32xf32>
    %653 = vector.extract_strided_slice %650 {offsets = [0, 32], sizes = [2, 32], strides = [1, 1]} : vector<2x128xf32> to vector<2x32xf32>
    %654 = vector.extract_strided_slice %651 {offsets = [0, 64], sizes = [2, 32], strides = [1, 1]} : vector<2x128xf32> to vector<2x32xf32>
    %655 = vector.extract_strided_slice %650 {offsets = [0, 96], sizes = [2, 32], strides = [1, 1]} : vector<2x128xf32> to vector<2x32xf32>
    %656 = arith.mulf %653, %610 : vector<2x32xf32>
    %657 = arith.mulf %652, %654 : vector<2x32xf32>
    %658 = arith.addf %656, %657 : vector<2x32xf32>
    %659 = math.tanh %658 : vector<2x32xf32>
    %660 = arith.mulf %655, %659 : vector<2x32xf32>
    %c3_294 = arith.constant 3 : index
    %c0_295 = arith.constant 0 : index
    %c0_296 = arith.constant 0 : index
    %661 = vector.load %arg4[%c3_294, %c0_295, %c0_296] : memref<8x2x32xf32, #tpu.memory_space<vmem>>, vector<1x2x32xf32>
    %662 = vector.shape_cast %661 : vector<1x2x32xf32> to vector<2x32xf32>
    %c120_297 = arith.constant 120 : index
    %c0_298 = arith.constant 0 : index
    %663 = vector.load %arg1[%c120_297, %c0_298] : memref<264x128xf32, #tpu.memory_space<vmem>>, vector<32x128xf32>
    %cst_299 = arith.constant dense<0.000000e+00> : vector<2x128xf32>
    %664 = tpu.matmul %662, %663, %cst_299 {dimension_numbers = #tpu.dot_dimension_numbers<[1], [0], [0], [1], [0, 0, 1, 1], [], []>} : vector<2x32xf32>, vector<32x128xf32>, vector<2x128xf32> -> vector<2x128xf32>
    %c184_300 = arith.constant 184 : index
    %c0_301 = arith.constant 0 : index
    %665 = vector.load %arg1[%c184_300, %c0_301] : memref<264x128xf32, #tpu.memory_space<vmem>>, vector<1x128xf32>
    %666 = vector.broadcast %665 : vector<1x128xf32> to vector<2x128xf32>
    %667 = arith.addf %664, %666 : vector<2x128xf32>
    %c152_302 = arith.constant 152 : index
    %c0_303 = arith.constant 0 : index
    %668 = vector.load %arg1[%c152_302, %c0_303] : memref<264x128xf32, #tpu.memory_space<vmem>>, vector<32x128xf32>
    %cst_304 = arith.constant dense<0.000000e+00> : vector<2x128xf32>
    %669 = tpu.matmul %637, %668, %cst_304 {dimension_numbers = #tpu.dot_dimension_numbers<[1], [0], [0], [1], [0, 0, 1, 1], [], []>} : vector<2x32xf32>, vector<32x128xf32>, vector<2x128xf32> -> vector<2x128xf32>
    %670 = arith.addf %667, %669 : vector<2x128xf32>
    %671 = arith.negf %670 : vector<2x128xf32>
    %672 = math.exp %671 : vector<2x128xf32>
    %cst_305 = arith.constant 1.000000e+00 : f32
    %673 = vector.broadcast %cst_305 : f32 to vector<2x128xf32>
    %674 = arith.addf %673, %672 : vector<2x128xf32>
    %675 = arith.divf %673, %674 : vector<2x128xf32>
    %676 = math.tanh %670 : vector<2x128xf32>
    %677 = vector.extract_strided_slice %675 {offsets = [0, 0], sizes = [2, 32], strides = [1, 1]} : vector<2x128xf32> to vector<2x32xf32>
    %678 = vector.extract_strided_slice %675 {offsets = [0, 32], sizes = [2, 32], strides = [1, 1]} : vector<2x128xf32> to vector<2x32xf32>
    %679 = vector.extract_strided_slice %676 {offsets = [0, 64], sizes = [2, 32], strides = [1, 1]} : vector<2x128xf32> to vector<2x32xf32>
    %680 = vector.extract_strided_slice %675 {offsets = [0, 96], sizes = [2, 32], strides = [1, 1]} : vector<2x128xf32> to vector<2x32xf32>
    %681 = arith.mulf %678, %635 : vector<2x32xf32>
    %682 = arith.mulf %677, %679 : vector<2x32xf32>
    %683 = arith.addf %681, %682 : vector<2x32xf32>
    %684 = math.tanh %683 : vector<2x32xf32>
    %685 = arith.mulf %680, %684 : vector<2x32xf32>
    %c192_306 = arith.constant 192 : index
    %c0_307 = arith.constant 0 : index
    %686 = vector.load %arg1[%c192_306, %c0_307] : memref<264x128xf32, #tpu.memory_space<vmem>>, vector<32x128xf32>
    %cst_308 = arith.constant dense<0.000000e+00> : vector<2x128xf32>
    %687 = tpu.matmul %637, %686, %cst_308 {dimension_numbers = #tpu.dot_dimension_numbers<[1], [0], [0], [1], [0, 0, 1, 1], [], []>} : vector<2x32xf32>, vector<32x128xf32>, vector<2x128xf32> -> vector<2x128xf32>
    %c256_309 = arith.constant 256 : index
    %c0_310 = arith.constant 0 : index
    %688 = vector.load %arg1[%c256_309, %c0_310] : memref<264x128xf32, #tpu.memory_space<vmem>>, vector<1x128xf32>
    %689 = vector.broadcast %688 : vector<1x128xf32> to vector<2x128xf32>
    %690 = arith.addf %687, %689 : vector<2x128xf32>
    %c224_311 = arith.constant 224 : index
    %c0_312 = arith.constant 0 : index
    %691 = vector.load %arg1[%c224_311, %c0_312] : memref<264x128xf32, #tpu.memory_space<vmem>>, vector<32x128xf32>
    %cst_313 = arith.constant dense<0.000000e+00> : vector<2x128xf32>
    %692 = tpu.matmul %660, %691, %cst_313 {dimension_numbers = #tpu.dot_dimension_numbers<[1], [0], [0], [1], [0, 0, 1, 1], [], []>} : vector<2x32xf32>, vector<32x128xf32>, vector<2x128xf32> -> vector<2x128xf32>
    %693 = arith.addf %690, %692 : vector<2x128xf32>
    %694 = arith.negf %693 : vector<2x128xf32>
    %695 = math.exp %694 : vector<2x128xf32>
    %cst_314 = arith.constant 1.000000e+00 : f32
    %696 = vector.broadcast %cst_314 : f32 to vector<2x128xf32>
    %697 = arith.addf %696, %695 : vector<2x128xf32>
    %698 = arith.divf %696, %697 : vector<2x128xf32>
    %699 = math.tanh %693 : vector<2x128xf32>
    %700 = vector.extract_strided_slice %698 {offsets = [0, 0], sizes = [2, 32], strides = [1, 1]} : vector<2x128xf32> to vector<2x32xf32>
    %701 = vector.extract_strided_slice %698 {offsets = [0, 32], sizes = [2, 32], strides = [1, 1]} : vector<2x128xf32> to vector<2x32xf32>
    %702 = vector.extract_strided_slice %699 {offsets = [0, 64], sizes = [2, 32], strides = [1, 1]} : vector<2x128xf32> to vector<2x32xf32>
    %703 = vector.extract_strided_slice %698 {offsets = [0, 96], sizes = [2, 32], strides = [1, 1]} : vector<2x128xf32> to vector<2x32xf32>
    %704 = arith.mulf %701, %658 : vector<2x32xf32>
    %705 = arith.mulf %700, %702 : vector<2x32xf32>
    %706 = arith.addf %704, %705 : vector<2x32xf32>
    %707 = math.tanh %706 : vector<2x32xf32>
    %708 = arith.mulf %703, %707 : vector<2x32xf32>
    %c4_315 = arith.constant 4 : index
    %c0_316 = arith.constant 0 : index
    %c0_317 = arith.constant 0 : index
    %709 = vector.load %arg4[%c4_315, %c0_316, %c0_317] : memref<8x2x32xf32, #tpu.memory_space<vmem>>, vector<1x2x32xf32>
    %710 = vector.shape_cast %709 : vector<1x2x32xf32> to vector<2x32xf32>
    %c120_318 = arith.constant 120 : index
    %c0_319 = arith.constant 0 : index
    %711 = vector.load %arg1[%c120_318, %c0_319] : memref<264x128xf32, #tpu.memory_space<vmem>>, vector<32x128xf32>
    %cst_320 = arith.constant dense<0.000000e+00> : vector<2x128xf32>
    %712 = tpu.matmul %710, %711, %cst_320 {dimension_numbers = #tpu.dot_dimension_numbers<[1], [0], [0], [1], [0, 0, 1, 1], [], []>} : vector<2x32xf32>, vector<32x128xf32>, vector<2x128xf32> -> vector<2x128xf32>
    %c184_321 = arith.constant 184 : index
    %c0_322 = arith.constant 0 : index
    %713 = vector.load %arg1[%c184_321, %c0_322] : memref<264x128xf32, #tpu.memory_space<vmem>>, vector<1x128xf32>
    %714 = vector.broadcast %713 : vector<1x128xf32> to vector<2x128xf32>
    %715 = arith.addf %712, %714 : vector<2x128xf32>
    %c152_323 = arith.constant 152 : index
    %c0_324 = arith.constant 0 : index
    %716 = vector.load %arg1[%c152_323, %c0_324] : memref<264x128xf32, #tpu.memory_space<vmem>>, vector<32x128xf32>
    %cst_325 = arith.constant dense<0.000000e+00> : vector<2x128xf32>
    %717 = tpu.matmul %685, %716, %cst_325 {dimension_numbers = #tpu.dot_dimension_numbers<[1], [0], [0], [1], [0, 0, 1, 1], [], []>} : vector<2x32xf32>, vector<32x128xf32>, vector<2x128xf32> -> vector<2x128xf32>
    %718 = arith.addf %715, %717 : vector<2x128xf32>
    %719 = arith.negf %718 : vector<2x128xf32>
    %720 = math.exp %719 : vector<2x128xf32>
    %cst_326 = arith.constant 1.000000e+00 : f32
    %721 = vector.broadcast %cst_326 : f32 to vector<2x128xf32>
    %722 = arith.addf %721, %720 : vector<2x128xf32>
    %723 = arith.divf %721, %722 : vector<2x128xf32>
    %724 = math.tanh %718 : vector<2x128xf32>
    %725 = vector.extract_strided_slice %723 {offsets = [0, 0], sizes = [2, 32], strides = [1, 1]} : vector<2x128xf32> to vector<2x32xf32>
    %726 = vector.extract_strided_slice %723 {offsets = [0, 32], sizes = [2, 32], strides = [1, 1]} : vector<2x128xf32> to vector<2x32xf32>
    %727 = vector.extract_strided_slice %724 {offsets = [0, 64], sizes = [2, 32], strides = [1, 1]} : vector<2x128xf32> to vector<2x32xf32>
    %728 = vector.extract_strided_slice %723 {offsets = [0, 96], sizes = [2, 32], strides = [1, 1]} : vector<2x128xf32> to vector<2x32xf32>
    %729 = arith.mulf %726, %683 : vector<2x32xf32>
    %730 = arith.mulf %725, %727 : vector<2x32xf32>
    %731 = arith.addf %729, %730 : vector<2x32xf32>
    %732 = math.tanh %731 : vector<2x32xf32>
    %733 = arith.mulf %728, %732 : vector<2x32xf32>
    %c192_327 = arith.constant 192 : index
    %c0_328 = arith.constant 0 : index
    %734 = vector.load %arg1[%c192_327, %c0_328] : memref<264x128xf32, #tpu.memory_space<vmem>>, vector<32x128xf32>
    %cst_329 = arith.constant dense<0.000000e+00> : vector<2x128xf32>
    %735 = tpu.matmul %685, %734, %cst_329 {dimension_numbers = #tpu.dot_dimension_numbers<[1], [0], [0], [1], [0, 0, 1, 1], [], []>} : vector<2x32xf32>, vector<32x128xf32>, vector<2x128xf32> -> vector<2x128xf32>
    %c256_330 = arith.constant 256 : index
    %c0_331 = arith.constant 0 : index
    %736 = vector.load %arg1[%c256_330, %c0_331] : memref<264x128xf32, #tpu.memory_space<vmem>>, vector<1x128xf32>
    %737 = vector.broadcast %736 : vector<1x128xf32> to vector<2x128xf32>
    %738 = arith.addf %735, %737 : vector<2x128xf32>
    %c224_332 = arith.constant 224 : index
    %c0_333 = arith.constant 0 : index
    %739 = vector.load %arg1[%c224_332, %c0_333] : memref<264x128xf32, #tpu.memory_space<vmem>>, vector<32x128xf32>
    %cst_334 = arith.constant dense<0.000000e+00> : vector<2x128xf32>
    %740 = tpu.matmul %708, %739, %cst_334 {dimension_numbers = #tpu.dot_dimension_numbers<[1], [0], [0], [1], [0, 0, 1, 1], [], []>} : vector<2x32xf32>, vector<32x128xf32>, vector<2x128xf32> -> vector<2x128xf32>
    %741 = arith.addf %738, %740 : vector<2x128xf32>
    %742 = arith.negf %741 : vector<2x128xf32>
    %743 = math.exp %742 : vector<2x128xf32>
    %cst_335 = arith.constant 1.000000e+00 : f32
    %744 = vector.broadcast %cst_335 : f32 to vector<2x128xf32>
    %745 = arith.addf %744, %743 : vector<2x128xf32>
    %746 = arith.divf %744, %745 : vector<2x128xf32>
    %747 = math.tanh %741 : vector<2x128xf32>
    %748 = vector.extract_strided_slice %746 {offsets = [0, 0], sizes = [2, 32], strides = [1, 1]} : vector<2x128xf32> to vector<2x32xf32>
    %749 = vector.extract_strided_slice %746 {offsets = [0, 32], sizes = [2, 32], strides = [1, 1]} : vector<2x128xf32> to vector<2x32xf32>
    %750 = vector.extract_strided_slice %747 {offsets = [0, 64], sizes = [2, 32], strides = [1, 1]} : vector<2x128xf32> to vector<2x32xf32>
    %751 = vector.extract_strided_slice %746 {offsets = [0, 96], sizes = [2, 32], strides = [1, 1]} : vector<2x128xf32> to vector<2x32xf32>
    %752 = arith.mulf %749, %706 : vector<2x32xf32>
    %753 = arith.mulf %748, %750 : vector<2x32xf32>
    %754 = arith.addf %752, %753 : vector<2x32xf32>
    %755 = math.tanh %754 : vector<2x32xf32>
    %756 = arith.mulf %751, %755 : vector<2x32xf32>
    %c5_336 = arith.constant 5 : index
    %c0_337 = arith.constant 0 : index
    %c0_338 = arith.constant 0 : index
    %757 = vector.load %arg4[%c5_336, %c0_337, %c0_338] : memref<8x2x32xf32, #tpu.memory_space<vmem>>, vector<1x2x32xf32>
    %758 = vector.shape_cast %757 : vector<1x2x32xf32> to vector<2x32xf32>
    %c120_339 = arith.constant 120 : index
    %c0_340 = arith.constant 0 : index
    %759 = vector.load %arg1[%c120_339, %c0_340] : memref<264x128xf32, #tpu.memory_space<vmem>>, vector<32x128xf32>
    %cst_341 = arith.constant dense<0.000000e+00> : vector<2x128xf32>
    %760 = tpu.matmul %758, %759, %cst_341 {dimension_numbers = #tpu.dot_dimension_numbers<[1], [0], [0], [1], [0, 0, 1, 1], [], []>} : vector<2x32xf32>, vector<32x128xf32>, vector<2x128xf32> -> vector<2x128xf32>
    %c184_342 = arith.constant 184 : index
    %c0_343 = arith.constant 0 : index
    %761 = vector.load %arg1[%c184_342, %c0_343] : memref<264x128xf32, #tpu.memory_space<vmem>>, vector<1x128xf32>
    %762 = vector.broadcast %761 : vector<1x128xf32> to vector<2x128xf32>
    %763 = arith.addf %760, %762 : vector<2x128xf32>
    %c152_344 = arith.constant 152 : index
    %c0_345 = arith.constant 0 : index
    %764 = vector.load %arg1[%c152_344, %c0_345] : memref<264x128xf32, #tpu.memory_space<vmem>>, vector<32x128xf32>
    %cst_346 = arith.constant dense<0.000000e+00> : vector<2x128xf32>
    %765 = tpu.matmul %733, %764, %cst_346 {dimension_numbers = #tpu.dot_dimension_numbers<[1], [0], [0], [1], [0, 0, 1, 1], [], []>} : vector<2x32xf32>, vector<32x128xf32>, vector<2x128xf32> -> vector<2x128xf32>
    %766 = arith.addf %763, %765 : vector<2x128xf32>
    %767 = arith.negf %766 : vector<2x128xf32>
    %768 = math.exp %767 : vector<2x128xf32>
    %cst_347 = arith.constant 1.000000e+00 : f32
    %769 = vector.broadcast %cst_347 : f32 to vector<2x128xf32>
    %770 = arith.addf %769, %768 : vector<2x128xf32>
    %771 = arith.divf %769, %770 : vector<2x128xf32>
    %772 = math.tanh %766 : vector<2x128xf32>
    %773 = vector.extract_strided_slice %771 {offsets = [0, 0], sizes = [2, 32], strides = [1, 1]} : vector<2x128xf32> to vector<2x32xf32>
    %774 = vector.extract_strided_slice %771 {offsets = [0, 32], sizes = [2, 32], strides = [1, 1]} : vector<2x128xf32> to vector<2x32xf32>
    %775 = vector.extract_strided_slice %772 {offsets = [0, 64], sizes = [2, 32], strides = [1, 1]} : vector<2x128xf32> to vector<2x32xf32>
    %776 = vector.extract_strided_slice %771 {offsets = [0, 96], sizes = [2, 32], strides = [1, 1]} : vector<2x128xf32> to vector<2x32xf32>
    %777 = arith.mulf %774, %731 : vector<2x32xf32>
    %778 = arith.mulf %773, %775 : vector<2x32xf32>
    %779 = arith.addf %777, %778 : vector<2x32xf32>
    %780 = math.tanh %779 : vector<2x32xf32>
    %781 = arith.mulf %776, %780 : vector<2x32xf32>
    %c192_348 = arith.constant 192 : index
    %c0_349 = arith.constant 0 : index
    %782 = vector.load %arg1[%c192_348, %c0_349] : memref<264x128xf32, #tpu.memory_space<vmem>>, vector<32x128xf32>
    %cst_350 = arith.constant dense<0.000000e+00> : vector<2x128xf32>
    %783 = tpu.matmul %733, %782, %cst_350 {dimension_numbers = #tpu.dot_dimension_numbers<[1], [0], [0], [1], [0, 0, 1, 1], [], []>} : vector<2x32xf32>, vector<32x128xf32>, vector<2x128xf32> -> vector<2x128xf32>
    %c256_351 = arith.constant 256 : index
    %c0_352 = arith.constant 0 : index
    %784 = vector.load %arg1[%c256_351, %c0_352] : memref<264x128xf32, #tpu.memory_space<vmem>>, vector<1x128xf32>
    %785 = vector.broadcast %784 : vector<1x128xf32> to vector<2x128xf32>
    %786 = arith.addf %783, %785 : vector<2x128xf32>
    %c224_353 = arith.constant 224 : index
    %c0_354 = arith.constant 0 : index
    %787 = vector.load %arg1[%c224_353, %c0_354] : memref<264x128xf32, #tpu.memory_space<vmem>>, vector<32x128xf32>
    %cst_355 = arith.constant dense<0.000000e+00> : vector<2x128xf32>
    %788 = tpu.matmul %756, %787, %cst_355 {dimension_numbers = #tpu.dot_dimension_numbers<[1], [0], [0], [1], [0, 0, 1, 1], [], []>} : vector<2x32xf32>, vector<32x128xf32>, vector<2x128xf32> -> vector<2x128xf32>
    %789 = arith.addf %786, %788 : vector<2x128xf32>
    %790 = arith.negf %789 : vector<2x128xf32>
    %791 = math.exp %790 : vector<2x128xf32>
    %cst_356 = arith.constant 1.000000e+00 : f32
    %792 = vector.broadcast %cst_356 : f32 to vector<2x128xf32>
    %793 = arith.addf %792, %791 : vector<2x128xf32>
    %794 = arith.divf %792, %793 : vector<2x128xf32>
    %795 = math.tanh %789 : vector<2x128xf32>
    %796 = vector.extract_strided_slice %794 {offsets = [0, 0], sizes = [2, 32], strides = [1, 1]} : vector<2x128xf32> to vector<2x32xf32>
    %797 = vector.extract_strided_slice %794 {offsets = [0, 32], sizes = [2, 32], strides = [1, 1]} : vector<2x128xf32> to vector<2x32xf32>
    %798 = vector.extract_strided_slice %795 {offsets = [0, 64], sizes = [2, 32], strides = [1, 1]} : vector<2x128xf32> to vector<2x32xf32>
    %799 = vector.extract_strided_slice %794 {offsets = [0, 96], sizes = [2, 32], strides = [1, 1]} : vector<2x128xf32> to vector<2x32xf32>
    %800 = arith.mulf %797, %754 : vector<2x32xf32>
    %801 = arith.mulf %796, %798 : vector<2x32xf32>
    %802 = arith.addf %800, %801 : vector<2x32xf32>
    %803 = math.tanh %802 : vector<2x32xf32>
    %804 = arith.mulf %799, %803 : vector<2x32xf32>
    %c6_357 = arith.constant 6 : index
    %c0_358 = arith.constant 0 : index
    %c0_359 = arith.constant 0 : index
    %805 = vector.load %arg4[%c6_357, %c0_358, %c0_359] : memref<8x2x32xf32, #tpu.memory_space<vmem>>, vector<1x2x32xf32>
    %806 = vector.shape_cast %805 : vector<1x2x32xf32> to vector<2x32xf32>
    %c120_360 = arith.constant 120 : index
    %c0_361 = arith.constant 0 : index
    %807 = vector.load %arg1[%c120_360, %c0_361] : memref<264x128xf32, #tpu.memory_space<vmem>>, vector<32x128xf32>
    %cst_362 = arith.constant dense<0.000000e+00> : vector<2x128xf32>
    %808 = tpu.matmul %806, %807, %cst_362 {dimension_numbers = #tpu.dot_dimension_numbers<[1], [0], [0], [1], [0, 0, 1, 1], [], []>} : vector<2x32xf32>, vector<32x128xf32>, vector<2x128xf32> -> vector<2x128xf32>
    %c184_363 = arith.constant 184 : index
    %c0_364 = arith.constant 0 : index
    %809 = vector.load %arg1[%c184_363, %c0_364] : memref<264x128xf32, #tpu.memory_space<vmem>>, vector<1x128xf32>
    %810 = vector.broadcast %809 : vector<1x128xf32> to vector<2x128xf32>
    %811 = arith.addf %808, %810 : vector<2x128xf32>
    %c152_365 = arith.constant 152 : index
    %c0_366 = arith.constant 0 : index
    %812 = vector.load %arg1[%c152_365, %c0_366] : memref<264x128xf32, #tpu.memory_space<vmem>>, vector<32x128xf32>
    %cst_367 = arith.constant dense<0.000000e+00> : vector<2x128xf32>
    %813 = tpu.matmul %781, %812, %cst_367 {dimension_numbers = #tpu.dot_dimension_numbers<[1], [0], [0], [1], [0, 0, 1, 1], [], []>} : vector<2x32xf32>, vector<32x128xf32>, vector<2x128xf32> -> vector<2x128xf32>
    %814 = arith.addf %811, %813 : vector<2x128xf32>
    %815 = arith.negf %814 : vector<2x128xf32>
    %816 = math.exp %815 : vector<2x128xf32>
    %cst_368 = arith.constant 1.000000e+00 : f32
    %817 = vector.broadcast %cst_368 : f32 to vector<2x128xf32>
    %818 = arith.addf %817, %816 : vector<2x128xf32>
    %819 = arith.divf %817, %818 : vector<2x128xf32>
    %820 = math.tanh %814 : vector<2x128xf32>
    %821 = vector.extract_strided_slice %819 {offsets = [0, 0], sizes = [2, 32], strides = [1, 1]} : vector<2x128xf32> to vector<2x32xf32>
    %822 = vector.extract_strided_slice %819 {offsets = [0, 32], sizes = [2, 32], strides = [1, 1]} : vector<2x128xf32> to vector<2x32xf32>
    %823 = vector.extract_strided_slice %820 {offsets = [0, 64], sizes = [2, 32], strides = [1, 1]} : vector<2x128xf32> to vector<2x32xf32>
    %824 = vector.extract_strided_slice %819 {offsets = [0, 96], sizes = [2, 32], strides = [1, 1]} : vector<2x128xf32> to vector<2x32xf32>
    %825 = arith.mulf %822, %779 : vector<2x32xf32>
    %826 = arith.mulf %821, %823 : vector<2x32xf32>
    %827 = arith.addf %825, %826 : vector<2x32xf32>
    %828 = math.tanh %827 : vector<2x32xf32>
    %829 = arith.mulf %824, %828 : vector<2x32xf32>
    %c192_369 = arith.constant 192 : index
    %c0_370 = arith.constant 0 : index
    %830 = vector.load %arg1[%c192_369, %c0_370] : memref<264x128xf32, #tpu.memory_space<vmem>>, vector<32x128xf32>
    %cst_371 = arith.constant dense<0.000000e+00> : vector<2x128xf32>
    %831 = tpu.matmul %781, %830, %cst_371 {dimension_numbers = #tpu.dot_dimension_numbers<[1], [0], [0], [1], [0, 0, 1, 1], [], []>} : vector<2x32xf32>, vector<32x128xf32>, vector<2x128xf32> -> vector<2x128xf32>
    %c256_372 = arith.constant 256 : index
    %c0_373 = arith.constant 0 : index
    %832 = vector.load %arg1[%c256_372, %c0_373] : memref<264x128xf32, #tpu.memory_space<vmem>>, vector<1x128xf32>
    %833 = vector.broadcast %832 : vector<1x128xf32> to vector<2x128xf32>
    %834 = arith.addf %831, %833 : vector<2x128xf32>
    %c224_374 = arith.constant 224 : index
    %c0_375 = arith.constant 0 : index
    %835 = vector.load %arg1[%c224_374, %c0_375] : memref<264x128xf32, #tpu.memory_space<vmem>>, vector<32x128xf32>
    %cst_376 = arith.constant dense<0.000000e+00> : vector<2x128xf32>
    %836 = tpu.matmul %804, %835, %cst_376 {dimension_numbers = #tpu.dot_dimension_numbers<[1], [0], [0], [1], [0, 0, 1, 1], [], []>} : vector<2x32xf32>, vector<32x128xf32>, vector<2x128xf32> -> vector<2x128xf32>
    %837 = arith.addf %834, %836 : vector<2x128xf32>
    %838 = arith.negf %837 : vector<2x128xf32>
    %839 = math.exp %838 : vector<2x128xf32>
    %cst_377 = arith.constant 1.000000e+00 : f32
    %840 = vector.broadcast %cst_377 : f32 to vector<2x128xf32>
    %841 = arith.addf %840, %839 : vector<2x128xf32>
    %842 = arith.divf %840, %841 : vector<2x128xf32>
    %843 = math.tanh %837 : vector<2x128xf32>
    %844 = vector.extract_strided_slice %842 {offsets = [0, 0], sizes = [2, 32], strides = [1, 1]} : vector<2x128xf32> to vector<2x32xf32>
    %845 = vector.extract_strided_slice %842 {offsets = [0, 32], sizes = [2, 32], strides = [1, 1]} : vector<2x128xf32> to vector<2x32xf32>
    %846 = vector.extract_strided_slice %843 {offsets = [0, 64], sizes = [2, 32], strides = [1, 1]} : vector<2x128xf32> to vector<2x32xf32>
    %847 = vector.extract_strided_slice %842 {offsets = [0, 96], sizes = [2, 32], strides = [1, 1]} : vector<2x128xf32> to vector<2x32xf32>
    %848 = arith.mulf %845, %802 : vector<2x32xf32>
    %849 = arith.mulf %844, %846 : vector<2x32xf32>
    %850 = arith.addf %848, %849 : vector<2x32xf32>
    %851 = math.tanh %850 : vector<2x32xf32>
    %852 = arith.mulf %847, %851 : vector<2x32xf32>
    %c7_378 = arith.constant 7 : index
    %c0_379 = arith.constant 0 : index
    %c0_380 = arith.constant 0 : index
    %853 = vector.load %arg4[%c7_378, %c0_379, %c0_380] : memref<8x2x32xf32, #tpu.memory_space<vmem>>, vector<1x2x32xf32>
    %854 = vector.shape_cast %853 : vector<1x2x32xf32> to vector<2x32xf32>
    %c120_381 = arith.constant 120 : index
    %c0_382 = arith.constant 0 : index
    %855 = vector.load %arg1[%c120_381, %c0_382] : memref<264x128xf32, #tpu.memory_space<vmem>>, vector<32x128xf32>
    %cst_383 = arith.constant dense<0.000000e+00> : vector<2x128xf32>
    %856 = tpu.matmul %854, %855, %cst_383 {dimension_numbers = #tpu.dot_dimension_numbers<[1], [0], [0], [1], [0, 0, 1, 1], [], []>} : vector<2x32xf32>, vector<32x128xf32>, vector<2x128xf32> -> vector<2x128xf32>
    %c184_384 = arith.constant 184 : index
    %c0_385 = arith.constant 0 : index
    %857 = vector.load %arg1[%c184_384, %c0_385] : memref<264x128xf32, #tpu.memory_space<vmem>>, vector<1x128xf32>
    %858 = vector.broadcast %857 : vector<1x128xf32> to vector<2x128xf32>
    %859 = arith.addf %856, %858 : vector<2x128xf32>
    %c152_386 = arith.constant 152 : index
    %c0_387 = arith.constant 0 : index
    %860 = vector.load %arg1[%c152_386, %c0_387] : memref<264x128xf32, #tpu.memory_space<vmem>>, vector<32x128xf32>
    %cst_388 = arith.constant dense<0.000000e+00> : vector<2x128xf32>
    %861 = tpu.matmul %829, %860, %cst_388 {dimension_numbers = #tpu.dot_dimension_numbers<[1], [0], [0], [1], [0, 0, 1, 1], [], []>} : vector<2x32xf32>, vector<32x128xf32>, vector<2x128xf32> -> vector<2x128xf32>
    %862 = arith.addf %859, %861 : vector<2x128xf32>
    %863 = arith.negf %862 : vector<2x128xf32>
    %864 = math.exp %863 : vector<2x128xf32>
    %cst_389 = arith.constant 1.000000e+00 : f32
    %865 = vector.broadcast %cst_389 : f32 to vector<2x128xf32>
    %866 = arith.addf %865, %864 : vector<2x128xf32>
    %867 = arith.divf %865, %866 : vector<2x128xf32>
    %868 = math.tanh %862 : vector<2x128xf32>
    %869 = vector.extract_strided_slice %867 {offsets = [0, 0], sizes = [2, 32], strides = [1, 1]} : vector<2x128xf32> to vector<2x32xf32>
    %870 = vector.extract_strided_slice %867 {offsets = [0, 32], sizes = [2, 32], strides = [1, 1]} : vector<2x128xf32> to vector<2x32xf32>
    %871 = vector.extract_strided_slice %868 {offsets = [0, 64], sizes = [2, 32], strides = [1, 1]} : vector<2x128xf32> to vector<2x32xf32>
    %872 = vector.extract_strided_slice %867 {offsets = [0, 96], sizes = [2, 32], strides = [1, 1]} : vector<2x128xf32> to vector<2x32xf32>
    %873 = arith.mulf %870, %827 : vector<2x32xf32>
    %874 = arith.mulf %869, %871 : vector<2x32xf32>
    %875 = arith.addf %873, %874 : vector<2x32xf32>
    %876 = math.tanh %875 : vector<2x32xf32>
    %877 = arith.mulf %872, %876 : vector<2x32xf32>
    %c192_390 = arith.constant 192 : index
    %c0_391 = arith.constant 0 : index
    %878 = vector.load %arg1[%c192_390, %c0_391] : memref<264x128xf32, #tpu.memory_space<vmem>>, vector<32x128xf32>
    %cst_392 = arith.constant dense<0.000000e+00> : vector<2x128xf32>
    %879 = tpu.matmul %829, %878, %cst_392 {dimension_numbers = #tpu.dot_dimension_numbers<[1], [0], [0], [1], [0, 0, 1, 1], [], []>} : vector<2x32xf32>, vector<32x128xf32>, vector<2x128xf32> -> vector<2x128xf32>
    %c256_393 = arith.constant 256 : index
    %c0_394 = arith.constant 0 : index
    %880 = vector.load %arg1[%c256_393, %c0_394] : memref<264x128xf32, #tpu.memory_space<vmem>>, vector<1x128xf32>
    %881 = vector.broadcast %880 : vector<1x128xf32> to vector<2x128xf32>
    %882 = arith.addf %879, %881 : vector<2x128xf32>
    %c224_395 = arith.constant 224 : index
    %c0_396 = arith.constant 0 : index
    %883 = vector.load %arg1[%c224_395, %c0_396] : memref<264x128xf32, #tpu.memory_space<vmem>>, vector<32x128xf32>
    %cst_397 = arith.constant dense<0.000000e+00> : vector<2x128xf32>
    %884 = tpu.matmul %852, %883, %cst_397 {dimension_numbers = #tpu.dot_dimension_numbers<[1], [0], [0], [1], [0, 0, 1, 1], [], []>} : vector<2x32xf32>, vector<32x128xf32>, vector<2x128xf32> -> vector<2x128xf32>
    %885 = arith.addf %882, %884 : vector<2x128xf32>
    %886 = arith.negf %885 : vector<2x128xf32>
    %887 = math.exp %886 : vector<2x128xf32>
    %cst_398 = arith.constant 1.000000e+00 : f32
    %888 = vector.broadcast %cst_398 : f32 to vector<2x128xf32>
    %889 = arith.addf %888, %887 : vector<2x128xf32>
    %890 = arith.divf %888, %889 : vector<2x128xf32>
    %891 = math.tanh %885 : vector<2x128xf32>
    %892 = vector.extract_strided_slice %890 {offsets = [0, 0], sizes = [2, 32], strides = [1, 1]} : vector<2x128xf32> to vector<2x32xf32>
    %893 = vector.extract_strided_slice %890 {offsets = [0, 32], sizes = [2, 32], strides = [1, 1]} : vector<2x128xf32> to vector<2x32xf32>
    %894 = vector.extract_strided_slice %891 {offsets = [0, 64], sizes = [2, 32], strides = [1, 1]} : vector<2x128xf32> to vector<2x32xf32>
    %895 = vector.extract_strided_slice %890 {offsets = [0, 96], sizes = [2, 32], strides = [1, 1]} : vector<2x128xf32> to vector<2x32xf32>
    %896 = arith.mulf %893, %850 : vector<2x32xf32>
    %897 = arith.mulf %892, %894 : vector<2x32xf32>
    %898 = arith.addf %896, %897 : vector<2x32xf32>
    %899 = math.tanh %898 : vector<2x32xf32>
    %900 = arith.mulf %895, %899 : vector<2x32xf32>
    %c192_399 = arith.constant 192 : index
    %c0_400 = arith.constant 0 : index
    %901 = vector.load %arg1[%c192_399, %c0_400] : memref<264x128xf32, #tpu.memory_space<vmem>>, vector<32x128xf32>
    %cst_401 = arith.constant dense<0.000000e+00> : vector<2x128xf32>
    %902 = tpu.matmul %877, %901, %cst_401 {dimension_numbers = #tpu.dot_dimension_numbers<[1], [0], [0], [1], [0, 0, 1, 1], [], []>} : vector<2x32xf32>, vector<32x128xf32>, vector<2x128xf32> -> vector<2x128xf32>
    %c256_402 = arith.constant 256 : index
    %c0_403 = arith.constant 0 : index
    %903 = vector.load %arg1[%c256_402, %c0_403] : memref<264x128xf32, #tpu.memory_space<vmem>>, vector<1x128xf32>
    %904 = vector.broadcast %903 : vector<1x128xf32> to vector<2x128xf32>
    %905 = arith.addf %902, %904 : vector<2x128xf32>
    %c224_404 = arith.constant 224 : index
    %c0_405 = arith.constant 0 : index
    %906 = vector.load %arg1[%c224_404, %c0_405] : memref<264x128xf32, #tpu.memory_space<vmem>>, vector<32x128xf32>
    %cst_406 = arith.constant dense<0.000000e+00> : vector<2x128xf32>
    %907 = tpu.matmul %900, %906, %cst_406 {dimension_numbers = #tpu.dot_dimension_numbers<[1], [0], [0], [1], [0, 0, 1, 1], [], []>} : vector<2x32xf32>, vector<32x128xf32>, vector<2x128xf32> -> vector<2x128xf32>
    %908 = arith.addf %905, %907 : vector<2x128xf32>
    %909 = arith.negf %908 : vector<2x128xf32>
    %910 = math.exp %909 : vector<2x128xf32>
    %cst_407 = arith.constant 1.000000e+00 : f32
    %911 = vector.broadcast %cst_407 : f32 to vector<2x128xf32>
    %912 = arith.addf %911, %910 : vector<2x128xf32>
    %913 = arith.divf %911, %912 : vector<2x128xf32>
    %914 = math.tanh %908 : vector<2x128xf32>
    %915 = vector.extract_strided_slice %913 {offsets = [0, 0], sizes = [2, 32], strides = [1, 1]} : vector<2x128xf32> to vector<2x32xf32>
    %916 = vector.extract_strided_slice %913 {offsets = [0, 32], sizes = [2, 32], strides = [1, 1]} : vector<2x128xf32> to vector<2x32xf32>
    %917 = vector.extract_strided_slice %914 {offsets = [0, 64], sizes = [2, 32], strides = [1, 1]} : vector<2x128xf32> to vector<2x32xf32>
    %918 = vector.extract_strided_slice %913 {offsets = [0, 96], sizes = [2, 32], strides = [1, 1]} : vector<2x128xf32> to vector<2x32xf32>
    %919 = arith.mulf %916, %898 : vector<2x32xf32>
    %920 = arith.mulf %915, %917 : vector<2x32xf32>
    %921 = arith.addf %919, %920 : vector<2x32xf32>
    %922 = math.tanh %921 : vector<2x32xf32>
    %923 = arith.mulf %918, %922 : vector<2x32xf32>
    %c288 = arith.constant 288 : index
    %c0_408 = arith.constant 0 : index
    %924 = vector.load %arg2[%c288, %c0_408] : memref<328x32xf32, #tpu.memory_space<vmem>>, vector<32x32xf32>
    %c320 = arith.constant 320 : index
    %c0_409 = arith.constant 0 : index
    %925 = vector.load %arg2[%c320, %c0_409] : memref<328x32xf32, #tpu.memory_space<vmem>>, vector<1x32xf32>
    %cst_410 = arith.constant dense<0.000000e+00> : vector<2x32xf32>
    %926 = tpu.matmul %923, %924, %cst_410 {dimension_numbers = #tpu.dot_dimension_numbers<[1], [0], [0], [1], [0, 0, 1, 1], [], []>} : vector<2x32xf32>, vector<32x32xf32>, vector<2x32xf32> -> vector<2x32xf32>
    %927 = vector.broadcast %925 : vector<1x32xf32> to vector<2x32xf32>
    %928 = arith.addf %926, %927 : vector<2x32xf32>
    %929 = vector.extract_strided_slice %928 {offsets = [0, 0], sizes = [2, 8], strides = [1, 1]} : vector<2x32xf32> to vector<2x8xf32>
    %c0_411 = arith.constant 0 : index
    %c0_412 = arith.constant 0 : index
    %930 = vector.load %arg3[%c0_411, %c0_412] : memref<2x8xf32, #tpu.memory_space<vmem>>, vector<2x8xf32>
    tpu.vector_store %arg3[%c0_411, %c0_412], %929 {strides = array<i32>} : memref<2x8xf32, #tpu.memory_space<vmem>>, vector<2x8xf32>,
    return
  }
}

</mosaic_0001>

<bundles_post_ra>
// kernel: autoencoder_rnn_forward.1
= control target key start
LH: loop header
LB: loop body
LE: loop exit
PB: predicated region body
PF: predicated region fallthrough
CT: control target
= control target key end

     0   :  { %vm28_vm0 = vcmask 1043456   ;;  %vm23_vm1 = vcmask 1041409   ;;  %vm25_vm2 = vcmask 31744   ;;  %v3946_v9 = vmov 0.0   ;;  %s5052_s0 = inlined_call_operand.vmem [shape: f32[2,8,4], index: 0, kind: input, shape index: {}]   ;;  %s5053_s1 = inlined_call_operand.vmem [shape: f32[264,128], index: 1, kind: input, shape index: {}]   ;;  %s5054_s2 = inlined_call_operand.vmem [shape: f32[328,32], index: 2, kind: input, shape index: {}]   ;;  %s5055_s3 = inlined_call_operand.hbm [shape: f32[2,8], index: 3, kind: output, shape index: {}]  }
   0x1   :  { %v3981_v0 = vld [vmem:[%s5053_s1 + $0x20] sm:$0xff]  ;;  %v3986_v1 = vld [vmem:[%s5053_s1 + $0x18] sm:$0xff]  ;;  %v16_v4 = vld [vmem:[%s5052_s0 + $0x8] sm:$0x1] }
   0x2   :  { %v17_v2 = vld [vmem:[%s5053_s1] sm:$0xf]  ;;  %72 = vmatpush.msra.mxu1 %v3981_v0  ;;  %v4002_v5 = vld [vmem:[%s5053_s1 + $0x10] sm:$0xff]  ;;  %v22_v6 = vrot.slane %v16_v4, 7  ;;  %163 = vmatpush.msra.mxu3 %v3981_v0  ;;  %v4010_v7 = vld [vmem:[%s5053_s1 + $0x8] sm:$0xff] }
   0x3   :  { %3479 = vmatpush.msk.msra.mxu0 %vm28_vm0, %v17_v2  ;;  %v15_v3 = vld [vmem:[%s5052_s0] sm:$0x1]  ;;  %3482 = vmatpush.msk.msra.mxu2 %vm28_vm0, %v17_v2 }
   0x4   :  { %73 = vmatpush.msra.mxu1 %v3986_v1  ;;  %v24_v8 = vsel %vm23_vm1, %v22_v6, %v15_v3  ;;  %164 = vmatpush.msra.mxu3 %v3986_v1 }
   0x5   :  { %3480 = vmatmul.msk.f32.vlgmr.msra.gmra.mxu0 %vm25_vm2, %v24_v8 }
   0x6   :  { %74 = vmatpush.msra.mxu1 %v4002_v5  ;;  %165 = vmatpush.msra.mxu3 %v4002_v5 }
   0x8   :  { %75 = vmatpush.msra.mxu1 %v4010_v7  ;;  %166 = vmatpush.msra.mxu3 %v4010_v7 }
   0x9   :  { %76 = vmatmul.f32.vlgmr.msra.gmra.mxu1 %v3946_v9 }
   0xa   :  { %362 = vmatpush.msrb.mxu3 %v3981_v0 }
   0xb   :  { %8 = vsyncpa [#allocation4], 0  ;;  %v4027_v10 = vld [vmem:[%s5053_s1 + $0x28] ss:$0 sm:$0xff]  ;;  %s3947_s28 = smov 64   ;;  %s3948_s29 = smov 32  }
   0xc   :  { %363 = vmatpush.msrb.mxu3 %v3986_v1  ;;  %v118_v35 = vld [vmem:[%s5052_s0 + $0x1] sm:$0x1]  ;;  %v119_v36 = vld [vmem:[%s5052_s0 + $0x9] sm:$0x1]  ;;  %v4062_v41 = vld [vmem:[%s5053_s1 + $0x58] sm:$0xff]  ;;  %vm56_vm7 = vcmask 261120  }
   0xd   :  { %v4045_v37 = vld [vmem:[%s5053_s1 + $0x68] sm:$0xff]  ;;  %v122_v38 = vrot.slane %v119_v36, 7  ;;  %v4051_v39 = vld [vmem:[%s5053_s1 + $0x60] sm:$0xff]  ;;  %v4074_v44 = vld [vmem:[%s5053_s1 + $0x38] sm:$0xff]  ;;  %s3957_s18 = smov [#allocation3]   ;;  %s3470_s22 = sshll.u32 %s5055_s3, 4  ;;  %s3471_s22 = int_to_ptr.hbm [resolvable:$true] %s3470_s22 }
   0xe   :  { %364 = vmatpush.msrb.mxu3 %v4002_v5  ;;  %251 = vmatpush.msrb.mxu2 %v4045_v37  ;;  %v4056_v40 = vld [vmem:[%s5053_s1 + $0x48] sm:$0xff]  ;;  %v4067_v42 = vld [vmem:[%s5053_s1 + $0x40] sm:$0xff]  ;;  %v4081_v45 = vld [vmem:[%s5053_s1 + $0x50] sm:$0xff]  ;;  %s3468_s19 = sshll.u32 %s3957_s18, 4  ;;  %s3469_s19 = int_to_ptr.vmem [resolvable:$true] %s3468_s19 }
   0xf   :  { %227 = vmatpush.msrb.mxu0 %v4056_v40  ;;  %v123_v43 = vsel %vm23_vm1, %v122_v38, %v118_v35  ;;  %v4087_v46 = vld [vmem:[%s5053_s1 + $0x30] sm:$0xff] }
  0x10   :  { %365 = vmatpush.msrb.mxu3 %v4010_v7  ;;  %252 = vmatpush.msrb.mxu2 %v4051_v39  ;;  %v3617_v51 = vld [vmem:[%s5053_s1 + $0x70] ss:$0 sm:$0xff] }
  0x11   :  { %3483 = vmatmul.msk.f32.vlgmr.msra.gmra.mxu2 %vm25_vm2, %v123_v43  ;;  %228 = vmatpush.msrb.mxu0 %v4067_v42 }
  0x12   :  { %253 = vmatpush.msrb.mxu2 %v4062_v41 }
  0x13   :  { %229 = vmatpush.msrb.mxu0 %v4074_v44 }
  0x14   :  { %254 = vmatpush.msrb.mxu2 %v4081_v45 }
  0x15   :  { %230 = vmatpush.msrb.mxu0 %v4087_v46 }
  0x16   :  { %452 = vmatpush.msra.mxu2 %v4045_v37 }
  0x17   :  { %426 = vmatpush.msra.mxu0 %v4056_v40 }
  0x18   :  { %453 = vmatpush.msra.mxu2 %v4051_v39 }
  0x19   :  { %427 = vmatpush.msra.mxu0 %v4067_v42  ;;  %255 = vmatmul.f32.vlgmr.msrb.gmra.mxu2 %v3946_v9 }
  0x1a   :  { %454 = vmatpush.msra.mxu2 %v4062_v41 }
  0x1b   :  { %428 = vmatpush.msra.mxu0 %v4074_v44 }
  0x1c   :  { %455 = vmatpush.msra.mxu2 %v4081_v45 }
  0x1d   :  { %429 = vmatpush.msra.mxu0 %v4087_v46 }
  0x1e   :  { %605 = vmatpush.msrb.mxu2 %v3981_v0 }
  0x20   :  { %606 = vmatpush.msrb.mxu2 %v3986_v1 }
  0x22   :  { %607 = vmatpush.msrb.mxu2 %v4002_v5 }
  0x24   :  { %608 = vmatpush.msrb.mxu2 %v4010_v7 }
  0x82   :  { %v49_v11 = vpop.f32.mrf.mxu0 }
  0x83   :  { %v50_v12 = vadd.f32 %v4027_v10, %v49_v11 }
  0x86   :  { %v77_v13 = vpop.f32.mrf.mxu1 }
  0x87   :  { %v80_v14 = vadd.f32 %v77_v13, %v50_v12 }
  0x89   :  { %3634 = vtanh.f32 %v80_v14  ;;  %v3481_v16 = vmul.f32 -1.442695, %v80_v14 }
  0x8b   :  { %3636 = vpow2.f32 %v3481_v16 }
  0x8f   :  { %v3635_v15 = vpop.eup %3634 }
  0x90   :  { %103 = vrot.lane.b32.xlu0 %v3635_v15, %s3947_s28 }
  0x91   :  { %v3637_v17 = vpop.eup %3636 }
  0x92   :  { %v84_v18 = vadd.f32 1.0, %v3637_v17 }
  0x94   :  { %3638 = vrcp.f32 %v84_v18  ;;  %v96_v24 = vand.u32 2147483648, %v84_v18  ;;  %vm90_vm4 = vweird.f32 %v84_v18  ;;  %v94_v25 = vand.u32 2147483647, %v84_v18  ;;  %v143_v50 = vpop.f32.mrf.mxu2 }
  0x95   :  { %v144_v57 = vadd.f32 %v4027_v10, %v143_v50 }
  0x96   :  { %v97_v27 = vor.u32 1.1754944e-38, %v96_v24  ;;  %vm95_vm6 = vcmp.eq.f32.partialorder %v94_v25, 8.507059e+37 }
  0x9a   :  { %v3639_v19 = vpop.eup %3638 }
  0x9b   :  { %v86_v20 = vmul.f32 %v3639_v19, %v84_v18  ;;  %vm91_vm3 = vweird.f32 %v3639_v19 }
  0x9c   :  { %vm92_vm5 = vmor %vm90_vm4, %vm91_vm3  ;;  %v256_v53 = vpop.f32.mrf.mxu2  ;;  %vm301_vm3 = vcmask 254976  }
  0x9d   :  { %v87_v21 = vsub.f32 1.0, %v86_v20 }
  0x9f   :  { %v88_v22 = vmul.f32 %v3639_v19, %v87_v21 }
  0xa1   :  { %v89_v23 = vadd.f32 %v3639_v19, %v88_v22 }
  0xa3   :  { %v93_v26 = vsel %vm92_vm5, %v3639_v19, %v89_v23 }
  0xa4   :  { %v98_v29 = vsel %vm95_vm6, %v97_v27, %v93_v26 }
  0xa5   :  { %v101_v31 = vmul.f32 0.0, %v98_v29 }
 0x102   :  { %v104_v28 = vpop.permute.xlu0 %103 }
 0x103   :  { %v106_v30 = vmul.f32 %v104_v28, %v98_v29 }
 0x105   :  { %108 = vrot.lane.b32.xlu0 %v106_v30, %s3948_s29 }
 0x177   :  { %v109_v32 = vpop.permute.xlu0 %108 }
 0x178   :  { %v4032_v33 = vadd.f32 %v109_v32, %v101_v31 }
 0x17a   :  { %3640 = vtanh.f32 %v4032_v33 }
 0x180   :  { %v3641_v34 = vpop.eup %3640 }
 0x181   :  { %114 = vrot.lane.b32.xlu1 %v3641_v34, %s3947_s28 }
 0x1f3   :  { %v115_v47 = vpop.permute.xlu1 %114 }
 0x1f4   :  { %v117_v48 = vmul.f32 %v115_v47, %v98_v29 }
 0x1f6   :  { %147 = vrot.lane.b32.xlu1 %v117_v48, %s3948_s29 }
 0x268   :  { %v148_v49 = vpop.permute.xlu1 %147 }
 0x269   :  { %3484 = vmatmul.msk.f32.vlgmr.msra.gmra.mxu3 %vm56_vm7, %v148_v49  ;;  %3486 = vmatmul.msk.f32.vlgmr.msrb.gmra.mxu0 %vm56_vm7, %v148_v49 }
 0x2e6   :  { %v232_v52 = vpop.f32.mrf.mxu0 }
 0x2e7   :  { %v233_v54 = vadd.f32 %v3617_v51, %v232_v52 }
 0x2e9   :  { %v259_v55 = vadd.f32 %v256_v53, %v233_v54  ;;  %v306_v53 = vld [vmem:[%s5054_s2 + $0x18] sm:$0xff]  ;;  %v305_v54 = vld [vmem:[%s5054_s2 + $0x10] sm:$0xff] }
 0x2ea   :  { %542 = vmatpush.msra.mxu3 %v306_v53 }
 0x2eb   :  { %3642 = vtanh.f32 %v259_v55  ;;  %v3487_v61 = vmul.f32 -1.442695, %v259_v55  ;;  %v307_v55 = vld [vmem:[%s5052_s0 + $0x2] sm:$0x1] }
 0x2ec   :  { %v168_v56 = vpop.f32.mrf.mxu3  ;;  %543 = vmatpush.msra.mxu3 %v305_v54 }
 0x2ed   :  { %v171_v58 = vadd.f32 %v168_v56, %v144_v57  ;;  %v308_v56 = vld [vmem:[%s5052_s0 + $0xa] sm:$0x1] }
 0x2ee   :  { %v314_v57 = vrot.slane %v308_v56, 7 }
 0x2ef   :  { %3644 = vtanh.f32 %v171_v58  ;;  %v3485_v62 = vmul.f32 -1.442695, %v171_v58  ;;  %v304_v58 = vld [vmem:[%s5054_s2 + $0x8] sm:$0xff] }
 0x2f0   :  { %3646 = vpow2.f32 %v3487_v61  ;;  %544 = vmatpush.msra.mxu3 %v304_v58 }
 0x2f1   :  { %v3643_v59 = vpop.eup %3642  ;;  %3648 = vpow2.f32 %v3485_v62 }
 0x2f2   :  { %282 = vrot.lane.b32.xlu2 %v3643_v59, %s3947_s28  ;;  %v315_v59 = vsel %vm23_vm1, %v314_v57, %v307_v55 }
 0x2f5   :  { %v3645_v60 = vpop.eup %3644 }
 0x2f6   :  { %v3647_v63 = vpop.eup %3646 }
 0x2f7   :  { %v263_v2 = vadd.f32 1.0, %v3647_v63  ;;  %v3649_v3 = vpop.eup %3648  ;;  %v3618_v63 = vld [vmem:[%s5053_s1 + $0x70] ss:$0 sm:$0xff] }
 0x2f8   :  { %v175_v4 = vadd.f32 1.0, %v3649_v3 }
 0x2f9   :  { %3650 = vrcp.f32 %v263_v2  ;;  %v275_v16 = vand.u32 2147483648, %v263_v2  ;;  %vm269_vm9 = vweird.f32 %v263_v2  ;;  %v273_v17 = vand.u32 2147483647, %v263_v2 }
 0x2fa   :  { %194 = vrot.lane.b32.xlu2 %v3645_v60, %s3947_s28  ;;  %3652 = vrcp.f32 %v175_v4  ;;  %v187_v25 = vand.u32 2147483648, %v175_v4  ;;  %vm181_vm13 = vweird.f32 %v175_v4  ;;  %v185_v26 = vand.u32 2147483647, %v175_v4  ;;  %v303_v60 = vld [vmem:[%s5054_s2] sm:$0xff] }
 0x2fb   :  { %v276_v20 = vor.u32 1.1754944e-38, %v275_v16  ;;  %vm274_vm11 = vcmp.eq.f32.partialorder %v273_v17, 8.507059e+37  ;;  %545 = vmatpush.msra.mxu3 %v303_v60 }
 0x2fc   :  { %v188_v28 = vor.u32 1.1754944e-38, %v187_v25  ;;  %vm186_vm15 = vcmp.eq.f32.partialorder %v185_v26, 8.507059e+37 }
 0x2ff   :  { %v3651_v6 = vpop.eup %3650 }
 0x300   :  { %v265_v8 = vmul.f32 %v3651_v6, %v263_v2  ;;  %v3653_v11 = vpop.eup %3652  ;;  %vm270_vm8 = vweird.f32 %v3651_v6  ;;  %v3619_v2 = vld [vmem:[%s5053_s1 + $0x28] ss:$0 sm:$0xff] }
 0x301   :  { %v177_v13 = vmul.f32 %v3653_v11, %v175_v4  ;;  %vm271_vm10 = vmor %vm269_vm9, %vm270_vm8  ;;  %vm182_vm12 = vweird.f32 %v3653_v11 }
 0x302   :  { %v266_v10 = vsub.f32 1.0, %v265_v8  ;;  %vm183_vm14 = vmor %vm181_vm13, %vm182_vm12 }
 0x303   :  { %v178_v15 = vsub.f32 1.0, %v177_v13 }
 0x304   :  { %v267_v12 = vmul.f32 %v3651_v6, %v266_v10 }
 0x305   :  { %v179_v19 = vmul.f32 %v3653_v11, %v178_v15 }
 0x306   :  { %v268_v14 = vadd.f32 %v3651_v6, %v267_v12 }
 0x307   :  { %v180_v24 = vadd.f32 %v3653_v11, %v179_v19 }
 0x308   :  { %v272_v18 = vsel %vm271_vm10, %v3651_v6, %v268_v14 }
 0x309   :  { %v277_v22 = vsel %vm274_vm11, %v276_v20, %v272_v18  ;;  %v184_v27 = vsel %vm183_vm14, %v3653_v11, %v180_v24 }
 0x30a   :  { %v189_v30 = vsel %vm186_vm15, %v188_v28, %v184_v27  ;;  %v280_v32 = vmul.f32 0.0, %v277_v22 }
 0x30b   :  { %v192_v36 = vmul.f32 %v189_v30, %v4032_v33  ;;  %v309_v33 = vld [vmem:[%s5053_s1] sm:$0xf] }
 0x30c   :  { %3488 = vmatpush.msk.msrb.mxu1 %vm28_vm0, %v309_v33 }
 0x30d   :  { %3489 = vmatmul.msk.f32.vlgmr.msrb.gmra.mxu1 %vm25_vm2, %v315_v59 }
 0x34c   :  { %v283_v21 = vpop.permute.xlu2 %282 }
 0x34d   :  { %v285_v23 = vmul.f32 %v283_v21, %v277_v22 }
 0x34f   :  { %287 = vrot.lane.b32.xlu0 %v285_v23, %s3948_s29 }
 0x354   :  { %v195_v29 = vpop.permute.xlu2 %194 }
 0x355   :  { %v197_v31 = vmul.f32 %v195_v29, %v189_v30 }
 0x357   :  { %199 = vrot.lane.b32.xlu1 %v197_v31, %s3948_s29 }
 0x38a   :  { %v338_v4 = vpop.f32.mrf.mxu1 }
 0x38b   :  { %v339_v11 = vadd.f32 %v3619_v2, %v338_v4  ;;  %v506_v2 = vld [vmem:[%s5054_s2 + $0x30] sm:$0xff] }
 0x3c1   :  { %v288_v34 = vpop.permute.xlu0 %287 }
 0x3c2   :  { %v4116_v35 = vadd.f32 %v288_v34, %v280_v32 }
 0x3c4   :  { %3654 = vtanh.f32 %v4116_v35 }
 0x3c9   :  { %v200_v38 = vpop.permute.xlu1 %199 }
 0x3ca   :  { %v3655_v43 = vpop.eup %3654  ;;  %v4120_v47 = vadd.f32 %v200_v38, %v192_v36 }
 0x3cb   :  { %293 = vrot.lane.b32.xlu2 %v3655_v43, %s3947_s28 }
 0x3cc   :  { %3656 = vtanh.f32 %v4120_v47 }
 0x3d2   :  { %v3657_v48 = vpop.eup %3656 }
 0x3d3   :  { %205 = vrot.lane.b32.xlu0 %v3657_v48, %s3947_s28 }
 0x425   :  { %v294_v49 = vpop.permute.xlu2 %293 }
 0x426   :  { %v296_v50 = vmul.f32 %v294_v49, %v277_v22 }
 0x428   :  { %298 = vrot.lane.b32.xlu1 %v296_v50, %s3948_s29 }
 0x445   :  { %v206_v51 = vpop.permute.xlu0 %205 }
 0x446   :  { %v208_v52 = vmul.f32 %v206_v51, %v189_v30 }
 0x448   :  { %346 = vrot.lane.b32.xlu2 %v208_v52, %s3948_s29 }
 0x49a   :  { %v299_v61 = vpop.permute.xlu1 %298 }
 0x49b   :  { %302 = vst.msk [vmem:[#allocation2] sm:$0x3] %vm301_vm3, %v299_v61  ;;  %3493 = vmatmul.msk.f32.vlgmr.msra.gmra.mxu2 %vm56_vm7, %v299_v61 }
 0x4a2   :  { %v347_v62 = vpop.permute.xlu2 %346 }
 0x4a3   :  { %3490 = vmatmul.msk.f32.vlgmr.msrb.gmra.mxu3 %vm56_vm7, %v347_v62  ;;  %3492 = vmatmul.msk.f32.vlgmr.msra.gmra.mxu0 %vm56_vm7, %v347_v62 }
 0x4a4   :  { %693 = vmatpush.msrb.mxu3 %v4045_v37 }
 0x4a6   :  { %694 = vmatpush.msrb.mxu3 %v4051_v39 }
 0x4a8   :  { %695 = vmatpush.msrb.mxu3 %v4062_v41 }
 0x4aa   :  { %696 = vmatpush.msrb.mxu3 %v4081_v45 }
 0x4ab   :  { %3496 = vmatmul.msk.f32.vlgmr.msra.gmra.mxu3 %vm56_vm7, %v299_v61 }
 0x4ac   :  { %891 = vmatpush.msra.mxu3 %v4056_v40 }
 0x4ae   :  { %892 = vmatpush.msra.mxu3 %v4067_v42 }
 0x4b0   :  { %893 = vmatpush.msra.mxu3 %v4074_v44 }
 0x4b2   :  { %894 = vmatpush.msra.mxu3 %v4087_v46 }
 0x51e   :  { %v457_v8 = vpop.f32.mrf.mxu2 }
 0x520   :  { %v431_v3 = vpop.f32.mrf.mxu0 }
 0x521   :  { %v432_v6 = vadd.f32 %v3618_v63, %v431_v3  ;;  %v504_v3 = vld [vmem:[%s5054_s2 + $0x20] sm:$0xff] }
 0x523   :  { %v460_v10 = vadd.f32 %v457_v8, %v432_v6 }
 0x525   :  { %3658 = vtanh.f32 %v460_v10  ;;  %v3494_v16 = vmul.f32 -1.442695, %v460_v10 }
 0x526   :  { %v367_v12 = vpop.f32.mrf.mxu3 }
 0x527   :  { %v370_v13 = vadd.f32 %v367_v12, %v339_v11  ;;  %v552_v11 = vld [vmem:[%s5053_s1] sm:$0xf] }
 0x528   :  { %3497 = vmatpush.msk.msrb.mxu0 %vm28_vm0, %v552_v11  ;;  %v550_v12 = vld [vmem:[%s5052_s0 + $0x3] sm:$0x1] }
 0x529   :  { %3660 = vtanh.f32 %v370_v13  ;;  %v3491_v17 = vmul.f32 -1.442695, %v370_v13  ;;  %v551_v13 = vld [vmem:[%s5052_s0 + $0xb] sm:$0x1] }
 0x52a   :  { %3662 = vpow2.f32 %v3494_v16 }
 0x52b   :  { %v3659_v14 = vpop.eup %3658  ;;  %3664 = vpow2.f32 %v3491_v17 }
 0x52c   :  { %483 = vrot.lane.b32.xlu0 %v3659_v14, %s3947_s28  ;;  %v557_v14 = vrot.slane %v551_v13, 7 }
 0x52f   :  { %v3661_v15 = vpop.eup %3660 }
 0x530   :  { %393 = vrot.lane.b32.xlu1 %v3661_v15, %s3947_s28  ;;  %v3663_v18 = vpop.eup %3662  ;;  %v558_v15 = vsel %vm23_vm1, %v557_v14, %v550_v12 }
 0x531   :  { %v464_v19 = vadd.f32 1.0, %v3663_v18  ;;  %v3665_v20 = vpop.eup %3664  ;;  %3498 = vmatmul.msk.f32.vlgmr.msrb.gmra.mxu0 %vm25_vm2, %v558_v15  ;;  %v547_v18 = vpop.f32.mrf.mxu3 }
 0x532   :  { %v374_v21 = vadd.f32 1.0, %v3665_v20 }
 0x533   :  { %3666 = vrcp.f32 %v464_v19  ;;  %v476_v31 = vand.u32 2147483648, %v464_v19  ;;  %vm470_vm5 = vweird.f32 %v464_v19  ;;  %v474_v32 = vand.u32 2147483647, %v464_v19 }
 0x534   :  { %3668 = vrcp.f32 %v374_v21  ;;  %v386_v43 = vand.u32 2147483648, %v374_v21  ;;  %vm380_vm10 = vweird.f32 %v374_v21  ;;  %v384_v48 = vand.u32 2147483647, %v374_v21 }
 0x535   :  { %v477_v38 = vor.u32 1.1754944e-38, %v476_v31  ;;  %vm475_vm9 = vcmp.eq.f32.partialorder %v474_v32, 8.507059e+37 }
 0x536   :  { %v387_v33 = vor.u32 1.1754944e-38, %v386_v43  ;;  %vm385_vm12 = vcmp.eq.f32.partialorder %v384_v48, 8.507059e+37 }
 0x539   :  { %v3667_v22 = vpop.eup %3666 }
 0x53a   :  { %v466_v23 = vmul.f32 %v3667_v22, %v464_v19  ;;  %v3669_v24 = vpop.eup %3668  ;;  %vm471_vm4 = vweird.f32 %v3667_v22 }
 0x53b   :  { %v376_v26 = vmul.f32 %v3669_v24, %v374_v21  ;;  %vm472_vm6 = vmor %vm470_vm5, %vm471_vm4  ;;  %vm381_vm8 = vweird.f32 %v3669_v24  ;;  %v3620_v21 = vld [vmem:[%s5053_s1 + $0x28] ss:$0 sm:$0xff] }
 0x53c   :  { %v467_v25 = vsub.f32 1.0, %v466_v23  ;;  %vm382_vm11 = vmor %vm380_vm10, %vm381_vm8 }
 0x53d   :  { %v377_v28 = vsub.f32 1.0, %v376_v26 }
 0x53e   :  { %v468_v27 = vmul.f32 %v3667_v22, %v467_v25 }
 0x53f   :  { %v378_v30 = vmul.f32 %v3669_v24, %v377_v28 }
 0x540   :  { %v469_v29 = vadd.f32 %v3667_v22, %v468_v27 }
 0x541   :  { %v379_v36 = vadd.f32 %v3669_v24, %v378_v30 }
 0x542   :  { %v473_v34 = vsel %vm472_vm6, %v3667_v22, %v469_v29 }
 0x543   :  { %v478_v50 = vsel %vm475_vm9, %v477_v38, %v473_v34  ;;  %v383_v52 = vsel %vm382_vm11, %v3669_v24, %v379_v36 }
 0x544   :  { %v388_v54 = vsel %vm385_vm12, %v387_v33, %v383_v52  ;;  %v481_v56 = vmul.f32 %v478_v50, %v4116_v35  ;;  %v507_v35 = vld [vmem:[%s5054_s2 + $0x38] sm:$0xff] }
 0x545   :  { %v391_v60 = vmul.f32 %v388_v54, %v4120_v47  ;;  %522 = vmatpush.msra.mxu1 %v507_v35  ;;  %v505_v47 = vld [vmem:[%s5054_s2 + $0x28] sm:$0xff] }
 0x547   :  { %523 = vmatpush.msra.mxu1 %v506_v2 }
 0x549   :  { %524 = vmatpush.msra.mxu1 %v505_v47 }
 0x54b   :  { %525 = vmatpush.msra.mxu1 %v504_v3 }
 0x54d   :  { %669 = vmatpush.msrb.mxu1 %v4056_v40 }
 0x54f   :  { %670 = vmatpush.msrb.mxu1 %v4067_v42 }
 0x551   :  { %671 = vmatpush.msrb.mxu1 %v4074_v44 }
 0x553   :  { %672 = vmatpush.msrb.mxu1 %v4087_v46 }
 0x59e   :  { %v484_v49 = vpop.permute.xlu0 %483 }
 0x59f   :  { %v486_v51 = vmul.f32 %v484_v49, %v478_v50 }
 0x5a1   :  { %488 = vrot.lane.b32.xlu2 %v486_v51, %s3948_s29 }
 0x5a2   :  { %v394_v53 = vpop.permute.xlu1 %393 }
 0x5a3   :  { %v396_v55 = vmul.f32 %v394_v53, %v388_v54 }
 0x5a5   :  { %398 = vrot.lane.b32.xlu0 %v396_v55, %s3948_s29 }
 0x5fb   :  { %v489_v57 = vpop.permute.xlu2 %488 }
 0x5fc   :  { %v4175_v58 = vadd.f32 %v489_v57, %v481_v56 }
 0x5fe   :  { %3670 = vtanh.f32 %v4175_v58 }
 0x604   :  { %v3671_v59 = vpop.eup %3670 }
 0x605   :  { %494 = vrot.lane.b32.xlu1 %v3671_v59, %s3947_s28 }
 0x617   :  { %v399_v61 = vpop.permute.xlu0 %398 }
 0x618   :  { %v4180_v62 = vadd.f32 %v399_v61, %v391_v60 }
 0x61a   :  { %3672 = vtanh.f32 %v4180_v62 }
 0x620   :  { %v3673_v63 = vpop.eup %3672 }
 0x621   :  { %404 = vrot.lane.b32.xlu2 %v3673_v63, %s3947_s28 }
 0x677   :  { %v495_v4 = vpop.permute.xlu1 %494 }
 0x678   :  { %v497_v6 = vmul.f32 %v495_v4, %v478_v50 }
 0x67a   :  { %499 = vrot.lane.b32.xlu0 %v497_v6, %s3948_s29 }
 0x67b   :  { %v405_v8 = vpop.permute.xlu2 %404 }
 0x67c   :  { %v407_v10 = vmul.f32 %v405_v8, %v388_v54 }
 0x67e   :  { %589 = vrot.lane.b32.xlu1 %v407_v10, %s3948_s29 }
 0x6ec   :  { %v500_v16 = vpop.permute.xlu0 %499 }
 0x6ed   :  { %503 = vst.msk [vmem:[#allocation2 + $0x2] sm:$0x3] %vm301_vm3, %v500_v16  ;;  %3495 = vmatmul.msk.f32.vlgmr.msra.gmra.mxu1 %vm56_vm7, %v500_v16  ;;  %3502 = vmatmul.msk.f32.vlgmr.msrb.gmra.mxu3 %vm56_vm7, %v500_v16 }
 0x6ee   :  { %827 = vmatpush.msra.mxu1 %v3981_v0  ;;  %v581_v0 = vpop.f32.mrf.mxu0 }
 0x6ef   :  { %v582_v22 = vadd.f32 %v3620_v21, %v581_v0 }
 0x6f0   :  { %v590_v17 = vpop.permute.xlu1 %589  ;;  %828 = vmatpush.msra.mxu1 %v3986_v1  ;;  %v3621_v1 = vld [vmem:[%s5053_s1 + $0x70] ss:$0 sm:$0xff] }
 0x6f1   :  { %3499 = vmatmul.msk.f32.vlgmr.msrb.gmra.mxu2 %vm56_vm7, %v590_v17 }
 0x6f2   :  { %829 = vmatpush.msra.mxu1 %v4002_v5 }
 0x6f4   :  { %830 = vmatpush.msra.mxu1 %v4010_v7 }
 0x6f5   :  { %3501 = vmatmul.msk.f32.vlgmr.msrb.gmra.mxu1 %vm56_vm7, %v590_v17 }
 0x76a   :  { %v527_v19 = vpop.f32.mrf.mxu1 }
 0x76b   :  { %v4223_v20 = vadd.f32 %v547_v18, %v527_v19  ;;  %v746_v18 = vld [vmem:[%s5054_s2 + $0x48] sm:$0xff]  ;;  %v745_v19 = vld [vmem:[%s5054_s2 + $0x40] sm:$0xff] }
 0x770   :  { %v698_v24 = vpop.f32.mrf.mxu3 }
 0x772   :  { %v674_v23 = vpop.f32.mrf.mxu1 }
 0x773   :  { %v675_v5 = vadd.f32 %v3621_v1, %v674_v23  ;;  %v774_v23 = vld [vmem:[%s5053_s1] sm:$0xf] }
 0x774   :  { %v610_v7 = vpop.f32.mrf.mxu2  ;;  %3505 = vmatpush.msk.msra.mxu2 %vm28_vm0, %v774_v23 }
 0x775   :  { %v701_v25 = vadd.f32 %v698_v24, %v675_v5  ;;  %v613_v26 = vadd.f32 %v610_v7, %v582_v22  ;;  %v772_v5 = vld [vmem:[%s5052_s0 + $0x4] sm:$0x1]  ;;  %v773_v24 = vld [vmem:[%s5052_s0 + $0xc] sm:$0x1] }
 0x776   :  { %v779_v7 = vrot.slane %v773_v24, 7  ;;  %v4315_v24 = vld [vmem:[%s5053_s1 + $0x18] sm:$0xff] }
 0x777   :  { %3674 = vtanh.f32 %v701_v25  ;;  %v3500_v29 = vmul.f32 -1.442695, %v613_v26  ;;  %v3503_v34 = vmul.f32 -1.442695, %v701_v25 }
 0x778   :  { %3676 = vtanh.f32 %v613_v26  ;;  %v780_v25 = vsel %vm23_vm1, %v779_v7, %v772_v5  ;;  %v4325_v7 = vld [vmem:[%s5053_s1 + $0x10] sm:$0xff] }
 0x779   :  { %3678 = vpow2.f32 %v3500_v29  ;;  %3506 = vmatmul.msk.f32.vlgmr.msra.gmra.mxu2 %vm25_vm2, %v780_v25  ;;  %v4332_v25 = vld [vmem:[%s5053_s1 + $0x8] sm:$0xff] }
 0x77d   :  { %v3675_v27 = vpop.eup %3674 }
 0x77e   :  { %v3677_v28 = vpop.eup %3676  ;;  %724 = vrot.lane.b32.xlu0 %v3675_v27, %s3947_s28 }
 0x77f   :  { %636 = vrot.lane.b32.xlu2 %v3677_v28, %s3947_s28  ;;  %v3679_v30 = vpop.eup %3678 }
 0x780   :  { %v617_v31 = vadd.f32 1.0, %v3679_v30 }
 0x782   :  { %3680 = vrcp.f32 %v617_v31  ;;  %v629_v51 = vand.u32 2147483648, %v617_v31  ;;  %vm623_vm14 = vweird.f32 %v617_v31  ;;  %v627_v52 = vand.u32 2147483647, %v617_v31 }
 0x783   :  { %3682 = vpow2.f32 %v3503_v34 }
 0x784   :  { %v630_v53 = vor.u32 1.1754944e-38, %v629_v51  ;;  %vm628_vm4 = vcmp.eq.f32.partialorder %v627_v52, 8.507059e+37 }
 0x788   :  { %v3681_v32 = vpop.eup %3680 }
 0x789   :  { %v619_v36 = vmul.f32 %v3681_v32, %v617_v31  ;;  %v3683_v43 = vpop.eup %3682  ;;  %vm624_vm13 = vweird.f32 %v3681_v32 }
 0x78a   :  { %v705_v49 = vadd.f32 1.0, %v3683_v43  ;;  %vm625_vm15 = vmor %vm623_vm14, %vm624_vm13 }
 0x78b   :  { %v620_v38 = vsub.f32 1.0, %v619_v36 }
 0x78c   :  { %3684 = vrcp.f32 %v705_v49  ;;  %v717_v35 = vand.u32 2147483648, %v705_v49  ;;  %vm711_vm6 = vweird.f32 %v705_v49  ;;  %v715_v2 = vand.u32 2147483647, %v705_v49 }
 0x78d   :  { %v621_v48 = vmul.f32 %v3681_v32, %v620_v38 }
 0x78e   :  { %v718_v3 = vor.u32 1.1754944e-38, %v717_v35  ;;  %vm716_vm9 = vcmp.eq.f32.partialorder %v715_v2, 8.507059e+37 }
 0x78f   :  { %v622_v50 = vadd.f32 %v3681_v32, %v621_v48 }
 0x791   :  { %v626_v33 = vsel %vm625_vm15, %v3681_v32, %v622_v50 }
 0x792   :  { %v631_v55 = vsel %vm628_vm4, %v630_v53, %v626_v33  ;;  %v3685_v56 = vpop.eup %3684 }
 0x793   :  { %v707_v59 = vmul.f32 %v3685_v56, %v705_v49  ;;  %vm712_vm5 = vweird.f32 %v3685_v56  ;;  %v634_v12 = vmul.f32 %v631_v55, %v4180_v62  ;;  %v747_v62 = vld [vmem:[%s5054_s2 + $0x50] sm:$0xff] }
 0x794   :  { %vm713_vm8 = vmor %vm711_vm6, %vm712_vm5 }
 0x795   :  { %v708_v60 = vsub.f32 1.0, %v707_v59 }
 0x797   :  { %v709_v61 = vmul.f32 %v3685_v56, %v708_v60 }
 0x799   :  { %v710_v63 = vadd.f32 %v3685_v56, %v709_v61 }
 0x79b   :  { %v714_v47 = vsel %vm713_vm8, %v3685_v56, %v710_v63 }
 0x79c   :  { %v719_v6 = vsel %vm716_vm9, %v718_v3, %v714_v47 }
 0x79d   :  { %v722_v10 = vmul.f32 %v719_v6, %v4175_v58  ;;  %v748_v58 = vld [vmem:[%s5054_s2 + $0x58] sm:$0xff] }
 0x79e   :  { %763 = vmatpush.msra.mxu0 %v748_v58 }
 0x7a0   :  { %764 = vmatpush.msra.mxu0 %v747_v62 }
 0x7a2   :  { %765 = vmatpush.msra.mxu0 %v746_v18 }
 0x7a4   :  { %766 = vmatpush.msra.mxu0 %v745_v19 }
 0x7a6   :  { %915 = vmatpush.msrb.mxu0 %v4045_v37 }
 0x7a8   :  { %916 = vmatpush.msrb.mxu0 %v4051_v39 }
 0x7aa   :  { %917 = vmatpush.msrb.mxu0 %v4062_v41 }
 0x7ac   :  { %918 = vmatpush.msrb.mxu0 %v4081_v45 }
 0x7d9   :  { %v637_v54 = vpop.permute.xlu2 %636 }
 0x7da   :  { %v639_v57 = vmul.f32 %v637_v54, %v631_v55 }
 0x7dc   :  { %641 = vrot.lane.b32.xlu1 %v639_v57, %s3948_s29 }
 0x7f0   :  { %v725_v4 = vpop.permute.xlu0 %724 }
 0x7f1   :  { %v727_v8 = vmul.f32 %v725_v4, %v719_v6 }
 0x7f3   :  { %729 = vrot.lane.b32.xlu2 %v727_v8, %s3948_s29 }
 0x84d   :  { %v730_v11 = vpop.permute.xlu2 %729 }
 0x84e   :  { %v4237_v13 = vadd.f32 %v730_v11, %v722_v10  ;;  %v642_v14 = vpop.permute.xlu1 %641 }
 0x84f   :  { %v4239_v15 = vadd.f32 %v642_v14, %v634_v12 }
 0x850   :  { %3686 = vtanh.f32 %v4237_v13 }
 0x851   :  { %3688 = vtanh.f32 %v4239_v15 }
 0x856   :  { %v3687_v16 = vpop.eup %3686 }
 0x857   :  { %v3689_v17 = vpop.eup %3688  ;;  %735 = vrot.lane.b32.xlu1 %v3687_v16, %s3947_s28 }
 0x858   :  { %647 = vrot.lane.b32.xlu0 %v3689_v17, %s3947_s28 }
 0x8c9   :  { %v736_v21 = vpop.permute.xlu1 %735 }
 0x8ca   :  { %v738_v0 = vmul.f32 %v736_v21, %v719_v6  ;;  %v648_v1 = vpop.permute.xlu0 %647 }
 0x8cb   :  { %v650_v22 = vmul.f32 %v648_v1, %v631_v55 }
 0x8cc   :  { %740 = vrot.lane.b32.xlu2 %v738_v0, %s3948_s29 }
 0x8cd   :  { %811 = vrot.lane.b32.xlu0 %v650_v22, %s3948_s29 }
 0x926   :  { %v741_v26 = vpop.permute.xlu2 %740 }
 0x927   :  { %744 = vst.msk [vmem:[#allocation2 + $0x4] sm:$0x3] %vm301_vm3, %v741_v26  ;;  %3504 = vmatmul.msk.f32.vlgmr.msra.gmra.mxu0 %vm56_vm7, %v741_v26 }
 0x928   :  { %1113 = vmatpush.msra.mxu0 %v4056_v40  ;;  %v3622_v40 = vld [vmem:[%s5053_s1 + $0x28] ss:$0 sm:$0xff] }
 0x92a   :  { %1114 = vmatpush.msra.mxu0 %v4067_v42  ;;  %v803_v42 = vpop.f32.mrf.mxu2 }
 0x92b   :  { %v804_v30 = vadd.f32 %v3622_v40, %v803_v42  ;;  %v994_v42 = vld [vmem:[%s5052_s0 + $0x5] sm:$0x1] }
 0x92c   :  { %1115 = vmatpush.msra.mxu0 %v4074_v44 }
 0x92e   :  { %1116 = vmatpush.msra.mxu0 %v4087_v46  ;;  %v3623_v46 = vld [vmem:[%s5053_s1 + $0x70] ss:$0 sm:$0xff] }
 0x92f   :  { %3510 = vmatmul.msk.f32.vlgmr.msrb.gmra.mxu0 %vm56_vm7, %v741_v26 }
 0x93f   :  { %v812_v27 = vpop.permute.xlu0 %811 }
 0x940   :  { %3507 = vmatmul.msk.f32.vlgmr.msra.gmra.mxu1 %vm56_vm7, %v812_v27  ;;  %3509 = vmatmul.msk.f32.vlgmr.msra.gmra.mxu3 %vm56_vm7, %v812_v27 }
 0x9a4   :  { %v768_v28 = vpop.f32.mrf.mxu0 }
 0x9a5   :  { %v4285_v29 = vadd.f32 %v768_v28, %v4223_v20 }
 0x9ac   :  { %v920_v36 = vpop.f32.mrf.mxu0 }
 0x9bd   :  { %v832_v44 = vpop.f32.mrf.mxu1 }
 0x9be   :  { %v835_v31 = vadd.f32 %v832_v44, %v804_v30  ;;  %v995_v30 = vld [vmem:[%s5052_s0 + $0xd] sm:$0x1]  ;;  %v970_v44 = vld [vmem:[%s5054_s2 + $0x78] sm:$0xff] }
 0x9bf   :  { %985 = vmatpush.msrb.mxu2 %v970_v44 }
 0x9c0   :  { %3690 = vtanh.f32 %v835_v31  ;;  %v3508_v48 = vmul.f32 -1.442695, %v835_v31  ;;  %v1001_v31 = vrot.slane %v995_v30, 7 }
 0x9c3   :  { %v896_v32 = vpop.f32.mrf.mxu3 }
 0x9c4   :  { %v897_v34 = vadd.f32 %v3623_v46, %v896_v32  ;;  %v969_v46 = vld [vmem:[%s5054_s2 + $0x70] sm:$0xff]  ;;  %v968_v32 = vld [vmem:[%s5054_s2 + $0x68] sm:$0xff] }
 0x9c5   :  { %986 = vmatpush.msrb.mxu2 %v969_v46 }
 0x9c6   :  { %v3691_v38 = vpop.eup %3690  ;;  %v923_v43 = vadd.f32 %v920_v36, %v897_v34  ;;  %v1002_v34 = vsel %vm23_vm1, %v1001_v31, %v994_v42  ;;  %v967_v36 = vld [vmem:[%s5054_s2 + $0x60] sm:$0xff] }
 0x9c7   :  { %858 = vrot.lane.b32.xlu2 %v3691_v38, %s3947_s28  ;;  %987 = vmatpush.msrb.mxu2 %v968_v32 }
 0x9c8   :  { %3692 = vtanh.f32 %v923_v43  ;;  %v3511_v53 = vmul.f32 -1.442695, %v923_v43 }
 0x9c9   :  { %3694 = vpow2.f32 %v3508_v48  ;;  %988 = vmatpush.msrb.mxu2 %v967_v36  ;;  %v1217_v36 = vld [vmem:[%s5052_s0 + $0xe] sm:$0x1] }
 0x9cb   :  { %1137 = vmatpush.msra.mxu2 %v4045_v37  ;;  %v3625_v37 = vld [vmem:[%s5053_s1 + $0x28] ss:$0 sm:$0xff] }
 0x9cd   :  { %1138 = vmatpush.msra.mxu2 %v4051_v39 }
 0x9ce   :  { %v3693_v20 = vpop.eup %3692 }
 0x9cf   :  { %946 = vrot.lane.b32.xlu1 %v3693_v20, %s3947_s28  ;;  %v3695_v49 = vpop.eup %3694  ;;  %1139 = vmatpush.msra.mxu2 %v4062_v41 }
 0x9d0   :  { %v839_v50 = vadd.f32 1.0, %v3695_v49 }
 0x9d1   :  { %1140 = vmatpush.msra.mxu2 %v4081_v45 }
 0x9d2   :  { %3696 = vrcp.f32 %v839_v50  ;;  %v851_v56 = vand.u32 2147483648, %v839_v50  ;;  %vm845_vm11 = vweird.f32 %v839_v50  ;;  %v849_v57 = vand.u32 2147483647, %v839_v50 }
 0x9d3   :  { %3698 = vpow2.f32 %v3511_v53 }
 0x9d4   :  { %v852_v61 = vor.u32 1.1754944e-38, %v851_v56  ;;  %vm850_vm13 = vcmp.eq.f32.partialorder %v849_v57, 8.507059e+37 }
 0x9d8   :  { %v3697_v51 = vpop.eup %3696 }
 0x9d9   :  { %v841_v52 = vmul.f32 %v3697_v51, %v839_v50  ;;  %vm846_vm10 = vweird.f32 %v3697_v51  ;;  %v3699_v59 = vpop.eup %3698 }
 0x9da   :  { %vm847_vm12 = vmor %vm845_vm11, %vm846_vm10  ;;  %v927_v63 = vadd.f32 1.0, %v3699_v59 }
 0x9db   :  { %v842_v33 = vsub.f32 1.0, %v841_v52 }
 0x9dc   :  { %3700 = vrcp.f32 %v927_v63  ;;  %v939_v11 = vand.u32 2147483648, %v927_v63  ;;  %vm933_vm15 = vweird.f32 %v927_v63  ;;  %v937_v12 = vand.u32 2147483647, %v927_v63 }
 0x9dd   :  { %v843_v54 = vmul.f32 %v3697_v51, %v842_v33 }
 0x9de   :  { %v940_v16 = vor.u32 1.1754944e-38, %v939_v11  ;;  %vm938_vm5 = vcmp.eq.f32.partialorder %v937_v12, 8.507059e+37 }
 0x9df   :  { %v844_v55 = vadd.f32 %v3697_v51, %v843_v54 }
 0x9e1   :  { %v848_v60 = vsel %vm847_vm12, %v3697_v51, %v844_v55  ;;  %v3624_v51 = vld [vmem:[%s5053_s1 + $0x70] ss:$0 sm:$0xff] }
 0x9e2   :  { %v853_v2 = vsel %vm850_vm13, %v852_v61, %v848_v60  ;;  %v3701_v3 = vpop.eup %3700 }
 0x9e3   :  { %v929_v4 = vmul.f32 %v3701_v3, %v927_v63  ;;  %vm934_vm14 = vweird.f32 %v3701_v3  ;;  %v856_v18 = vmul.f32 %v853_v2, %v4239_v15  ;;  %v4310_v15 = vld [vmem:[%s5053_s1 + $0x20] sm:$0xff] }
 0x9e4   :  { %vm935_vm4 = vmor %vm933_vm15, %vm934_vm14  ;;  %1049 = vmatpush.msrb.mxu3 %v4310_v15  ;;  %1271 = vmatpush.msrb.mxu0 %v4310_v15 }
 0x9e5   :  { %v930_v6 = vsub.f32 1.0, %v929_v4 }
 0x9e6   :  { %1050 = vmatpush.msrb.mxu3 %v4315_v24  ;;  %1272 = vmatpush.msrb.mxu0 %v4315_v24 }
 0x9e7   :  { %v931_v8 = vmul.f32 %v3701_v3, %v930_v6 }
 0x9e8   :  { %1051 = vmatpush.msrb.mxu3 %v4325_v7  ;;  %1273 = vmatpush.msrb.mxu0 %v4325_v7 }
 0x9e9   :  { %v932_v10 = vadd.f32 %v3701_v3, %v931_v8 }
 0x9ea   :  { %1052 = vmatpush.msrb.mxu3 %v4332_v25  ;;  %1274 = vmatpush.msrb.mxu0 %v4332_v25 }
 0x9eb   :  { %v936_v14 = vsel %vm935_vm4, %v3701_v3, %v932_v10 }
 0x9ec   :  { %v941_v58 = vsel %vm938_vm5, %v940_v16, %v936_v14 }
 0x9ed   :  { %v944_v1 = vmul.f32 %v941_v58, %v4237_v13  ;;  %v996_v13 = vld [vmem:[%s5053_s1] sm:$0xf] }
 0x9ee   :  { %3513 = vmatpush.msk.msrb.mxu1 %vm28_vm0, %v996_v13 }
 0x9ef   :  { %3514 = vmatmul.msk.f32.vlgmr.msrb.gmra.mxu1 %vm25_vm2, %v1002_v34  ;;  %v1218_v34 = vld [vmem:[%s5053_s1] sm:$0xf] }
 0x9f0   :  { %3521 = vmatpush.msk.msra.mxu3 %vm28_vm0, %v1218_v34 }
 0xa21   :  { %v859_v35 = vpop.permute.xlu2 %858 }
 0xa22   :  { %v861_v47 = vmul.f32 %v859_v35, %v853_v2 }
 0xa24   :  { %863 = vrot.lane.b32.xlu1 %v861_v47, %s3948_s29 }
 0xa41   :  { %v947_v17 = vpop.permute.xlu1 %946 }
 0xa42   :  { %v949_v62 = vmul.f32 %v947_v17, %v941_v58 }
 0xa44   :  { %951 = vrot.lane.b32.xlu0 %v949_v62, %s3948_s29 }
 0xa6c   :  { %v1025_v39 = vpop.f32.mrf.mxu1 }
 0xa6d   :  { %v1026_v41 = vadd.f32 %v3625_v37, %v1025_v39  ;;  %v1319_v37 = vld [vmem:[%s5053_s1 + $0x40] sm:$0xff] }
 0xa96   :  { %v864_v19 = vpop.permute.xlu1 %863 }
 0xa97   :  { %v4298_v21 = vadd.f32 %v864_v19, %v856_v18 }
 0xa99   :  { %3702 = vtanh.f32 %v4298_v21 }
 0xa9f   :  { %v3703_v0 = vpop.eup %3702 }
 0xaa0   :  { %869 = vrot.lane.b32.xlu0 %v3703_v0, %s3947_s28 }
 0xab6   :  { %v952_v22 = vpop.permute.xlu0 %951 }
 0xab7   :  { %v4303_v23 = vadd.f32 %v952_v22, %v944_v1 }
 0xab9   :  { %3704 = vtanh.f32 %v4303_v23 }
 0xabf   :  { %v3705_v5 = vpop.eup %3704 }
 0xac0   :  { %957 = vrot.lane.b32.xlu2 %v3705_v5, %s3947_s28 }
 0xb12   :  { %v870_v26 = vpop.permute.xlu0 %869 }
 0xb13   :  { %v872_v27 = vmul.f32 %v870_v26, %v853_v2 }
 0xb15   :  { %1033 = vrot.lane.b32.xlu2 %v872_v27, %s3948_s29 }
 0xb1a   :  { %v958_v28 = vpop.permute.xlu2 %957 }
 0xb1b   :  { %v960_v40 = vmul.f32 %v958_v28, %v941_v58 }
 0xb1d   :  { %962 = vrot.lane.b32.xlu1 %v960_v40, %s3948_s29 }
 0xb6f   :  { %v1034_v38 = vpop.permute.xlu2 %1033 }
 0xb70   :  { %3515 = vmatmul.msk.f32.vlgmr.msrb.gmra.mxu3 %vm56_vm7, %v1034_v38  ;;  %3517 = vmatmul.msk.f32.vlgmr.msra.gmra.mxu0 %vm56_vm7, %v1034_v38  ;;  %v1223_v38 = vrot.slane %v1217_v36, 7 }
 0xb8f   :  { %v963_v43 = vpop.permute.xlu1 %962 }
 0xb90   :  { %966 = vst.msk [vmem:[#allocation2 + $0x6] sm:$0x3] %vm301_vm3, %v963_v43  ;;  %3512 = vmatmul.msk.f32.vlgmr.msrb.gmra.mxu2 %vm56_vm7, %v963_v43 }
 0xb98   :  { %3518 = vmatmul.msk.f32.vlgmr.msra.gmra.mxu2 %vm56_vm7, %v963_v43  ;;  %v1320_v43 = vld [vmem:[%s5053_s1 + $0x48] sm:$0xff] }
 0xb99   :  { %1335 = vmatpush.msrb.mxu2 %v1320_v43 }
 0xb9b   :  { %1336 = vmatpush.msrb.mxu2 %v1319_v37 }
 0xbed   :  { %v1118_v52 = vpop.f32.mrf.mxu0 }
 0xbee   :  { %v1119_v33 = vadd.f32 %v3624_v51, %v1118_v52  ;;  %v1191_v51 = vld [vmem:[%s5054_s2 + $0x90] sm:$0xff]  ;;  %v4445_v52 = vld [vmem:[%s5053_s1 + $0x60] sm:$0xff] }
 0xbf3   :  { %v1054_v20 = vpop.f32.mrf.mxu3 }
 0xbf4   :  { %v1057_v45 = vadd.f32 %v1054_v20, %v1026_v41  ;;  %v1318_v41 = vld [vmem:[%s5053_s1 + $0x38] sm:$0xff]  ;;  %v1317_v20 = vld [vmem:[%s5053_s1 + $0x30] sm:$0xff] }
 0xbf5   :  { %1337 = vmatpush.msrb.mxu2 %v1318_v41 }
 0xbf6   :  { %3706 = vtanh.f32 %v1057_v45  ;;  %v3516_v56 = vmul.f32 -1.442695, %v1057_v45 }
 0xbf7   :  { %1338 = vmatpush.msrb.mxu2 %v1317_v20 }
 0xbf9   :  { %1493 = vmatpush.msra.mxu2 %v4310_v15  ;;  %v1190_v15 = vld [vmem:[%s5054_s2 + $0x88] sm:$0xff] }
 0xbfb   :  { %1494 = vmatpush.msra.mxu2 %v4315_v24  ;;  %v1189_v24 = vld [vmem:[%s5054_s2 + $0x80] sm:$0xff] }
 0xbfc   :  { %v3707_v48 = vpop.eup %3706 }
 0xbfd   :  { %1080 = vrot.lane.b32.xlu0 %v3707_v48, %s3947_s28  ;;  %1495 = vmatpush.msra.mxu2 %v4325_v7 }
 0xbff   :  { %1496 = vmatpush.msra.mxu2 %v4332_v25  ;;  %v4440_v25 = vld [vmem:[%s5053_s1 + $0x68] sm:$0xff] }
 0xc13   :  { %v990_v49 = vpop.f32.mrf.mxu2 }
 0xc14   :  { %v4375_v50 = vadd.f32 %v990_v49, %v4285_v29  ;;  %v1192_v49 = vld [vmem:[%s5054_s2 + $0x98] sm:$0xff] }
 0xc15   :  { %1207 = vmatpush.msra.mxu1 %v1192_v49 }
 0xc17   :  { %1208 = vmatpush.msra.mxu1 %v1191_v51 }
 0xc19   :  { %1209 = vmatpush.msra.mxu1 %v1190_v15  ;;  %v1440_v15 = vld [vmem:[%s5053_s1] sm:$0xf] }
 0xc1a   :  { %3529 = vmatpush.msk.msra.mxu0 %vm28_vm0, %v1440_v15 }
 0xc1b   :  { %v1142_v53 = vpop.f32.mrf.mxu2  ;;  %1210 = vmatpush.msra.mxu1 %v1189_v24 }
 0xc1c   :  { %v1145_v54 = vadd.f32 %v1142_v53, %v1119_v33  ;;  %v4451_v33 = vld [vmem:[%s5053_s1 + $0x58] sm:$0xff]  ;;  %v4457_v53 = vld [vmem:[%s5053_s1 + $0x50] sm:$0xff] }
 0xc1d   :  { %1359 = vmatpush.msrb.mxu1 %v4440_v25 }
 0xc1e   :  { %3708 = vtanh.f32 %v1145_v54  ;;  %v3519_v47 = vmul.f32 -1.442695, %v1145_v54 }
 0xc1f   :  { %3710 = vpow2.f32 %v3516_v56  ;;  %1360 = vmatpush.msrb.mxu1 %v4445_v52 }
 0xc21   :  { %1361 = vmatpush.msrb.mxu1 %v4451_v33 }
 0xc23   :  { %1362 = vmatpush.msrb.mxu1 %v4457_v53 }
 0xc24   :  { %v3709_v55 = vpop.eup %3708 }
 0xc25   :  { %1168 = vrot.lane.b32.xlu1 %v3709_v55, %s3947_s28  ;;  %v3711_v57 = vpop.eup %3710  ;;  %v3626_v55 = vld [vmem:[%s5053_s1 + $0x28] ss:$0 sm:$0xff] }
 0xc26   :  { %v1061_v59 = vadd.f32 1.0, %v3711_v57 }
 0xc28   :  { %3712 = vrcp.f32 %v1061_v59  ;;  %v1073_v2 = vand.u32 2147483648, %v1061_v59  ;;  %vm1067_vm8 = vweird.f32 %v1061_v59  ;;  %v1071_v3 = vand.u32 2147483647, %v1061_v59 }
 0xc29   :  { %3714 = vpow2.f32 %v3519_v47 }
 0xc2a   :  { %v1074_v6 = vor.u32 1.1754944e-38, %v1073_v2  ;;  %vm1072_vm10 = vcmp.eq.f32.partialorder %v1071_v3, 8.507059e+37 }
 0xc2e   :  { %v3713_v60 = vpop.eup %3712 }
 0xc2f   :  { %v1063_v29 = vmul.f32 %v3713_v60, %v1061_v59  ;;  %vm1068_vm6 = vweird.f32 %v3713_v60  ;;  %v3715_v12 = vpop.eup %3714 }
 0xc30   :  { %vm1069_vm9 = vmor %vm1067_vm8, %vm1068_vm6  ;;  %v1149_v14 = vadd.f32 1.0, %v3715_v12 }
 0xc31   :  { %v1064_v61 = vsub.f32 1.0, %v1063_v29 }
 0xc32   :  { %3716 = vrcp.f32 %v1149_v14  ;;  %v1161_v19 = vand.u32 2147483648, %v1149_v14  ;;  %vm1155_vm12 = vweird.f32 %v1149_v14  ;;  %v1159_v0 = vand.u32 2147483647, %v1149_v14 }
 0xc33   :  { %v1065_v63 = vmul.f32 %v3713_v60, %v1064_v61 }
 0xc34   :  { %v1162_v22 = vor.u32 1.1754944e-38, %v1161_v19  ;;  %vm1160_vm14 = vcmp.eq.f32.partialorder %v1159_v0, 8.507059e+37 }
 0xc35   :  { %v1066_v35 = vadd.f32 %v3713_v60, %v1065_v63 }
 0xc37   :  { %v1070_v4 = vsel %vm1069_vm9, %v3713_v60, %v1066_v35  ;;  %v3627_v35 = vld [vmem:[%s5053_s1 + $0x70] ss:$0 sm:$0xff] }
 0xc38   :  { %v1075_v10 = vsel %vm1072_vm10, %v1074_v6, %v1070_v4  ;;  %v3717_v16 = vpop.eup %3716 }
 0xc39   :  { %v1151_v17 = vmul.f32 %v3717_v16, %v1149_v14  ;;  %vm1156_vm11 = vweird.f32 %v3717_v16  ;;  %v1078_v27 = vmul.f32 %v1075_v10, %v4298_v21 }
 0xc3a   :  { %vm1157_vm13 = vmor %vm1155_vm12, %vm1156_vm11 }
 0xc3b   :  { %v1152_v58 = vsub.f32 1.0, %v1151_v17 }
 0xc3d   :  { %v1153_v62 = vmul.f32 %v3717_v16, %v1152_v58 }
 0xc3f   :  { %v1154_v18 = vadd.f32 %v3717_v16, %v1153_v62 }
 0xc41   :  { %v1158_v1 = vsel %vm1157_vm13, %v3717_v16, %v1154_v18 }
 0xc42   :  { %v1163_v13 = vsel %vm1160_vm14, %v1162_v22, %v1158_v1 }
 0xc43   :  { %v1166_v30 = vmul.f32 %v1163_v13, %v4303_v23  ;;  %v1216_v23 = vld [vmem:[%s5052_s0 + $0x6] sm:$0x1] }
 0xc44   :  { %v1224_v39 = vsel %vm23_vm1, %v1223_v38, %v1216_v23 }
 0xc45   :  { %3522 = vmatmul.msk.f32.vlgmr.msra.gmra.mxu3 %vm25_vm2, %v1224_v39 }
 0xc6f   :  { %v1081_v8 = vpop.permute.xlu0 %1080 }
 0xc70   :  { %v1083_v11 = vmul.f32 %v1081_v8, %v1075_v10 }
 0xc72   :  { %1085 = vrot.lane.b32.xlu2 %v1083_v11, %s3948_s29 }
 0xc97   :  { %v1169_v5 = vpop.permute.xlu1 %1168 }
 0xc98   :  { %v1171_v26 = vmul.f32 %v1169_v5, %v1163_v13 }
 0xc9a   :  { %1173 = vrot.lane.b32.xlu0 %v1171_v26, %s3948_s29 }
 0xcc8   :  { %v1247_v56 = vpop.f32.mrf.mxu3 }
 0xcc9   :  { %v1248_v57 = vadd.f32 %v3626_v55, %v1247_v56  ;;  %v1414_v55 = vld [vmem:[%s5054_s2 + $0xb8] sm:$0xff] }
 0xcca   :  { %1429 = vmatpush.msrb.mxu3 %v1414_v55 }
 0xccc   :  { %v1086_v28 = vpop.permute.xlu2 %1085 }
 0xccd   :  { %v4384_v40 = vadd.f32 %v1086_v28, %v1078_v27 }
 0xccf   :  { %3718 = vtanh.f32 %v4384_v40 }
 0xcd5   :  { %v3719_v42 = vpop.eup %3718 }
 0xcd6   :  { %1091 = vrot.lane.b32.xlu1 %v3719_v42, %s3947_s28 }
 0xd0c   :  { %v1174_v44 = vpop.permute.xlu0 %1173 }
 0xd0d   :  { %v4389_v31 = vadd.f32 %v1174_v44, %v1166_v30 }
 0xd0f   :  { %3720 = vtanh.f32 %v4389_v31 }
 0xd15   :  { %v3721_v46 = vpop.eup %3720 }
 0xd16   :  { %1179 = vrot.lane.b32.xlu2 %v3721_v46, %s3947_s28 }
 0xd48   :  { %v1092_v32 = vpop.permute.xlu1 %1091 }
 0xd49   :  { %v1094_v21 = vmul.f32 %v1092_v32, %v1075_v10 }
 0xd4b   :  { %1255 = vrot.lane.b32.xlu1 %v1094_v21, %s3948_s29 }
 0xd70   :  { %v1180_v45 = vpop.permute.xlu2 %1179 }
 0xd71   :  { %v1182_v48 = vmul.f32 %v1180_v45, %v1163_v13 }
 0xd73   :  { %1184 = vrot.lane.b32.xlu0 %v1182_v48, %s3948_s29 }
 0xdbd   :  { %v1256_v7 = vpop.permute.xlu1 %1255 }
 0xdbe   :  { %3523 = vmatmul.msk.f32.vlgmr.msrb.gmra.mxu0 %vm56_vm7, %v1256_v7  ;;  %3525 = vmatmul.msk.f32.vlgmr.msrb.gmra.mxu2 %vm56_vm7, %v1256_v7  ;;  %v1438_v7 = vld [vmem:[%s5052_s0 + $0x7] sm:$0x1] }
 0xdbf   :  { %1683 = vmatpush.msrb.mxu2 %v1320_v43 }
 0xdc1   :  { %1684 = vmatpush.msrb.mxu2 %v1319_v37 }
 0xdc3   :  { %1685 = vmatpush.msrb.mxu2 %v1318_v41 }
 0xdc5   :  { %1686 = vmatpush.msrb.mxu2 %v1317_v20 }
 0xde5   :  { %v1185_v54 = vpop.permute.xlu0 %1184 }
 0xde6   :  { %1188 = vst.msk [vmem:[#allocation2 + $0x8] sm:$0x3] %vm301_vm3, %v1185_v54  ;;  %3520 = vmatmul.msk.f32.vlgmr.msra.gmra.mxu1 %vm56_vm7, %v1185_v54 }
 0xde7   :  { %1557 = vmatpush.msra.mxu1 %v1320_v43 }
 0xde9   :  { %1558 = vmatpush.msra.mxu1 %v1319_v37 }
 0xdeb   :  { %1559 = vmatpush.msra.mxu1 %v1318_v41 }
 0xded   :  { %1560 = vmatpush.msra.mxu1 %v1317_v20 }
 0xdee   :  { %3526 = vmatmul.msk.f32.vlgmr.msrb.gmra.mxu1 %vm56_vm7, %v1185_v54  ;;  %v1439_v54 = vld [vmem:[%s5052_s0 + $0xf] sm:$0x1] }
 0xdef   :  { %1707 = vmatpush.msrb.mxu1 %v4440_v25  ;;  %v1445_v56 = vrot.slane %v1439_v54, 7 }
 0xdf1   :  { %1708 = vmatpush.msrb.mxu1 %v4445_v52 }
 0xdf3   :  { %1709 = vmatpush.msrb.mxu1 %v4451_v33 }
 0xdf5   :  { %1710 = vmatpush.msrb.mxu1 %v4457_v53 }
 0xe3b   :  { %v1276_v59 = vpop.f32.mrf.mxu0 }
 0xe3c   :  { %v1279_v60 = vadd.f32 %v1276_v59, %v1248_v57  ;;  %v1413_v57 = vld [vmem:[%s5054_s2 + $0xb0] sm:$0xff]  ;;  %v1412_v59 = vld [vmem:[%s5054_s2 + $0xa8] sm:$0xff] }
 0xe3d   :  { %1430 = vmatpush.msrb.mxu3 %v1413_v57  ;;  %v1635_v57 = vld [vmem:[%s5054_s2 + $0xd0] sm:$0xff] }
 0xe3e   :  { %3722 = vtanh.f32 %v1279_v60  ;;  %v3524_v6 = vmul.f32 -1.442695, %v1279_v60  ;;  %v1446_v60 = vsel %vm23_vm1, %v1445_v56, %v1438_v7 }
 0xe3f   :  { %3530 = vmatmul.msk.f32.vlgmr.msra.gmra.mxu0 %vm25_vm2, %v1446_v60  ;;  %1431 = vmatpush.msrb.mxu3 %v1412_v59  ;;  %v1634_v59 = vld [vmem:[%s5054_s2 + $0xc8] sm:$0xff]  ;;  %v1633_v60 = vld [vmem:[%s5054_s2 + $0xc0] sm:$0xff] }
 0xe41   :  { %v1340_v2 = vpop.f32.mrf.mxu2 }
 0xe42   :  { %v1341_v47 = vadd.f32 %v3627_v35, %v1340_v2 }
 0xe44   :  { %v3723_v29 = vpop.eup %3722 }
 0xe45   :  { %1302 = vrot.lane.b32.xlu2 %v3723_v29, %s3947_s28  ;;  %v1411_v29 = vld [vmem:[%s5054_s2 + $0xa0] sm:$0xff] }
 0xe46   :  { %1432 = vmatpush.msrb.mxu3 %v1411_v29 }
 0xe48   :  { %1581 = vmatpush.msra.mxu3 %v4440_v25  ;;  %v3629_v25 = vld [vmem:[%s5053_s1 + $0x28] ss:$0 sm:$0xff] }
 0xe4a   :  { %1582 = vmatpush.msra.mxu3 %v4445_v52 }
 0xe4c   :  { %1583 = vmatpush.msra.mxu3 %v4451_v33 }
 0xe4e   :  { %1584 = vmatpush.msra.mxu3 %v4457_v53 }
 0xe63   :  { %v1212_v61 = vpop.f32.mrf.mxu1 }
 0xe64   :  { %v4473_v63 = vadd.f32 %v1212_v61, %v4375_v50 }
 0xe6b   :  { %v1364_v3 = vpop.f32.mrf.mxu1 }
 0xe6c   :  { %v1367_v4 = vadd.f32 %v1364_v3, %v1341_v47 }
 0xe6e   :  { %3724 = vtanh.f32 %v1367_v4  ;;  %v3527_v5 = vmul.f32 -1.442695, %v1367_v4 }
 0xe6f   :  { %3726 = vpow2.f32 %v3524_v6  ;;  %v3628_v6 = vld [vmem:[%s5053_s1 + $0x70] ss:$0 sm:$0xff] }
 0xe74   :  { %v3725_v8 = vpop.eup %3724 }
 0xe75   :  { %1390 = vrot.lane.b32.xlu0 %v3725_v8, %s3947_s28  ;;  %v3727_v10 = vpop.eup %3726 }
 0xe76   :  { %v1283_v11 = vadd.f32 1.0, %v3727_v10 }
 0xe78   :  { %3728 = vrcp.f32 %v1283_v11  ;;  %v1295_v58 = vand.u32 2147483648, %v1283_v11  ;;  %vm1289_vm4 = vweird.f32 %v1283_v11  ;;  %v1293_v62 = vand.u32 2147483647, %v1283_v11 }
 0xe79   :  { %3730 = vpow2.f32 %v3527_v5 }
 0xe7a   :  { %v1296_v19 = vor.u32 1.1754944e-38, %v1295_v58  ;;  %vm1294_vm6 = vcmp.eq.f32.partialorder %v1293_v62, 8.507059e+37 }
 0xe7e   :  { %v3729_v12 = vpop.eup %3728 }
 0xe7f   :  { %v1285_v50 = vmul.f32 %v3729_v12, %v1283_v11  ;;  %vm1290_vm15 = vweird.f32 %v3729_v12  ;;  %v3731_v13 = vpop.eup %3730 }
 0xe80   :  { %vm1291_vm5 = vmor %vm1289_vm4, %vm1290_vm15  ;;  %v1371_v26 = vadd.f32 1.0, %v3731_v13 }
 0xe81   :  { %v1286_v14 = vsub.f32 1.0, %v1285_v50 }
 0xe82   :  { %3732 = vrcp.f32 %v1371_v26  ;;  %v1383_v46 = vand.u32 2147483648, %v1371_v26  ;;  %vm1377_vm9 = vweird.f32 %v1371_v26  ;;  %v1381_v32 = vand.u32 2147483647, %v1371_v26 }
 0xe83   :  { %v1287_v16 = vmul.f32 %v3729_v12, %v1286_v14 }
 0xe84   :  { %v1384_v34 = vor.u32 1.1754944e-38, %v1383_v46  ;;  %vm1382_vm11 = vcmp.eq.f32.partialorder %v1381_v32, 8.507059e+37 }
 0xe85   :  { %v1288_v17 = vadd.f32 %v3729_v12, %v1287_v16 }
 0xe87   :  { %v1292_v18 = vsel %vm1291_vm5, %v3729_v12, %v1288_v17 }
 0xe88   :  { %v1297_v1 = vsel %vm1294_vm6, %v1296_v19, %v1292_v18  ;;  %v3733_v27 = vpop.eup %3732 }
 0xe89   :  { %v1373_v28 = vmul.f32 %v3733_v27, %v1371_v26  ;;  %vm1378_vm8 = vweird.f32 %v3733_v27  ;;  %v1300_v43 = vmul.f32 %v1297_v1, %v4384_v40 }
 0xe8a   :  { %vm1379_vm10 = vmor %vm1377_vm9, %vm1378_vm8 }
 0xe8b   :  { %v1374_v42 = vsub.f32 1.0, %v1373_v28 }
 0xe8d   :  { %v1375_v30 = vmul.f32 %v3733_v27, %v1374_v42 }
 0xe8f   :  { %v1376_v44 = vadd.f32 %v3733_v27, %v1375_v30 }
 0xe91   :  { %v1380_v21 = vsel %vm1379_vm10, %v3733_v27, %v1376_v44 }
 0xe92   :  { %v1385_v36 = vsel %vm1382_vm11, %v1384_v34, %v1380_v21 }
 0xe93   :  { %v1388_v20 = vmul.f32 %v1385_v36, %v4389_v31 }
 0xe9f   :  { %v1303_v0 = vpop.permute.xlu2 %1302 }
 0xea0   :  { %v1305_v22 = vmul.f32 %v1303_v0, %v1297_v1 }
 0xea2   :  { %1307 = vrot.lane.b32.xlu1 %v1305_v22, %s3948_s29 }
 0xebc   :  { %v1469_v52 = vpop.f32.mrf.mxu0 }
 0xebd   :  { %v1470_v33 = vadd.f32 %v3629_v25, %v1469_v52 }
 0xee7   :  { %v1391_v23 = vpop.permute.xlu0 %1390 }
 0xee8   :  { %v1393_v38 = vmul.f32 %v1391_v23, %v1385_v36 }
 0xeea   :  { %1395 = vrot.lane.b32.xlu2 %v1393_v38, %s3948_s29 }
 0xf14   :  { %v1308_v37 = vpop.permute.xlu1 %1307 }
 0xf15   :  { %v4482_v39 = vadd.f32 %v1308_v37, %v1300_v43 }
 0xf17   :  { %3734 = vtanh.f32 %v4482_v39 }
 0xf1d   :  { %v3735_v41 = vpop.eup %3734 }
 0xf1e   :  { %1313 = vrot.lane.b32.xlu0 %v3735_v41, %s3947_s28 }
 0xf44   :  { %v1396_v45 = vpop.permute.xlu2 %1395 }
 0xf45   :  { %v4487_v48 = vadd.f32 %v1396_v45, %v1388_v20 }
 0xf47   :  { %3736 = vtanh.f32 %v4487_v48 }
 0xf4d   :  { %v3737_v49 = vpop.eup %3736 }
 0xf4e   :  { %1401 = vrot.lane.b32.xlu1 %v3737_v49, %s3947_s28 }
 0xf90   :  { %v1314_v51 = vpop.permute.xlu0 %1313 }
 0xf91   :  { %v1316_v40 = vmul.f32 %v1314_v51, %v1297_v1 }
 0xf93   :  { %1477 = vrot.lane.b32.xlu0 %v1316_v40, %s3948_s29 }
 0xfc0   :  { %v1402_v24 = vpop.permute.xlu1 %1401 }
 0xfc1   :  { %v1404_v31 = vmul.f32 %v1402_v24, %v1385_v36 }
 0xfc3   :  { %1406 = vrot.lane.b32.xlu2 %v1404_v31, %s3948_s29 }
0x1005   :  { %v1478_v61 = vpop.permute.xlu0 %1477 }
0x1006   :  { %3531 = vmatmul.msk.f32.vlgmr.msra.gmra.mxu2 %vm56_vm7, %v1478_v61  ;;  %3533 = vmatmul.msk.f32.vlgmr.msra.gmra.mxu1 %vm56_vm7, %v1478_v61 }
0x101d   :  { %v1407_v35 = vpop.permute.xlu2 %1406 }
0x101e   :  { %1410 = vst.msk [vmem:[#allocation2 + $0xa] sm:$0x3] %vm301_vm3, %v1407_v35  ;;  %3528 = vmatmul.msk.f32.vlgmr.msrb.gmra.mxu3 %vm56_vm7, %v1407_v35 }
0x1026   :  { %3534 = vmatmul.msk.f32.vlgmr.msra.gmra.mxu3 %vm56_vm7, %v1407_v35  ;;  %v3630_v35 = vld [vmem:[%s5053_s1 + $0x70] ss:$0 sm:$0xff] }
0x1083   :  { %v1562_v8 = vpop.f32.mrf.mxu1 }
0x1084   :  { %v1563_v10 = vadd.f32 %v3628_v6, %v1562_v8 }
0x1089   :  { %v1498_v2 = vpop.f32.mrf.mxu2 }
0x108a   :  { %v1501_v53 = vadd.f32 %v1498_v2, %v1470_v33 }
0x108c   :  { %3738 = vtanh.f32 %v1501_v53  ;;  %v3532_v14 = vmul.f32 -1.442695, %v1501_v53 }
0x1092   :  { %v3739_v47 = vpop.eup %3738 }
0x1093   :  { %1524 = vrot.lane.b32.xlu1 %v3739_v47, %s3947_s28 }
0x10a1   :  { %v1434_v3 = vpop.f32.mrf.mxu3 }
0x10a2   :  { %v4531_v4 = vadd.f32 %v1434_v3, %v4473_v63 }
0x10a9   :  { %v1586_v11 = vpop.f32.mrf.mxu3 }
0x10aa   :  { %v1589_v12 = vadd.f32 %v1586_v11, %v1563_v10 }
0x10ac   :  { %3740 = vtanh.f32 %v1589_v12  ;;  %v3535_v16 = vmul.f32 -1.442695, %v1589_v12 }
0x10ad   :  { %3742 = vpow2.f32 %v3532_v14 }
0x10ae   :  { %3744 = vpow2.f32 %v3535_v16 }
0x10b2   :  { %v3741_v50 = vpop.eup %3740 }
0x10b3   :  { %1612 = vrot.lane.b32.xlu2 %v3741_v50, %s3947_s28  ;;  %v3743_v17 = vpop.eup %3742 }
0x10b4   :  { %v1505_v58 = vadd.f32 1.0, %v3743_v17  ;;  %v3745_v63 = vpop.eup %3744 }
0x10b5   :  { %v1593_v62 = vadd.f32 1.0, %v3745_v63 }
0x10b6   :  { %3746 = vrcp.f32 %v1505_v58  ;;  %v1517_v27 = vand.u32 2147483648, %v1505_v58  ;;  %vm1511_vm1 = vweird.f32 %v1505_v58  ;;  %v1515_v28 = vand.u32 2147483647, %v1505_v58 }
0x10b7   :  { %3748 = vrcp.f32 %v1593_v62  ;;  %v1605_v23 = vand.u32 2147483648, %v1593_v62  ;;  %vm1599_vm14 = vweird.f32 %v1593_v62  ;;  %v1603_v36 = vand.u32 2147483647, %v1593_v62 }
0x10b8   :  { %v1518_v44 = vor.u32 1.1754944e-38, %v1517_v27  ;;  %vm1516_vm12 = vcmp.eq.f32.partialorder %v1515_v28, 8.507059e+37  ;;  %v1759_v27 = vld [vmem:[%s5054_s2 + $0xe0] sm:$0xff] }
0x10b9   :  { %v1606_v43 = vor.u32 1.1754944e-38, %v1605_v23  ;;  %vm1604_vm4 = vcmp.eq.f32.partialorder %v1603_v36, 8.507059e+37  ;;  %v4598_v23 = vld [vmem:[#allocation2 + $0x2] sm:$0x3]  ;;  %v4602_v36 = vld [vmem:[#allocation2 + $0x4] sm:$0x3] }
0x10bc   :  { %v3747_v18 = vpop.eup %3746 }
0x10bd   :  { %v1507_v19 = vmul.f32 %v3747_v18, %v1505_v58  ;;  %v3749_v1 = vpop.eup %3748  ;;  %vm1512_vm0 = vweird.f32 %v3747_v18 }
0x10be   :  { %v1595_v5 = vmul.f32 %v3749_v1, %v1593_v62  ;;  %vm1513_vm2 = vmor %vm1511_vm1, %vm1512_vm0  ;;  %vm1600_vm13 = vweird.f32 %v3749_v1 }
0x10bf   :  { %v1508_v0 = vsub.f32 1.0, %v1507_v19  ;;  %vm1601_vm15 = vmor %vm1599_vm14, %vm1600_vm13 }
0x10c0   :  { %v1596_v26 = vsub.f32 1.0, %v1595_v5  ;;  %v1762_v5 = vld [vmem:[%s5054_s2 + $0xf8] sm:$0xff] }
0x10c1   :  { %v1509_v22 = vmul.f32 %v3747_v18, %v1508_v0  ;;  %1777 = vmatpush.msrb.mxu3 %v1762_v5 }
0x10c2   :  { %v1597_v30 = vmul.f32 %v3749_v1, %v1596_v26  ;;  %v1760_v26 = vld [vmem:[%s5054_s2 + $0xe8] sm:$0xff] }
0x10c3   :  { %v1510_v13 = vadd.f32 %v3747_v18, %v1509_v22 }
0x10c4   :  { %v1598_v34 = vadd.f32 %v3749_v1, %v1597_v30  ;;  %v1898_v30 = vld [vmem:[%s5053_s1 + $0x90] sm:$0xff] }
0x10c5   :  { %v1514_v42 = vsel %vm1513_vm2, %v3747_v18, %v1510_v13  ;;  %v1761_v13 = vld [vmem:[%s5054_s2 + $0xf0] sm:$0xff]  ;;  %1916 = vmatpush.msra.mxu2 %v1898_v30 }
0x10c6   :  { %v1519_v32 = vsel %vm1516_vm12, %v1518_v44, %v1514_v42  ;;  %v1602_v38 = vsel %vm1601_vm15, %v3749_v1, %v1598_v34  ;;  %1778 = vmatpush.msrb.mxu3 %v1761_v13  ;;  %v1897_v44 = vld [vmem:[%s5053_s1 + $0x88] sm:$0xff]  ;;  %v4594_v34 = vld [vmem:[#allocation2] sm:$0x3] }
0x10c7   :  { %v1607_v41 = vsel %vm1604_vm4, %v1606_v43, %v1602_v38  ;;  %v1522_v45 = vmul.f32 %v1519_v32, %v4482_v39  ;;  %1917 = vmatpush.msra.mxu2 %v1897_v44  ;;  %v4606_v38 = vld [vmem:[#allocation2 + $0x6] sm:$0x3]  ;;  %v1789_v43 = vld [vmem:[%s5054_s2 + $0x118] sm:$0xff] }
0x10c8   :  { %v1610_v40 = vmul.f32 %v1607_v41, %v4487_v48  ;;  %v1636_v48 = vld [vmem:[%s5054_s2 + $0xd8] sm:$0xff]  ;;  %1779 = vmatpush.msrb.mxu3 %v1760_v26 }
0x10c9   :  { %1651 = vmatpush.msrb.mxu0 %v1636_v48 }
0x10ca   :  { %1780 = vmatpush.msrb.mxu3 %v1759_v27 }
0x10cb   :  { %1652 = vmatpush.msrb.mxu0 %v1635_v57 }
0x10cc   :  { %2001 = vmatpush.msra.mxu3 %v1898_v30 }
0x10cd   :  { %1653 = vmatpush.msrb.mxu0 %v1634_v59 }
0x10ce   :  { %2002 = vmatpush.msra.mxu3 %v1897_v44 }
0x10cf   :  { %1654 = vmatpush.msrb.mxu0 %v1633_v60  ;;  %v3949_v60 = vmov 4  }
0x10d0   :  { %3611 = vset.pattern.permute.xlu1 %v3949_v60 }
0x10d1   :  { %1805 = vmatpush.msra.mxu0 %v1789_v43 }
0x1105   :  { %v1525_v46 = vpop.permute.xlu1 %1524 }
0x1106   :  { %v1527_v21 = vmul.f32 %v1525_v46, %v1519_v32  ;;  %v1896_v46 = vld [vmem:[%s5053_s1 + $0x80] sm:$0xff] }
0x1107   :  { %2003 = vmatpush.msra.mxu3 %v1896_v46  ;;  %1918 = vmatpush.msra.mxu2 %v1896_v46 }
0x1108   :  { %1529 = vrot.lane.b32.xlu0 %v1527_v21, %s3948_s29 }
0x110d   :  { %v1613_v37 = vpop.permute.xlu2 %1612 }
0x110e   :  { %v1615_v20 = vmul.f32 %v1613_v37, %v1607_v41  ;;  %v1788_v37 = vld [vmem:[%s5054_s2 + $0x110] sm:$0xff] }
0x110f   :  { %1806 = vmatpush.msra.mxu0 %v1788_v37 }
0x1110   :  { %1617 = vrot.lane.b32.xlu1 %v1615_v20, %s3948_s29  ;;  %v4619_v20 = vld [vmem:[#allocation2 + $0x8] sm:$0x3] }
0x117a   :  { %v1530_v49 = vpop.permute.xlu0 %1529 }
0x117b   :  { %v1532_v51 = vadd.f32 %v1530_v49, %v1522_v45  ;;  %v4623_v45 = vld [vmem:[#allocation2 + $0xa] sm:$0x3] }
0x117d   :  { %3750 = vtanh.f32 %v1532_v51 }
0x1182   :  { %v1618_v15 = vpop.permute.xlu1 %1617 }
0x1183   :  { %v3751_v24 = vpop.eup %3750  ;;  %v1620_v31 = vadd.f32 %v1618_v15, %v1610_v40  ;;  %v1786_v40 = vld [vmem:[%s5054_s2 + $0x100] sm:$0xff] }
0x1184   :  { %1535 = vrot.lane.b32.xlu2 %v3751_v24, %s3947_s28 }
0x1185   :  { %3752 = vtanh.f32 %v1620_v31 }
0x118b   :  { %v3753_v7 = vpop.eup %3752 }
0x118c   :  { %1623 = vrot.lane.b32.xlu0 %v3753_v7, %s3947_s28 }
0x11de   :  { %v1536_v54 = vpop.permute.xlu2 %1535 }
0x11df   :  { %v1538_v55 = vmul.f32 %v1536_v54, %v1519_v32  ;;  %v1895_v32 = vld [vmem:[%s5053_s1 + $0x78] sm:$0xff] }
0x11e0   :  { %2004 = vmatpush.msra.mxu3 %v1895_v32  ;;  %1919 = vmatpush.msra.mxu2 %v1895_v32 }
0x11e1   :  { %1667 = vrot.lane.b32.xlu1 %v1538_v55, %s3948_s29 }
0x11fe   :  { %v1624_v56 = vpop.permute.xlu0 %1623 }
0x11ff   :  { %v1626_v39 = vmul.f32 %v1624_v56, %v1607_v41  ;;  %v1787_v41 = vld [vmem:[%s5054_s2 + $0x108] sm:$0xff] }
0x1200   :  { %1807 = vmatpush.msra.mxu0 %v1787_v41 }
0x1201   :  { %1628 = vrot.lane.b32.xlu2 %v1626_v39, %s3948_s29 }
0x1202   :  { %1808 = vmatpush.msra.mxu0 %v1786_v40 }
0x1253   :  { %v1668_v29 = vpop.permute.xlu1 %1667 }
0x1254   :  { %3537 = vmatmul.msk.f32.vlgmr.msrb.gmra.mxu2 %vm56_vm7, %v1668_v29  ;;  %v3951_v29 = vmov 0  }
0x1255   :  { %3607 = vset.pattern.permute.xlu0 %v3951_v29 }
0x125b   :  { %v1629_v61 = vpop.permute.xlu2 %1628 }
0x125c   :  { %1632 = vst.msk [vmem:[#allocation2 + $0xc] sm:$0x3] %vm301_vm3, %v1629_v61  ;;  %3536 = vmatmul.msk.f32.vlgmr.msrb.gmra.mxu0 %vm56_vm7, %v1629_v61  ;;  %3538 = vmatmul.msk.f32.vlgmr.msrb.gmra.mxu1 %vm56_vm7, %v1629_v61 }
0x1263   :  { %v4627_v49 = vld [vmem:[#allocation2 + $0xc] sm:$0x3] }
0x12d7   :  { %v1688_v25 = vpop.f32.mrf.mxu2 }
0x12d8   :  { %v1689_v52 = vadd.f32 %v3630_v35, %v1688_v25 }
0x12d9   :  { %v1712_v33 = vpop.f32.mrf.mxu1  ;;  %v1656_v15 = vpop.f32.mrf.mxu0 }
0x12da   :  { %v1715_v2 = vadd.f32 %v1712_v33, %v1689_v52  ;;  %v1659_v24 = vadd.f32 %v1656_v15, %v4531_v4  ;;  %v3950_v4 = vmov 3  }
0x12db   :  { %3610 = vset.pattern.permute.xlu2 %v3950_v4 }
0x12dc   :  { %3754 = vtanh.f32 %v1715_v2  ;;  %v3539_v47 = vmul.f32 -1.442695, %v1715_v2 }
0x12de   :  { %3756 = vpow2.f32 %v3539_v47 }
0x12e2   :  { %v3755_v53 = vpop.eup %3754 }
0x12e3   :  { %1738 = vrot.lane.b32.xlu0 %v3755_v53, %s3947_s28 }
0x12e4   :  { %v3757_v3 = vpop.eup %3756 }
0x12e5   :  { %v1719_v6 = vadd.f32 1.0, %v3757_v3 }
0x12e7   :  { %3758 = vrcp.f32 %v1719_v6  ;;  %v1731_v14 = vand.u32 2147483648, %v1719_v6  ;;  %vm1725_vm6 = vweird.f32 %v1719_v6  ;;  %v1729_v16 = vand.u32 2147483647, %v1719_v6 }
0x12e9   :  { %v1732_v58 = vor.u32 1.1754944e-38, %v1731_v14  ;;  %vm1730_vm9 = vcmp.eq.f32.partialorder %v1729_v16, 8.507059e+37  ;;  %v3955_v14 = vmov 2   ;;  %v3956_v16 = vmov 5  }
0x12ed   :  { %v3759_v8 = vpop.eup %3758 }
0x12ee   :  { %v1721_v10 = vmul.f32 %v3759_v8, %v1719_v6  ;;  %vm1726_vm5 = vweird.f32 %v3759_v8 }
0x12ef   :  { %vm1727_vm8 = vmor %vm1725_vm6, %vm1726_vm5 }
0x12f0   :  { %v1722_v11 = vsub.f32 1.0, %v1721_v10 }
0x12f2   :  { %v1723_v12 = vmul.f32 %v3759_v8, %v1722_v11  ;;  %v3952_v11 = vmov 7  }
0x12f4   :  { %v1724_v50 = vadd.f32 %v3759_v8, %v1723_v12  ;;  %v3953_v12 = vmov 6  }
0x12f6   :  { %v1728_v17 = vsel %vm1727_vm8, %v3759_v8, %v1724_v50  ;;  %v3954_v50 = vmov 1  }
0x12f7   :  { %v1733_v62 = vsel %vm1730_vm9, %v1732_v58, %v1728_v17  ;;  %v4645_v58 = vld [vmem:[%s5053_s1 + $0xb0] sm:$0xff] }
0x12f8   :  { %v1736_v19 = vmul.f32 %v1733_v62, %v1620_v31  ;;  %1940 = vmatpush.msra.mxu1 %v4645_v58  ;;  %2026 = vmatpush.msrb.mxu0 %v4645_v58 }
0x1355   :  { %v1739_v63 = vpop.permute.xlu0 %1738 }
0x1356   :  { %v1741_v18 = vmul.f32 %v1739_v63, %v1733_v62  ;;  %v4650_v63 = vld [vmem:[%s5053_s1 + $0xa8] sm:$0xff] }
0x1357   :  { %1941 = vmatpush.msra.mxu1 %v4650_v63  ;;  %2027 = vmatpush.msrb.mxu0 %v4650_v63 }
0x1358   :  { %1743 = vrot.lane.b32.xlu1 %v1741_v18, %s3948_s29  ;;  %v4664_v18 = vld [vmem:[%s5053_s1 + $0x98] sm:$0xff] }
0x13ca   :  { %v1744_v0 = vpop.permute.xlu1 %1743 }
0x13cb   :  { %v1746_v1 = vadd.f32 %v1744_v0, %v1736_v19 }
0x13cd   :  { %3760 = vtanh.f32 %v1746_v1 }
0x13d3   :  { %v3761_v22 = vpop.eup %3760 }
0x13d4   :  { %1749 = vrot.lane.b32.xlu2 %v3761_v22, %s3947_s28 }
0x142e   :  { %v1750_v28 = vpop.permute.xlu2 %1749 }
0x142f   :  { %v1752_v42 = vmul.f32 %v1750_v28, %v1733_v62  ;;  %v4657_v62 = vld [vmem:[%s5053_s1 + $0xa0] sm:$0xff] }
0x1430   :  { %1942 = vmatpush.msra.mxu1 %v4657_v62  ;;  %2028 = vmatpush.msrb.mxu0 %v4657_v62 }
0x1431   :  { %1754 = vrot.lane.b32.xlu0 %v1752_v42, %s3948_s29 }
0x1432   :  { %1943 = vmatpush.msra.mxu1 %v4664_v18  ;;  %2029 = vmatpush.msrb.mxu0 %v4664_v18 }
0x1433   :  { %1944 = vmatmul.f32.vlgmr.msra.gmra.mxu1 %v3946_v9 }
0x14a3   :  { %v1755_v21 = vpop.permute.xlu0 %1754 }
0x14a4   :  { %1758 = vst.msk [vmem:[#allocation2 + $0xe] sm:$0x3] %vm301_vm3, %v1755_v21  ;;  %3540 = vmatmul.msk.f32.vlgmr.msrb.gmra.mxu3 %vm56_vm7, %v1755_v21  ;;  %vm1813_vm3 = vcmask 58368  }
0x14a5   :  { %2175 = vmatpush.msrb.mxu3 %v1898_v30 }
0x14a7   :  { %2176 = vmatpush.msrb.mxu3 %v1897_v44 }
0x14a9   :  { %2177 = vmatpush.msrb.mxu3 %v1896_v46 }
0x14ab   :  { %2178 = vmatpush.msrb.mxu3 %v1895_v32  ;;  %v4631_v51 = vld [vmem:[#allocation2 + $0xe] sm:$0x3] }
0x14ac   :  { %3544 = vmatmul.msk.f32.vlgmr.msra.gmra.mxu3 %vm56_vm7, %v4594_v34 }
0x14ad   :  { %2344 = vmatpush.msra.mxu3 %v1898_v30 }
0x14af   :  { %2345 = vmatpush.msra.mxu3 %v1897_v44 }
0x14b1   :  { %2346 = vmatpush.msra.mxu3 %v1896_v46 }
0x14b3   :  { %2347 = vmatpush.msra.mxu3 %v1895_v32 }
0x14b4   :  { %3549 = vmatmul.msk.f32.vlgmr.msrb.gmra.mxu3 %vm56_vm7, %v4598_v23 }
0x14b5   :  { %2513 = vmatpush.msrb.mxu3 %v1898_v30 }
0x14b7   :  { %2514 = vmatpush.msrb.mxu3 %v1897_v44 }
0x14b9   :  { %2515 = vmatpush.msrb.mxu3 %v1896_v46 }
0x14bb   :  { %2516 = vmatpush.msrb.mxu3 %v1895_v32 }
0x14bc   :  { %3555 = vmatmul.msk.f32.vlgmr.msra.gmra.mxu3 %vm56_vm7, %v4602_v36 }
0x14bd   :  { %2682 = vmatpush.msra.mxu3 %v1898_v30 }
0x14bf   :  { %2683 = vmatpush.msra.mxu3 %v1897_v44 }
0x14c1   :  { %2684 = vmatpush.msra.mxu3 %v1896_v46 }
0x14c3   :  { %2685 = vmatpush.msra.mxu3 %v1895_v32 }
0x14c4   :  { %3561 = vmatmul.msk.f32.vlgmr.msrb.gmra.mxu3 %vm56_vm7, %v4606_v38 }
0x14c5   :  { %2851 = vmatpush.msrb.mxu3 %v1898_v30 }
0x14c7   :  { %2852 = vmatpush.msrb.mxu3 %v1897_v44 }
0x14c9   :  { %2853 = vmatpush.msrb.mxu3 %v1896_v46 }
0x14cb   :  { %2854 = vmatpush.msrb.mxu3 %v1895_v32 }
0x14cc   :  { %3567 = vmatmul.msk.f32.vlgmr.msra.gmra.mxu3 %vm56_vm7, %v4619_v20 }
0x14cd   :  { %3020 = vmatpush.msra.mxu3 %v1898_v30 }
0x14cf   :  { %3021 = vmatpush.msra.mxu3 %v1897_v44 }
0x14d1   :  { %3022 = vmatpush.msra.mxu3 %v1896_v46 }
0x14d3   :  { %3023 = vmatpush.msra.mxu3 %v1895_v32 }
0x14d4   :  { %3573 = vmatmul.msk.f32.vlgmr.msrb.gmra.mxu3 %vm56_vm7, %v4623_v45 }
0x14d5   :  { %3189 = vmatpush.msrb.mxu3 %v1898_v30 }
0x14d7   :  { %3190 = vmatpush.msrb.mxu3 %v1897_v44 }
0x14d9   :  { %3191 = vmatpush.msrb.mxu3 %v1896_v46 }
0x14db   :  { %3192 = vmatpush.msrb.mxu3 %v1895_v32 }
0x14dc   :  { %3579 = vmatmul.msk.f32.vlgmr.msra.gmra.mxu3 %vm56_vm7, %v4627_v49 }
0x14e4   :  { %3585 = vmatmul.msk.f32.vlgmr.msrb.gmra.mxu3 %vm56_vm7, %v4631_v51 }
0x1527   :  { %v1782_v31 = vpop.f32.mrf.mxu3 }
0x1528   :  { %v1785_v7 = vadd.f32 %v1782_v31, %v1659_v24 }
0x152a   :  { %3541 = vmatmul.msk.f32.vlgmr.msra.gmra.mxu0 %vm56_vm7, %v1785_v7 }
0x152b   :  { %2200 = vmatpush.msra.mxu0 %v4645_v58 }
0x152d   :  { %2201 = vmatpush.msra.mxu0 %v4650_v63 }
0x152f   :  { %2202 = vmatpush.msra.mxu0 %v4657_v62 }
0x1531   :  { %2203 = vmatpush.msra.mxu0 %v4664_v18 }
0x15a7   :  { %v1810_v54 = vpop.f32.mrf.mxu0 }
0x15a8   :  { %v1814_v55 = vsel %vm1813_vm3, %v1810_v54, -inf }
0x15a9   :  { %1815 = vmax.xlane.f32.xlu1 %v1814_v55 }
0x161c   :  { %v1816_v56 = vpop.xlane.xlu1 %1815 }
0x161d   :  { %v1817_v39 = vsub.f32 %v1810_v54, %v1816_v56 }
0x161f   :  { %v1818_v48 = vmul.f32 1.442695, %v1817_v39 }
0x1621   :  { %3762 = vpow2.f32 %v1818_v48 }
0x1627   :  { %v3763_v57 = vpop.eup %3762 }
0x1628   :  { %v1820_v59 = vsel %vm1813_vm3, %v3763_v57, 0.0 }
0x1629   :  { %1821 = vadd.xlane.f32.xlu2 %v1820_v59 }
0x169c   :  { %v1822_v61 = vpop.xlane.xlu2 %1821 }
0x169d   :  { %3764 = vrcp.f32 %v1822_v61  ;;  %v1834_v33 = vand.u32 2147483648, %v1822_v61  ;;  %v1832_v53 = vand.u32 2147483647, %v1822_v61  ;;  %vm1828_vm11 = vweird.f32 %v1822_v61 }
0x169f   :  { %v1835_v3 = vor.u32 1.1754944e-38, %v1834_v33  ;;  %vm1833_vm1 = vcmp.eq.f32.partialorder %v1832_v53, 8.507059e+37  ;;  %v4699_v53 = vld [vmem:[%s5053_s1 + $0xd8] sm:$0xff] }
0x16a0   :  { %2090 = vmatpush.msrb.mxu2 %v4699_v53  ;;  %3360 = vmatpush.msra.mxu3 %v4699_v53 }
0x16a3   :  { %v3765_v35 = vpop.eup %3764 }
0x16a4   :  { %v1824_v25 = vmul.f32 %v3765_v35, %v1822_v61  ;;  %vm1829_vm10 = vweird.f32 %v3765_v35 }
0x16a5   :  { %vm1830_vm0 = vmor %vm1828_vm11, %vm1829_vm10 }
0x16a6   :  { %v1825_v52 = vsub.f32 1.0, %v1824_v25 }
0x16a8   :  { %v1826_v2 = vmul.f32 %v3765_v35, %v1825_v52 }
0x16aa   :  { %v1827_v47 = vadd.f32 %v3765_v35, %v1826_v2 }
0x16ac   :  { %v1831_v6 = vsel %vm1830_vm0, %v3765_v35, %v1827_v47  ;;  %v4704_v47 = vld [vmem:[%s5053_s1 + $0xd0] sm:$0xff] }
0x16ad   :  { %v1836_v8 = vsel %vm1833_vm1, %v1835_v3, %v1831_v6  ;;  %v4711_v3 = vld [vmem:[%s5053_s1 + $0xc8] sm:$0xff]  ;;  %2091 = vmatpush.msrb.mxu2 %v4704_v47  ;;  %3361 = vmatpush.msra.mxu3 %v4704_v47  ;;  %v4718_v6 = vld [vmem:[%s5053_s1 + $0xc0] sm:$0xff] }
0x16ae   :  { %v1837_v10 = vmul.f32 %v3763_v57, %v1836_v8 }
0x16af   :  { %2092 = vmatpush.msrb.mxu2 %v4711_v3  ;;  %3362 = vmatpush.msra.mxu3 %v4711_v3 }
0x16b0   :  { %1869 = vperm.xlu1 %3611, %v1837_v10   ;;  %1862 = vperm.xlu2 %3610, %v1837_v10  }
0x16b1   :  { %1841 = vperm.xlu0 %3607, %v1837_v10   ;;  %2093 = vmatpush.msrb.mxu2 %v4718_v6 }
0x16b2   :  { %3363 = vmatpush.msra.mxu3 %v4718_v6 }
0x16b8   :  { %3614 = vset.pattern.permute.xlu1 %v3952_v11  ;;  %3613 = vset.pattern.permute.xlu2 %v3953_v12  ;;  %v4737_v12 = vld [vmem:[%s5053_s1 + $0xf0] sm:$0xff] }
0x16b9   :  { %3608 = vset.pattern.permute.xlu0 %v3954_v50  ;;  %1890 = vperm.xlu1 %3614, %v1837_v10   ;;  %v4743_v50 = vld [vmem:[%s5053_s1 + $0xe8] sm:$0xff] }
0x16ba   :  { %1883 = vperm.xlu2 %3613, %v1837_v10   ;;  %1848 = vperm.xlu0 %3608, %v1837_v10  }
0x16c2   :  { %3609 = vset.pattern.permute.xlu0 %v3955_v14  ;;  %v4749_v14 = vld [vmem:[%s5053_s1 + $0xe0] sm:$0xff] }
0x16c3   :  { %1855 = vperm.xlu0 %3609, %v1837_v10  }
0x16cb   :  { %3612 = vset.pattern.permute.xlu0 %v3956_v16 }
0x16cc   :  { %1876 = vperm.xlu0 %3612, %v1837_v10  }
0x16d4   :  { %3615 = vset.pattern.permute.xlu0 %v3952_v11  ;;  %v4732_v11 = vld [vmem:[%s5053_s1 + $0xf8] sm:$0xff] }
0x16d5   :  { %2114 = vmatpush.msrb.mxu1 %v4732_v11 }
0x16d7   :  { %2115 = vmatpush.msrb.mxu1 %v4737_v12 }
0x16d9   :  { %2116 = vmatpush.msrb.mxu1 %v4743_v50 }
0x16db   :  { %2117 = vmatpush.msrb.mxu1 %v4749_v14 }
0x16dc   :  { %2118 = vmatmul.f32.vlgmr.msrb.gmra.mxu1 %v3946_v9  ;;  %v2006_v9 = vpop.f32.mrf.mxu3 }
0x16dd   :  { %2283 = vmatpush.msra.mxu1 %v4732_v11 }
0x16df   :  { %2284 = vmatpush.msra.mxu1 %v4737_v12 }
0x16e1   :  { %2285 = vmatpush.msra.mxu1 %v4743_v50 }
0x16e3   :  { %2286 = vmatpush.msra.mxu1 %v4749_v14 }
0x16e5   :  { %2452 = vmatpush.msrb.mxu1 %v4732_v11 }
0x16e7   :  { %2453 = vmatpush.msrb.mxu1 %v4737_v12 }
0x16e9   :  { %2454 = vmatpush.msrb.mxu1 %v4743_v50 }
0x16eb   :  { %2455 = vmatpush.msrb.mxu1 %v4749_v14 }
0x170a   :  { %v1863_v1 = vpop.permute.xlu2 %1862 }
0x170b   :  { %v1865_v42 = vmul.f32 %v1863_v1, %v4606_v38  ;;  %v4776_v1 = vld [vmem:[%s5053_s1 + $0x100] ss:$0 sm:$0xff] }
0x1714   :  { %v1884_v46 = vpop.permute.xlu2 %1883 }
0x1722   :  { %v1870_v13 = vpop.permute.xlu1 %1869 }
0x1723   :  { %v1842_v17 = vpop.permute.xlu0 %1841  ;;  %v1872_v44 = vmul.f32 %v1870_v13, %v4619_v20  ;;  %v1945_v20 = vpop.f32.mrf.mxu1 }
0x1724   :  { %v1844_v22 = vmul.f32 %v1842_v17, %v4594_v34  ;;  %v1886_v34 = vmul.f32 %v1884_v46, %v4627_v49 }
0x172b   :  { %v1891_v43 = vpop.permute.xlu1 %1890 }
0x172c   :  { %v1849_v19 = vpop.permute.xlu0 %1848  ;;  %v1893_v41 = vmul.f32 %v1891_v43, %v4631_v51 }
0x172d   :  { %v1851_v0 = vmul.f32 %v1849_v19, %v4598_v23 }
0x172f   :  { %v1852_v26 = vadd.f32 %v1851_v0, %v1844_v22 }
0x1735   :  { %v1856_v5 = vpop.permute.xlu0 %1855 }
0x1736   :  { %v1858_v27 = vmul.f32 %v1856_v5, %v4602_v36  ;;  %v4687_v36 = vld [vmem:[%s5053_s1 + $0xb8] ss:$0 sm:$0xff] }
0x1737   :  { %v2007_v17 = vadd.f32 %v4687_v36, %v2006_v9 }
0x1738   :  { %v1859_v28 = vadd.f32 %v1858_v27, %v1852_v26 }
0x173a   :  { %v1866_v30 = vadd.f32 %v1865_v42, %v1859_v28 }
0x173c   :  { %v1873_v21 = vadd.f32 %v1872_v44, %v1866_v30 }
0x173e   :  { %v1877_v32 = vpop.permute.xlu0 %1876 }
0x173f   :  { %v1879_v23 = vmul.f32 %v1877_v32, %v4623_v45 }
0x1741   :  { %v1880_v37 = vadd.f32 %v1879_v23, %v1873_v21 }
0x1743   :  { %v1887_v40 = vadd.f32 %v1886_v34, %v1880_v37 }
0x1745   :  { %v1894_v15 = vadd.f32 %v1893_v41, %v1887_v40 }
0x1747   :  { %3542 = vmatmul.msk.f32.vlgmr.msra.gmra.mxu2 %vm56_vm7, %v1894_v15 }
0x1748   :  { %2258 = vmatpush.msra.mxu2 %v4699_v53 }
0x174a   :  { %2259 = vmatpush.msra.mxu2 %v4704_v47 }
0x174c   :  { %2260 = vmatpush.msra.mxu2 %v4711_v3 }
0x174e   :  { %2261 = vmatpush.msra.mxu2 %v4718_v6 }
0x1759   :  { %v2119_v5 = vpop.f32.mrf.mxu1 }
0x17ca   :  { %v1921_v38 = vpop.f32.mrf.mxu2 }
0x17cb   :  { %v1922_v24 = vadd.f32 %v4687_v36, %v1921_v38 }
0x17cd   :  { %v1948_v45 = vadd.f32 %v1945_v20, %v1922_v24 }
0x17cf   :  { %3766 = vtanh.f32 %v1948_v45  ;;  %v3543_v49 = vmul.f32 -1.442695, %v1948_v45 }
0x17d1   :  { %3768 = vpow2.f32 %v3543_v49 }
0x17d5   :  { %v3767_v31 = vpop.eup %3766 }
0x17d6   :  { %1971 = vrot.lane.b32.xlu0 %v3767_v31, %s3947_s28 }
0x17d7   :  { %v3769_v51 = vpop.eup %3768 }
0x17d8   :  { %v1952_v7 = vadd.f32 1.0, %v3769_v51 }
0x17da   :  { %3770 = vrcp.f32 %v1952_v7  ;;  %v1964_v57 = vand.u32 2147483648, %v1952_v7  ;;  %vm1958_vm12 = vweird.f32 %v1952_v7  ;;  %v1962_v59 = vand.u32 2147483647, %v1952_v7 }
0x17dc   :  { %v1965_v4 = vor.u32 1.1754944e-38, %v1964_v57  ;;  %vm1963_vm14 = vcmp.eq.f32.partialorder %v1962_v59, 8.507059e+37 }
0x17e0   :  { %v3771_v54 = vpop.eup %3770 }
0x17e1   :  { %v1954_v55 = vmul.f32 %v3771_v54, %v1952_v7  ;;  %vm1959_vm2 = vweird.f32 %v3771_v54 }
0x17e2   :  { %vm1960_vm13 = vmor %vm1958_vm12, %vm1959_vm2 }
0x17e3   :  { %v1955_v56 = vsub.f32 1.0, %v1954_v55 }
0x17e5   :  { %v1956_v39 = vmul.f32 %v3771_v54, %v1955_v56 }
0x17e7   :  { %v1957_v48 = vadd.f32 %v3771_v54, %v1956_v39 }
0x17e9   :  { %v1961_v60 = vsel %vm1960_vm13, %v3771_v54, %v1957_v48 }
0x17ea   :  { %v1966_v61 = vsel %vm1963_vm14, %v1965_v4, %v1961_v60 }
0x17eb   :  { %v1969_v25 = vmul.f32 0.0, %v1966_v61 }
0x1848   :  { %v1972_v29 = vpop.permute.xlu0 %1971 }
0x1849   :  { %v1974_v35 = vmul.f32 %v1972_v29, %v1966_v61 }
0x184b   :  { %1976 = vrot.lane.b32.xlu2 %v1974_v35, %s3948_s29 }
0x18a5   :  { %v1977_v52 = vpop.permute.xlu2 %1976 }
0x18a6   :  { %v4692_v33 = vadd.f32 %v1977_v52, %v1969_v25 }
0x18a8   :  { %3772 = vtanh.f32 %v4692_v33 }
0x18ae   :  { %v3773_v2 = vpop.eup %3772 }
0x18af   :  { %1982 = vrot.lane.b32.xlu1 %v3773_v2, %s3947_s28 }
0x1921   :  { %v1983_v8 = vpop.permute.xlu1 %1982 }
0x1922   :  { %v1985_v10 = vmul.f32 %v1983_v8, %v1966_v61 }
0x1924   :  { %2010 = vrot.lane.b32.xlu0 %v1985_v10, %s3948_s29 }
0x1996   :  { %v2011_v16 = vpop.permute.xlu0 %2010 }
0x1997   :  { %3545 = vmatmul.msk.f32.vlgmr.msrb.gmra.mxu0 %vm56_vm7, %v2011_v16  ;;  %3547 = vmatmul.msk.f32.vlgmr.msrb.gmra.mxu2 %vm56_vm7, %v2011_v16 }
0x1998   :  { %2369 = vmatpush.msrb.mxu0 %v4645_v58  ;;  %2427 = vmatpush.msrb.mxu2 %v4699_v53 }
0x199a   :  { %2370 = vmatpush.msrb.mxu0 %v4650_v63  ;;  %2428 = vmatpush.msrb.mxu2 %v4704_v47 }
0x199c   :  { %2371 = vmatpush.msrb.mxu0 %v4657_v62  ;;  %2429 = vmatpush.msrb.mxu2 %v4711_v3 }
0x199e   :  { %2372 = vmatpush.msrb.mxu0 %v4664_v18  ;;  %2430 = vmatpush.msrb.mxu2 %v4718_v6 }
0x1a14   :  { %v2031_v19 = vpop.f32.mrf.mxu0 }
0x1a15   :  { %v2034_v0 = vadd.f32 %v2031_v19, %v2007_v17 }
0x1a17   :  { %3774 = vtanh.f32 %v2034_v0  ;;  %v3546_v42 = vmul.f32 -1.442695, %v2034_v0 }
0x1a1a   :  { %v2095_v22 = vpop.f32.mrf.mxu2 }
0x1a1b   :  { %v2096_v13 = vadd.f32 %v4776_v1, %v2095_v22  ;;  %v2180_v22 = vpop.f32.mrf.mxu3 }
0x1a1d   :  { %v3775_v26 = vpop.eup %3774  ;;  %v2122_v27 = vadd.f32 %v2119_v5, %v2096_v13  ;;  %v2181_v5 = vadd.f32 %v4687_v36, %v2180_v22 }
0x1a1e   :  { %2057 = vrot.lane.b32.xlu2 %v3775_v26, %s3947_s28 }
0x1a1f   :  { %3776 = vtanh.f32 %v2122_v27  ;;  %v3548_v23 = vmul.f32 -1.442695, %v2122_v27 }
0x1a20   :  { %3778 = vpow2.f32 %v3546_v42 }
0x1a25   :  { %v3777_v28 = vpop.eup %3776 }
0x1a26   :  { %2145 = vrot.lane.b32.xlu1 %v3777_v28, %s3947_s28  ;;  %v3779_v30 = vpop.eup %3778 }
0x1a27   :  { %v2038_v44 = vadd.f32 1.0, %v3779_v30 }
0x1a29   :  { %3780 = vrcp.f32 %v2038_v44  ;;  %v2050_v37 = vand.u32 2147483648, %v2038_v44  ;;  %vm2044_vm4 = vweird.f32 %v2038_v44  ;;  %v2048_v41 = vand.u32 2147483647, %v2038_v44 }
0x1a2a   :  { %3782 = vpow2.f32 %v3548_v23 }
0x1a2b   :  { %v2051_v38 = vor.u32 1.1754944e-38, %v2050_v37  ;;  %vm2049_vm6 = vcmp.eq.f32.partialorder %v2048_v41, 8.507059e+37 }
0x1a2f   :  { %v3781_v46 = vpop.eup %3780 }
0x1a30   :  { %v2040_v32 = vmul.f32 %v3781_v46, %v2038_v44  ;;  %vm2045_vm15 = vweird.f32 %v3781_v46  ;;  %v3783_v40 = vpop.eup %3782 }
0x1a31   :  { %vm2046_vm5 = vmor %vm2044_vm4, %vm2045_vm15  ;;  %v2126_v20 = vadd.f32 1.0, %v3783_v40 }
0x1a32   :  { %v2041_v21 = vsub.f32 1.0, %v2040_v32 }
0x1a33   :  { %3784 = vrcp.f32 %v2126_v20  ;;  %v2138_v56 = vand.u32 2147483648, %v2126_v20  ;;  %vm2132_vm9 = vweird.f32 %v2126_v20  ;;  %v2136_v39 = vand.u32 2147483647, %v2126_v20 }
0x1a34   :  { %v2042_v43 = vmul.f32 %v3781_v46, %v2041_v21 }
0x1a35   :  { %v2139_v57 = vor.u32 1.1754944e-38, %v2138_v56  ;;  %vm2137_vm11 = vcmp.eq.f32.partialorder %v2136_v39, 8.507059e+37 }
0x1a36   :  { %v2043_v34 = vadd.f32 %v3781_v46, %v2042_v43 }
0x1a38   :  { %v2047_v15 = vsel %vm2046_vm5, %v3781_v46, %v2043_v34 }
0x1a39   :  { %v2052_v45 = vsel %vm2049_vm6, %v2051_v38, %v2047_v15  ;;  %v3785_v49 = vpop.eup %3784 }
0x1a3a   :  { %v2128_v51 = vmul.f32 %v3785_v49, %v2126_v20  ;;  %vm2133_vm8 = vweird.f32 %v3785_v49  ;;  %v2055_v29 = vmul.f32 %v2052_v45, %v4692_v33 }
0x1a3b   :  { %vm2134_vm10 = vmor %vm2132_vm9, %vm2133_vm8 }
0x1a3c   :  { %v2129_v7 = vsub.f32 1.0, %v2128_v51 }
0x1a3e   :  { %v2130_v54 = vmul.f32 %v3785_v49, %v2129_v7 }
0x1a40   :  { %v2131_v55 = vadd.f32 %v3785_v49, %v2130_v54 }
0x1a42   :  { %v2135_v48 = vsel %vm2134_vm10, %v3785_v49, %v2131_v55 }
0x1a43   :  { %v2140_v60 = vsel %vm2137_vm11, %v2139_v57, %v2135_v48 }
0x1a44   :  { %v2143_v25 = vmul.f32 0.0, %v2140_v60 }
0x1a78   :  { %v2058_v24 = vpop.permute.xlu2 %2057 }
0x1a79   :  { %v2060_v31 = vmul.f32 %v2058_v24, %v2052_v45 }
0x1a7b   :  { %2062 = vrot.lane.b32.xlu0 %v2060_v31, %s3948_s29 }
0x1a98   :  { %v2146_v59 = vpop.permute.xlu1 %2145 }
0x1a99   :  { %v2148_v4 = vmul.f32 %v2146_v59, %v2140_v60 }
0x1a9b   :  { %2150 = vrot.lane.b32.xlu2 %v2148_v4, %s3948_s29 }
0x1aed   :  { %v2063_v61 = vpop.permute.xlu0 %2062 }
0x1aee   :  { %v4784_v35 = vadd.f32 %v2063_v61, %v2055_v29 }
0x1af0   :  { %3786 = vtanh.f32 %v4784_v35 }
0x1af5   :  { %v2151_v52 = vpop.permute.xlu2 %2150 }
0x1af6   :  { %v3787_v2 = vpop.eup %3786  ;;  %v4787_v8 = vadd.f32 %v2151_v52, %v2143_v25 }
0x1af7   :  { %2068 = vrot.lane.b32.xlu1 %v3787_v2, %s3947_s28 }
0x1af8   :  { %3788 = vtanh.f32 %v4787_v8 }
0x1afe   :  { %v3789_v10 = vpop.eup %3788 }
0x1aff   :  { %2156 = vrot.lane.b32.xlu0 %v3789_v10, %s3947_s28 }
0x1b69   :  { %v2069_v16 = vpop.permute.xlu1 %2068 }
0x1b6a   :  { %v2071_v9 = vmul.f32 %v2069_v16, %v2052_v45 }
0x1b6c   :  { %2184 = vrot.lane.b32.xlu2 %v2071_v9, %s3948_s29 }
0x1b71   :  { %v2157_v33 = vpop.permute.xlu0 %2156 }
0x1b72   :  { %v2159_v17 = vmul.f32 %v2157_v33, %v2140_v60 }
0x1b74   :  { %2267 = vrot.lane.b32.xlu1 %v2159_v17, %s3948_s29 }
0x1bc6   :  { %v2185_v19 = vpop.permute.xlu2 %2184 }
0x1bc7   :  { %3550 = vmatmul.msk.f32.vlgmr.msra.gmra.mxu0 %vm56_vm7, %v2185_v19  ;;  %3552 = vmatmul.msk.f32.vlgmr.msra.gmra.mxu2 %vm56_vm7, %v2185_v19 }
0x1bc8   :  { %2538 = vmatpush.msra.mxu0 %v4645_v58  ;;  %2596 = vmatpush.msra.mxu2 %v4699_v53 }
0x1bca   :  { %2539 = vmatpush.msra.mxu0 %v4650_v63  ;;  %2597 = vmatpush.msra.mxu2 %v4704_v47 }
0x1bcc   :  { %2540 = vmatpush.msra.mxu0 %v4657_v62  ;;  %2598 = vmatpush.msra.mxu2 %v4711_v3 }
0x1bce   :  { %2541 = vmatpush.msra.mxu0 %v4664_v18  ;;  %2599 = vmatpush.msra.mxu2 %v4718_v6 }
0x1be6   :  { %v2268_v0 = vpop.permute.xlu1 %2267 }
0x1be7   :  { %3553 = vmatmul.msk.f32.vlgmr.msra.gmra.mxu1 %vm56_vm7, %v2268_v0 }
0x1be8   :  { %2621 = vmatpush.msra.mxu1 %v4732_v11 }
0x1bea   :  { %2622 = vmatpush.msra.mxu1 %v4737_v12 }
0x1bec   :  { %2623 = vmatpush.msra.mxu1 %v4743_v50 }
0x1bee   :  { %2624 = vmatpush.msra.mxu1 %v4749_v14 }
0x1c44   :  { %v2205_v13 = vpop.f32.mrf.mxu0 }
0x1c45   :  { %v2208_v26 = vadd.f32 %v2205_v13, %v2181_v5 }
0x1c47   :  { %3790 = vtanh.f32 %v2208_v26  ;;  %v3551_v32 = vmul.f32 -1.442695, %v2208_v26 }
0x1c4a   :  { %v2263_v28 = vpop.f32.mrf.mxu2 }
0x1c4b   :  { %v2264_v42 = vadd.f32 %v4776_v1, %v2263_v28 }
0x1c4d   :  { %v3791_v27 = vpop.eup %3790 }
0x1c4e   :  { %2231 = vrot.lane.b32.xlu0 %v3791_v27, %s3947_s28  ;;  %v2349_v27 = vpop.f32.mrf.mxu3 }
0x1c4f   :  { %v2350_v28 = vadd.f32 %v4687_v36, %v2349_v27 }
0x1c64   :  { %v2288_v30 = vpop.f32.mrf.mxu1 }
0x1c65   :  { %v2291_v44 = vadd.f32 %v2288_v30, %v2264_v42 }
0x1c67   :  { %3792 = vtanh.f32 %v2291_v44  ;;  %v3554_v21 = vmul.f32 -1.442695, %v2291_v44 }
0x1c68   :  { %3794 = vpow2.f32 %v3551_v32 }
0x1c69   :  { %3796 = vpow2.f32 %v3554_v21 }
0x1c6d   :  { %v3793_v46 = vpop.eup %3792 }
0x1c6e   :  { %2314 = vrot.lane.b32.xlu2 %v3793_v46, %s3947_s28  ;;  %v3795_v23 = vpop.eup %3794 }
0x1c6f   :  { %v2212_v43 = vadd.f32 1.0, %v3795_v23  ;;  %v3797_v34 = vpop.eup %3796 }
0x1c70   :  { %v2295_v37 = vadd.f32 1.0, %v3797_v34 }
0x1c71   :  { %3798 = vrcp.f32 %v2212_v43  ;;  %v2224_v49 = vand.u32 2147483648, %v2212_v43  ;;  %vm2218_vm1 = vweird.f32 %v2212_v43  ;;  %v2222_v51 = vand.u32 2147483647, %v2212_v43 }
0x1c72   :  { %3800 = vrcp.f32 %v2295_v37  ;;  %v2307_v59 = vand.u32 2147483648, %v2295_v37  ;;  %vm2301_vm14 = vweird.f32 %v2295_v37  ;;  %v2305_v60 = vand.u32 2147483647, %v2295_v37 }
0x1c73   :  { %v2225_v55 = vor.u32 1.1754944e-38, %v2224_v49  ;;  %vm2223_vm12 = vcmp.eq.f32.partialorder %v2222_v51, 8.507059e+37 }
0x1c74   :  { %v2308_v29 = vor.u32 1.1754944e-38, %v2307_v59  ;;  %vm2306_vm4 = vcmp.eq.f32.partialorder %v2305_v60, 8.507059e+37 }
0x1c77   :  { %v3799_v41 = vpop.eup %3798 }
0x1c78   :  { %v2214_v40 = vmul.f32 %v3799_v41, %v2212_v43  ;;  %v3801_v38 = vpop.eup %3800  ;;  %vm2219_vm0 = vweird.f32 %v3799_v41 }
0x1c79   :  { %v2297_v24 = vmul.f32 %v3801_v38, %v2295_v37  ;;  %vm2220_vm2 = vmor %vm2218_vm1, %vm2219_vm0  ;;  %vm2302_vm13 = vweird.f32 %v3801_v38 }
0x1c7a   :  { %v2215_v15 = vsub.f32 1.0, %v2214_v40  ;;  %vm2303_vm15 = vmor %vm2301_vm14, %vm2302_vm13 }
0x1c7b   :  { %v2298_v31 = vsub.f32 1.0, %v2297_v24 }
0x1c7c   :  { %v2216_v20 = vmul.f32 %v3799_v41, %v2215_v15 }
0x1c7d   :  { %v2299_v54 = vmul.f32 %v3801_v38, %v2298_v31 }
0x1c7e   :  { %v2217_v45 = vadd.f32 %v3799_v41, %v2216_v20 }
0x1c7f   :  { %v2300_v57 = vadd.f32 %v3801_v38, %v2299_v54 }
0x1c80   :  { %v2221_v7 = vsel %vm2220_vm2, %v3799_v41, %v2217_v45 }
0x1c81   :  { %v2226_v39 = vsel %vm2223_vm12, %v2225_v55, %v2221_v7  ;;  %v2304_v4 = vsel %vm2303_vm15, %v3801_v38, %v2300_v57 }
0x1c82   :  { %v2309_v25 = vsel %vm2306_vm4, %v2308_v29, %v2304_v4  ;;  %v2229_v2 = vmul.f32 %v2226_v39, %v4784_v35 }
0x1c83   :  { %v2312_v9 = vmul.f32 %v2309_v25, %v4787_v8 }
0x1cc0   :  { %v2232_v56 = vpop.permute.xlu0 %2231 }
0x1cc1   :  { %v2234_v48 = vmul.f32 %v2232_v56, %v2226_v39 }
0x1cc3   :  { %2236 = vrot.lane.b32.xlu1 %v2234_v48, %s3948_s29 }
0x1cc8   :  { %v2315_v61 = vpop.permute.xlu2 %2314 }
0x1cc9   :  { %v2317_v52 = vmul.f32 %v2315_v61, %v2309_v25 }
0x1ccb   :  { %2319 = vrot.lane.b32.xlu0 %v2317_v52, %s3948_s29 }
0x1d35   :  { %v2237_v10 = vpop.permute.xlu1 %2236 }
0x1d36   :  { %v4816_v16 = vadd.f32 %v2237_v10, %v2229_v2 }
0x1d38   :  { %3802 = vtanh.f32 %v4816_v16 }
0x1d3d   :  { %v2320_v33 = vpop.permute.xlu0 %2319 }
0x1d3e   :  { %v3803_v17 = vpop.eup %3802  ;;  %v4820_v19 = vadd.f32 %v2320_v33, %v2312_v9 }
0x1d3f   :  { %2242 = vrot.lane.b32.xlu2 %v3803_v17, %s3947_s28 }
0x1d40   :  { %3804 = vtanh.f32 %v4820_v19 }
0x1d46   :  { %v3805_v0 = vpop.eup %3804 }
0x1d47   :  { %2325 = vrot.lane.b32.xlu1 %v3805_v0, %s3947_s28 }
0x1d99   :  { %v2243_v22 = vpop.permute.xlu2 %2242 }
0x1d9a   :  { %v2245_v35 = vmul.f32 %v2243_v22, %v2226_v39 }
0x1d9c   :  { %2353 = vrot.lane.b32.xlu0 %v2245_v35, %s3948_s29 }
0x1db9   :  { %v2326_v5 = vpop.permute.xlu1 %2325 }
0x1dba   :  { %v2328_v13 = vmul.f32 %v2326_v5, %v2309_v25 }
0x1dbc   :  { %2436 = vrot.lane.b32.xlu2 %v2328_v13, %s3948_s29 }
0x1e0e   :  { %v2354_v8 = vpop.permute.xlu0 %2353 }
0x1e0f   :  { %3556 = vmatmul.msk.f32.vlgmr.msrb.gmra.mxu0 %vm56_vm7, %v2354_v8  ;;  %3558 = vmatmul.msk.f32.vlgmr.msrb.gmra.mxu2 %vm56_vm7, %v2354_v8 }
0x1e10   :  { %2707 = vmatpush.msrb.mxu0 %v4645_v58  ;;  %2765 = vmatpush.msrb.mxu2 %v4699_v53 }
0x1e12   :  { %2708 = vmatpush.msrb.mxu0 %v4650_v63  ;;  %2766 = vmatpush.msrb.mxu2 %v4704_v47 }
0x1e14   :  { %2709 = vmatpush.msrb.mxu0 %v4657_v62  ;;  %2767 = vmatpush.msrb.mxu2 %v4711_v3 }
0x1e16   :  { %v2437_v26 = vpop.permute.xlu2 %2436  ;;  %2710 = vmatpush.msrb.mxu0 %v4664_v18  ;;  %2768 = vmatpush.msrb.mxu2 %v4718_v6 }
0x1e17   :  { %3559 = vmatmul.msk.f32.vlgmr.msrb.gmra.mxu1 %vm56_vm7, %v2437_v26 }
0x1e18   :  { %2790 = vmatpush.msrb.mxu1 %v4732_v11 }
0x1e1a   :  { %2791 = vmatpush.msrb.mxu1 %v4737_v12 }
0x1e1c   :  { %2792 = vmatpush.msrb.mxu1 %v4743_v50 }
0x1e1e   :  { %2793 = vmatpush.msrb.mxu1 %v4749_v14 }
0x1e8c   :  { %v2374_v42 = vpop.f32.mrf.mxu0 }
0x1e8d   :  { %v2377_v30 = vadd.f32 %v2374_v42, %v2350_v28 }
0x1e8f   :  { %3806 = vtanh.f32 %v2377_v30  ;;  %v3557_v34 = vmul.f32 -1.442695, %v2377_v30 }
0x1e92   :  { %v2432_v44 = vpop.f32.mrf.mxu2 }
0x1e93   :  { %v2433_v46 = vadd.f32 %v4776_v1, %v2432_v44  ;;  %v2518_v44 = vpop.f32.mrf.mxu3 }
0x1e94   :  { %v2457_v32 = vpop.f32.mrf.mxu1 }
0x1e95   :  { %v3807_v21 = vpop.eup %3806  ;;  %v2460_v23 = vadd.f32 %v2457_v32, %v2433_v46  ;;  %v2519_v46 = vadd.f32 %v4687_v36, %v2518_v44 }
0x1e96   :  { %2400 = vrot.lane.b32.xlu1 %v3807_v21, %s3947_s28 }
0x1e97   :  { %3808 = vtanh.f32 %v2460_v23  ;;  %v3560_v37 = vmul.f32 -1.442695, %v2460_v23 }
0x1e98   :  { %3810 = vpow2.f32 %v3557_v34 }
0x1e99   :  { %3812 = vpow2.f32 %v3560_v37 }
0x1e9d   :  { %v3809_v43 = vpop.eup %3808 }
0x1e9e   :  { %2483 = vrot.lane.b32.xlu0 %v3809_v43, %s3947_s28  ;;  %v3811_v41 = vpop.eup %3810 }
0x1e9f   :  { %v2381_v40 = vadd.f32 1.0, %v3811_v41  ;;  %v3813_v15 = vpop.eup %3812 }
0x1ea0   :  { %v2464_v38 = vadd.f32 1.0, %v3813_v15 }
0x1ea1   :  { %3814 = vrcp.f32 %v2381_v40  ;;  %v2393_v55 = vand.u32 2147483648, %v2381_v40  ;;  %vm2387_vm6 = vweird.f32 %v2381_v40  ;;  %v2391_v56 = vand.u32 2147483647, %v2381_v40 }
0x1ea2   :  { %3816 = vrcp.f32 %v2464_v38  ;;  %v2476_v61 = vand.u32 2147483648, %v2464_v38  ;;  %vm2470_vm11 = vweird.f32 %v2464_v38  ;;  %v2474_v25 = vand.u32 2147483647, %v2464_v38 }
0x1ea3   :  { %v2394_v57 = vor.u32 1.1754944e-38, %v2393_v55  ;;  %vm2392_vm9 = vcmp.eq.f32.partialorder %v2391_v56, 8.507059e+37 }
0x1ea4   :  { %v2477_v2 = vor.u32 1.1754944e-38, %v2476_v61  ;;  %vm2475_vm1 = vcmp.eq.f32.partialorder %v2474_v25, 8.507059e+37 }
0x1ea7   :  { %v3815_v20 = vpop.eup %3814 }
0x1ea8   :  { %v2383_v24 = vmul.f32 %v3815_v20, %v2381_v40  ;;  %v3817_v31 = vpop.eup %3816  ;;  %vm2388_vm5 = vweird.f32 %v3815_v20 }
0x1ea9   :  { %v2466_v51 = vmul.f32 %v3817_v31, %v2464_v38  ;;  %vm2389_vm8 = vmor %vm2387_vm6, %vm2388_vm5  ;;  %vm2471_vm10 = vweird.f32 %v3817_v31 }
0x1eaa   :  { %v2384_v45 = vsub.f32 1.0, %v2383_v24  ;;  %vm2472_vm0 = vmor %vm2470_vm11, %vm2471_vm10 }
0x1eab   :  { %v2467_v54 = vsub.f32 1.0, %v2466_v51 }
0x1eac   :  { %v2385_v49 = vmul.f32 %v3815_v20, %v2384_v45 }
0x1ead   :  { %v2468_v48 = vmul.f32 %v3817_v31, %v2467_v54 }
0x1eae   :  { %v2386_v7 = vadd.f32 %v3815_v20, %v2385_v49 }
0x1eaf   :  { %v2469_v29 = vadd.f32 %v3817_v31, %v2468_v48 }
0x1eb0   :  { %v2390_v39 = vsel %vm2389_vm8, %v3815_v20, %v2386_v7 }
0x1eb1   :  { %v2395_v59 = vsel %vm2392_vm9, %v2394_v57, %v2390_v39  ;;  %v2473_v52 = vsel %vm2472_vm0, %v3817_v31, %v2469_v29 }
0x1eb2   :  { %v2478_v9 = vsel %vm2475_vm1, %v2477_v2, %v2473_v52  ;;  %v2398_v17 = vmul.f32 %v2395_v59, %v4816_v16 }
0x1eb3   :  { %v2481_v5 = vmul.f32 %v2478_v9, %v4820_v19 }
0x1f08   :  { %v2401_v60 = vpop.permute.xlu1 %2400 }
0x1f09   :  { %v2403_v4 = vmul.f32 %v2401_v60, %v2395_v59 }
0x1f0b   :  { %2405 = vrot.lane.b32.xlu2 %v2403_v4, %s3948_s29 }
0x1f10   :  { %v2484_v10 = vpop.permute.xlu0 %2483 }
0x1f11   :  { %v2486_v33 = vmul.f32 %v2484_v10, %v2478_v9 }
0x1f13   :  { %2488 = vrot.lane.b32.xlu1 %v2486_v33, %s3948_s29 }
0x1f65   :  { %v2406_v0 = vpop.permute.xlu2 %2405 }
0x1f66   :  { %v4849_v22 = vadd.f32 %v2406_v0, %v2398_v17 }
0x1f68   :  { %3818 = vtanh.f32 %v4849_v22 }
0x1f6e   :  { %v3819_v35 = vpop.eup %3818 }
0x1f6f   :  { %2411 = vrot.lane.b32.xlu0 %v3819_v35, %s3947_s28 }
0x1f85   :  { %v2489_v13 = vpop.permute.xlu1 %2488 }
0x1f86   :  { %v4854_v8 = vadd.f32 %v2489_v13, %v2481_v5 }
0x1f88   :  { %3820 = vtanh.f32 %v4854_v8 }
0x1f8e   :  { %v3821_v26 = vpop.eup %3820 }
0x1f8f   :  { %2494 = vrot.lane.b32.xlu2 %v3821_v26, %s3947_s28 }
0x1fe1   :  { %v2412_v27 = vpop.permute.xlu0 %2411 }
0x1fe2   :  { %v2414_v16 = vmul.f32 %v2412_v27, %v2395_v59 }
0x1fe4   :  { %2522 = vrot.lane.b32.xlu1 %v2414_v16, %s3948_s29 }
0x1fe9   :  { %v2495_v28 = vpop.permute.xlu2 %2494 }
0x1fea   :  { %v2497_v42 = vmul.f32 %v2495_v28, %v2478_v9 }
0x1fec   :  { %2605 = vrot.lane.b32.xlu0 %v2497_v42, %s3948_s29 }
0x2056   :  { %v2523_v30 = vpop.permute.xlu1 %2522 }
0x2057   :  { %3562 = vmatmul.msk.f32.vlgmr.msra.gmra.mxu0 %vm56_vm7, %v2523_v30  ;;  %3564 = vmatmul.msk.f32.vlgmr.msra.gmra.mxu2 %vm56_vm7, %v2523_v30 }
0x2058   :  { %2876 = vmatpush.msra.mxu0 %v4645_v58  ;;  %2934 = vmatpush.msra.mxu2 %v4699_v53 }
0x205a   :  { %2877 = vmatpush.msra.mxu0 %v4650_v63  ;;  %2935 = vmatpush.msra.mxu2 %v4704_v47 }
0x205c   :  { %2878 = vmatpush.msra.mxu0 %v4657_v62  ;;  %2936 = vmatpush.msra.mxu2 %v4711_v3 }
0x205e   :  { %v2606_v19 = vpop.permute.xlu0 %2605  ;;  %2879 = vmatpush.msra.mxu0 %v4664_v18  ;;  %2937 = vmatpush.msra.mxu2 %v4718_v6 }
0x205f   :  { %3565 = vmatmul.msk.f32.vlgmr.msra.gmra.mxu1 %vm56_vm7, %v2606_v19 }
0x2060   :  { %2959 = vmatpush.msra.mxu1 %v4732_v11 }
0x2062   :  { %2960 = vmatpush.msra.mxu1 %v4737_v12 }
0x2064   :  { %2961 = vmatpush.msra.mxu1 %v4743_v50 }
0x2066   :  { %2962 = vmatpush.msra.mxu1 %v4749_v14 }
0x20d4   :  { %v2543_v32 = vpop.f32.mrf.mxu0 }
0x20d5   :  { %v2546_v21 = vadd.f32 %v2543_v32, %v2519_v46 }
0x20d7   :  { %3822 = vtanh.f32 %v2546_v21  ;;  %v3563_v15 = vmul.f32 -1.442695, %v2546_v21 }
0x20da   :  { %v2601_v23 = vpop.f32.mrf.mxu2 }
0x20db   :  { %v2602_v43 = vadd.f32 %v4776_v1, %v2601_v23 }
0x20dc   :  { %v2626_v34 = vpop.f32.mrf.mxu1 }
0x20dd   :  { %v3823_v37 = vpop.eup %3822  ;;  %v2629_v41 = vadd.f32 %v2626_v34, %v2602_v43 }
0x20de   :  { %2569 = vrot.lane.b32.xlu2 %v3823_v37, %s3947_s28 }
0x20df   :  { %3824 = vtanh.f32 %v2629_v41  ;;  %v3566_v49 = vmul.f32 -1.442695, %v2629_v41 }
0x20e0   :  { %3826 = vpow2.f32 %v3563_v15 }
0x20e5   :  { %v3825_v40 = vpop.eup %3824 }
0x20e6   :  { %2652 = vrot.lane.b32.xlu1 %v3825_v40, %s3947_s28  ;;  %v3827_v38 = vpop.eup %3826 }
0x20e7   :  { %v2550_v20 = vadd.f32 1.0, %v3827_v38 }
0x20e9   :  { %3828 = vrcp.f32 %v2550_v20  ;;  %v2562_v54 = vand.u32 2147483648, %v2550_v20  ;;  %vm2556_vm12 = vweird.f32 %v2550_v20  ;;  %v2560_v55 = vand.u32 2147483647, %v2550_v20 }
0x20ea   :  { %3830 = vpow2.f32 %v3566_v49 }
0x20eb   :  { %v2563_v48 = vor.u32 1.1754944e-38, %v2562_v54  ;;  %vm2561_vm14 = vcmp.eq.f32.partialorder %v2560_v55, 8.507059e+37 }
0x20ef   :  { %v3829_v24 = vpop.eup %3828 }
0x20f0   :  { %v2552_v45 = vmul.f32 %v3829_v24, %v2550_v20  ;;  %vm2557_vm2 = vweird.f32 %v3829_v24  ;;  %v3831_v56 = vpop.eup %3830 }
0x20f1   :  { %vm2558_vm13 = vmor %vm2556_vm12, %vm2557_vm2  ;;  %v2633_v57 = vadd.f32 1.0, %v3831_v56 }
0x20f2   :  { %v2553_v31 = vsub.f32 1.0, %v2552_v45 }
0x20f3   :  { %3832 = vrcp.f32 %v2633_v57  ;;  %v2645_v10 = vand.u32 2147483648, %v2633_v57  ;;  %vm2639_vm4 = vweird.f32 %v2633_v57  ;;  %v2643_v9 = vand.u32 2147483647, %v2633_v57 }
0x20f4   :  { %v2554_v51 = vmul.f32 %v3829_v24, %v2553_v31 }
0x20f5   :  { %v2646_v17 = vor.u32 1.1754944e-38, %v2645_v10  ;;  %vm2644_vm6 = vcmp.eq.f32.partialorder %v2643_v9, 8.507059e+37 }
0x20f6   :  { %v2555_v7 = vadd.f32 %v3829_v24, %v2554_v51 }
0x20f8   :  { %v2559_v39 = vsel %vm2558_vm13, %v3829_v24, %v2555_v7 }
0x20f9   :  { %v2564_v60 = vsel %vm2561_vm14, %v2563_v48, %v2559_v39  ;;  %v3833_v29 = vpop.eup %3832 }
0x20fa   :  { %v2635_v61 = vmul.f32 %v3833_v29, %v2633_v57  ;;  %vm2640_vm15 = vweird.f32 %v3833_v29  ;;  %v2567_v13 = vmul.f32 %v2564_v60, %v4849_v22 }
0x20fb   :  { %vm2641_vm5 = vmor %vm2639_vm4, %vm2640_vm15 }
0x20fc   :  { %v2636_v25 = vsub.f32 1.0, %v2635_v61 }
0x20fe   :  { %v2637_v52 = vmul.f32 %v3833_v29, %v2636_v25 }
0x2100   :  { %v2638_v2 = vadd.f32 %v3833_v29, %v2637_v52 }
0x2102   :  { %v2642_v33 = vsel %vm2641_vm5, %v3833_v29, %v2638_v2 }
0x2103   :  { %v2647_v35 = vsel %vm2644_vm6, %v2646_v17, %v2642_v33 }
0x2104   :  { %v2650_v16 = vmul.f32 %v2647_v35, %v4854_v8 }
0x2138   :  { %v2570_v59 = vpop.permute.xlu2 %2569 }
0x2139   :  { %v2572_v4 = vmul.f32 %v2570_v59, %v2564_v60 }
0x213b   :  { %2574 = vrot.lane.b32.xlu0 %v2572_v4, %s3948_s29 }
0x2158   :  { %v2653_v0 = vpop.permute.xlu1 %2652 }
0x2159   :  { %v2655_v5 = vmul.f32 %v2653_v0, %v2647_v35 }
0x215b   :  { %2657 = vrot.lane.b32.xlu2 %v2655_v5, %s3948_s29 }
0x21ad   :  { %v2575_v26 = vpop.permute.xlu0 %2574 }
0x21ae   :  { %v4882_v27 = vadd.f32 %v2575_v26, %v2567_v13 }
0x21b0   :  { %3834 = vtanh.f32 %v4882_v27 }
0x21b5   :  { %v2658_v28 = vpop.permute.xlu2 %2657 }
0x21b6   :  { %v3835_v42 = vpop.eup %3834  ;;  %v4886_v30 = vadd.f32 %v2658_v28, %v2650_v16 }
0x21b7   :  { %2580 = vrot.lane.b32.xlu1 %v3835_v42, %s3947_s28 }
0x21b8   :  { %3836 = vtanh.f32 %v4886_v30 }
0x21be   :  { %v3837_v19 = vpop.eup %3836 }
0x21bf   :  { %2663 = vrot.lane.b32.xlu0 %v3837_v19, %s3947_s28 }
0x2229   :  { %v2581_v44 = vpop.permute.xlu1 %2580 }
0x222a   :  { %v2583_v22 = vmul.f32 %v2581_v44, %v2564_v60 }
0x222c   :  { %2691 = vrot.lane.b32.xlu2 %v2583_v22, %s3948_s29 }
0x2231   :  { %v2664_v46 = vpop.permute.xlu0 %2663 }
0x2232   :  { %v2666_v32 = vmul.f32 %v2664_v46, %v2647_v35 }
0x2234   :  { %2774 = vrot.lane.b32.xlu1 %v2666_v32, %s3948_s29 }
0x2286   :  { %v2692_v8 = vpop.permute.xlu2 %2691 }
0x2287   :  { %3568 = vmatmul.msk.f32.vlgmr.msrb.gmra.mxu0 %vm56_vm7, %v2692_v8  ;;  %3570 = vmatmul.msk.f32.vlgmr.msrb.gmra.mxu2 %vm56_vm7, %v2692_v8  ;;  %v3910_v8 = vld [vmem:[%s5053_s1 + $0xb0] sm:$0xff] }
0x2288   :  { %3045 = vmatpush.msrb.mxu0 %v4645_v58  ;;  %3103 = vmatpush.msrb.mxu2 %v4699_v53  ;;  %v2687_v58 = vpop.f32.mrf.mxu3 }
0x228a   :  { %3046 = vmatpush.msrb.mxu0 %v4650_v63  ;;  %3104 = vmatpush.msrb.mxu2 %v4704_v47  ;;  %v2688_v63 = vadd.f32 %v4687_v36, %v2687_v58  ;;  %v3912_v58 = vld [vmem:[%s5053_s1 + $0xa0] sm:$0xff] }
0x228c   :  { %3047 = vmatpush.msrb.mxu0 %v4657_v62  ;;  %3105 = vmatpush.msrb.mxu2 %v4711_v3 }
0x228e   :  { %3048 = vmatpush.msrb.mxu0 %v4664_v18  ;;  %3106 = vmatpush.msrb.mxu2 %v4718_v6 }
0x22a6   :  { %v2775_v21 = vpop.permute.xlu1 %2774 }
0x22a7   :  { %3571 = vmatmul.msk.f32.vlgmr.msrb.gmra.mxu1 %vm56_vm7, %v2775_v21  ;;  %v3911_v21 = vld [vmem:[%s5053_s1 + $0xa8] sm:$0xff] }
0x22a8   :  { %3128 = vmatpush.msrb.mxu1 %v4732_v11 }
0x22aa   :  { %3129 = vmatpush.msrb.mxu1 %v4737_v12 }
0x22ac   :  { %3130 = vmatpush.msrb.mxu1 %v4743_v50 }
0x22ae   :  { %3131 = vmatpush.msrb.mxu1 %v4749_v14 }
0x2304   :  { %v2712_v62 = vpop.f32.mrf.mxu0 }
0x2305   :  { %v2715_v23 = vadd.f32 %v2712_v62, %v2688_v63  ;;  %v3913_v62 = vld [vmem:[%s5053_s1 + $0x98] sm:$0xff] }
0x2307   :  { %3838 = vtanh.f32 %v2715_v23  ;;  %v3569_v15 = vmul.f32 -1.442695, %v2715_v23 }
0x230a   :  { %v2770_v43 = vpop.f32.mrf.mxu2 }
0x230b   :  { %v2771_v34 = vadd.f32 %v4776_v1, %v2770_v43 }
0x230d   :  { %v3839_v18 = vpop.eup %3838 }
0x230e   :  { %2738 = vrot.lane.b32.xlu0 %v3839_v18, %s3947_s28 }
0x2324   :  { %v2795_v37 = vpop.f32.mrf.mxu1 }
0x2325   :  { %v2798_v41 = vadd.f32 %v2795_v37, %v2771_v34 }
0x2327   :  { %3840 = vtanh.f32 %v2798_v41  ;;  %v3572_v38 = vmul.f32 -1.442695, %v2798_v41 }
0x2328   :  { %3842 = vpow2.f32 %v3569_v15 }
0x2329   :  { %3844 = vpow2.f32 %v3572_v38 }
0x232d   :  { %v3841_v40 = vpop.eup %3840 }
0x232e   :  { %2821 = vrot.lane.b32.xlu2 %v3841_v40, %s3947_s28  ;;  %v3843_v20 = vpop.eup %3842 }
0x232f   :  { %v2719_v36 = vadd.f32 1.0, %v3843_v20  ;;  %v3845_v24 = vpop.eup %3844 }
0x2330   :  { %v2802_v45 = vadd.f32 1.0, %v3845_v24 }
0x2331   :  { %3846 = vrcp.f32 %v2719_v36  ;;  %v2731_v48 = vand.u32 2147483648, %v2719_v36  ;;  %vm2725_vm9 = vweird.f32 %v2719_v36  ;;  %v2729_v57 = vand.u32 2147483647, %v2719_v36 }
0x2332   :  { %3848 = vrcp.f32 %v2802_v45  ;;  %v2814_v2 = vand.u32 2147483648, %v2802_v45  ;;  %vm2808_vm1 = vweird.f32 %v2802_v45  ;;  %v2812_v10 = vand.u32 2147483647, %v2802_v45 }
0x2333   :  { %v2732_v4 = vor.u32 1.1754944e-38, %v2731_v48  ;;  %vm2730_vm11 = vcmp.eq.f32.partialorder %v2729_v57, 8.507059e+37 }
0x2334   :  { %v2815_v33 = vor.u32 1.1754944e-38, %v2814_v2  ;;  %vm2813_vm12 = vcmp.eq.f32.partialorder %v2812_v10, 8.507059e+37 }
0x2337   :  { %v3847_v31 = vpop.eup %3846 }
0x2338   :  { %v2721_v49 = vmul.f32 %v3847_v31, %v2719_v36  ;;  %v3849_v7 = vpop.eup %3848  ;;  %vm2726_vm8 = vweird.f32 %v3847_v31 }
0x2339   :  { %v2804_v55 = vmul.f32 %v3849_v7, %v2802_v45  ;;  %vm2727_vm10 = vmor %vm2725_vm9, %vm2726_vm8  ;;  %vm2809_vm0 = vweird.f32 %v3849_v7 }
0x233a   :  { %v2722_v51 = vsub.f32 1.0, %v2721_v49  ;;  %vm2810_vm2 = vmor %vm2808_vm1, %vm2809_vm0 }
0x233b   :  { %v2805_v39 = vsub.f32 1.0, %v2804_v55 }
0x233c   :  { %v2723_v54 = vmul.f32 %v3847_v31, %v2722_v51 }
0x233d   :  { %v2806_v60 = vmul.f32 %v3849_v7, %v2805_v39 }
0x233e   :  { %v2724_v56 = vadd.f32 %v3847_v31, %v2723_v54 }
0x233f   :  { %v2807_v52 = vadd.f32 %v3849_v7, %v2806_v60 }
0x2340   :  { %v2728_v59 = vsel %vm2727_vm10, %v3847_v31, %v2724_v56 }
0x2341   :  { %v2733_v61 = vsel %vm2730_vm11, %v2732_v4, %v2728_v59  ;;  %v2811_v9 = vsel %vm2810_vm2, %v3849_v7, %v2807_v52 }
0x2342   :  { %v2816_v0 = vsel %vm2813_vm12, %v2815_v33, %v2811_v9  ;;  %v2736_v5 = vmul.f32 %v2733_v61, %v4882_v27 }
0x2343   :  { %v2819_v16 = vmul.f32 %v2816_v0, %v4886_v30 }
0x2380   :  { %v2739_v29 = vpop.permute.xlu0 %2738 }
0x2381   :  { %v2741_v25 = vmul.f32 %v2739_v29, %v2733_v61 }
0x2383   :  { %2743 = vrot.lane.b32.xlu1 %v2741_v25, %s3948_s29 }
0x2388   :  { %v2822_v17 = vpop.permute.xlu2 %2821 }
0x2389   :  { %v2824_v35 = vmul.f32 %v2822_v17, %v2816_v0 }
0x238b   :  { %2826 = vrot.lane.b32.xlu0 %v2824_v35, %s3948_s29 }
0x23f5   :  { %v2744_v13 = vpop.permute.xlu1 %2743 }
0x23f6   :  { %v4915_v26 = vadd.f32 %v2744_v13, %v2736_v5 }
0x23f8   :  { %3850 = vtanh.f32 %v4915_v26 }
0x23fd   :  { %v2827_v28 = vpop.permute.xlu0 %2826 }
0x23fe   :  { %v3851_v42 = vpop.eup %3850  ;;  %v4919_v19 = vadd.f32 %v2827_v28, %v2819_v16 }
0x23ff   :  { %2749 = vrot.lane.b32.xlu2 %v3851_v42, %s3947_s28 }
0x2400   :  { %3852 = vtanh.f32 %v4919_v19 }
0x2406   :  { %v3853_v44 = vpop.eup %3852 }
0x2407   :  { %2832 = vrot.lane.b32.xlu1 %v3853_v44, %s3947_s28 }
0x2459   :  { %v2750_v22 = vpop.permute.xlu2 %2749 }
0x245a   :  { %v2752_v27 = vmul.f32 %v2750_v22, %v2733_v61 }
0x245c   :  { %2860 = vrot.lane.b32.xlu0 %v2752_v27, %s3948_s29  ;;  %v3916_v27 = vld [vmem:[%s5053_s1 + $0xf0] sm:$0xff] }
0x2479   :  { %v2833_v46 = vpop.permute.xlu1 %2832 }
0x247a   :  { %v2835_v32 = vmul.f32 %v2833_v46, %v2816_v0  ;;  %v3917_v46 = vld [vmem:[%s5053_s1 + $0xe8] sm:$0xff] }
0x247c   :  { %2943 = vrot.lane.b32.xlu2 %v2835_v32, %s3948_s29 }
0x24ce   :  { %v2861_v30 = vpop.permute.xlu0 %2860 }
0x24cf   :  { %3574 = vmatmul.msk.f32.vlgmr.msra.gmra.mxu0 %vm56_vm7, %v2861_v30  ;;  %3576 = vmatmul.msk.f32.vlgmr.msra.gmra.mxu2 %vm56_vm7, %v2861_v30  ;;  %v3918_v30 = vld [vmem:[%s5053_s1 + $0xe0] sm:$0xff] }
0x24d0   :  { %3214 = vmatpush.msra.mxu0 %v3910_v8  ;;  %3272 = vmatpush.msra.mxu2 %v4699_v53  ;;  %v2856_v53 = vpop.f32.mrf.mxu3 }
0x24d2   :  { %3215 = vmatpush.msra.mxu0 %v3911_v21  ;;  %3273 = vmatpush.msra.mxu2 %v4704_v47  ;;  %v4952_v47 = vld [vmem:[%s5053_s1 + $0xb8] ss:$0 sm:$0xff] }
0x24d4   :  { %3216 = vmatpush.msra.mxu0 %v3912_v58  ;;  %3274 = vmatpush.msra.mxu2 %v4711_v3  ;;  %v2857_v3 = vadd.f32 %v4952_v47, %v2856_v53  ;;  %v4991_v53 = vld [vmem:[%s5053_s1 + $0x100] ss:$0 sm:$0xff] }
0x24d6   :  { %v2944_v63 = vpop.permute.xlu2 %2943  ;;  %3217 = vmatpush.msra.mxu0 %v3913_v62  ;;  %3275 = vmatpush.msra.mxu2 %v4718_v6 }
0x24d7   :  { %3577 = vmatmul.msk.f32.vlgmr.msra.gmra.mxu1 %vm56_vm7, %v2944_v63 }
0x24d8   :  { %3297 = vmatpush.msra.mxu1 %v4732_v11  ;;  %v3025_v8 = vpop.f32.mrf.mxu3 }
0x24d9   :  { %v3026_v21 = vadd.f32 %v4952_v47, %v3025_v8 }
0x24da   :  { %3298 = vmatpush.msra.mxu1 %v4737_v12 }
0x24dc   :  { %3299 = vmatpush.msra.mxu1 %v4743_v50 }
0x24de   :  { %3300 = vmatpush.msra.mxu1 %v4749_v14 }
0x254c   :  { %v2881_v23 = vpop.f32.mrf.mxu0 }
0x254d   :  { %v2884_v6 = vadd.f32 %v2881_v23, %v2857_v3 }
0x254f   :  { %3854 = vtanh.f32 %v2884_v6  ;;  %v3575_v14 = vmul.f32 -1.442695, %v2884_v6 }
0x2552   :  { %v2939_v18 = vpop.f32.mrf.mxu2 }
0x2553   :  { %v2940_v11 = vadd.f32 %v4776_v1, %v2939_v18 }
0x2554   :  { %v2964_v43 = vpop.f32.mrf.mxu1 }
0x2555   :  { %v3855_v12 = vpop.eup %3854  ;;  %v2967_v34 = vadd.f32 %v2964_v43, %v2940_v11 }
0x2556   :  { %2907 = vrot.lane.b32.xlu1 %v3855_v12, %s3947_s28 }
0x2557   :  { %3856 = vtanh.f32 %v2967_v34  ;;  %v3578_v37 = vmul.f32 -1.442695, %v2967_v34 }
0x2558   :  { %3858 = vpow2.f32 %v3575_v14 }
0x2559   :  { %3860 = vpow2.f32 %v3578_v37 }
0x255d   :  { %v3857_v50 = vpop.eup %3856 }
0x255e   :  { %2990 = vrot.lane.b32.xlu0 %v3857_v50, %s3947_s28  ;;  %v3859_v41 = vpop.eup %3858 }
0x255f   :  { %v2888_v40 = vadd.f32 1.0, %v3859_v41  ;;  %v3861_v15 = vpop.eup %3860 }
0x2560   :  { %v2971_v38 = vadd.f32 1.0, %v3861_v15 }
0x2561   :  { %3862 = vrcp.f32 %v2888_v40  ;;  %v2900_v7 = vand.u32 2147483648, %v2888_v40  ;;  %vm2894_vm14 = vweird.f32 %v2888_v40  ;;  %v2898_v54 = vand.u32 2147483647, %v2888_v40 }
0x2562   :  { %3864 = vrcp.f32 %v2971_v38  ;;  %v2983_v4 = vand.u32 2147483648, %v2971_v38  ;;  %vm2977_vm6 = vweird.f32 %v2971_v38  ;;  %v2981_v29 = vand.u32 2147483647, %v2971_v38 }
0x2563   :  { %v2901_v39 = vor.u32 1.1754944e-38, %v2900_v7  ;;  %vm2899_vm4 = vcmp.eq.f32.partialorder %v2898_v54, 8.507059e+37 }
0x2564   :  { %v2984_v25 = vor.u32 1.1754944e-38, %v2983_v4  ;;  %vm2982_vm9 = vcmp.eq.f32.partialorder %v2981_v29, 8.507059e+37 }
0x2567   :  { %v3863_v20 = vpop.eup %3862 }
0x2568   :  { %v2890_v1 = vmul.f32 %v3863_v20, %v2888_v40  ;;  %v3865_v24 = vpop.eup %3864  ;;  %vm2895_vm13 = vweird.f32 %v3863_v20 }
0x2569   :  { %v2973_v31 = vmul.f32 %v3865_v24, %v2971_v38  ;;  %vm2896_vm15 = vmor %vm2894_vm14, %vm2895_vm13  ;;  %vm2978_vm5 = vweird.f32 %v3865_v24 }
0x256a   :  { %v2891_v36 = vsub.f32 1.0, %v2890_v1  ;;  %vm2979_vm8 = vmor %vm2977_vm6, %vm2978_vm5 }
0x256b   :  { %v2974_v51 = vsub.f32 1.0, %v2973_v31 }
0x256c   :  { %v2892_v45 = vmul.f32 %v3863_v20, %v2891_v36 }
0x256d   :  { %v2975_v56 = vmul.f32 %v3865_v24, %v2974_v51 }
0x256e   :  { %v2893_v49 = vadd.f32 %v3863_v20, %v2892_v45 }
0x256f   :  { %v2976_v60 = vadd.f32 %v3865_v24, %v2975_v56 }
0x2570   :  { %v2897_v55 = vsel %vm2896_vm15, %v3863_v20, %v2893_v49 }
0x2571   :  { %v2902_v48 = vsel %vm2899_vm4, %v2901_v39, %v2897_v55  ;;  %v2980_v61 = vsel %vm2979_vm8, %v3865_v24, %v2976_v60 }
0x2572   :  { %v2985_v2 = vsel %vm2982_vm9, %v2984_v25, %v2980_v61  ;;  %v2905_v9 = vmul.f32 %v2902_v48, %v4915_v26 }
0x2573   :  { %v2988_v35 = vmul.f32 %v2985_v2, %v4919_v19  ;;  %v3915_v19 = vld [vmem:[%s5053_s1 + $0xf8] sm:$0xff] }
0x25c8   :  { %v2908_v57 = vpop.permute.xlu1 %2907 }
0x25c9   :  { %v2910_v59 = vmul.f32 %v2908_v57, %v2902_v48 }
0x25cb   :  { %2912 = vrot.lane.b32.xlu2 %v2910_v59, %s3948_s29 }
0x25d0   :  { %v2991_v52 = vpop.permute.xlu0 %2990 }
0x25d1   :  { %v2993_v10 = vmul.f32 %v2991_v52, %v2985_v2 }
0x25d3   :  { %2995 = vrot.lane.b32.xlu1 %v2993_v10, %s3948_s29 }
0x2625   :  { %v2913_v33 = vpop.permute.xlu2 %2912 }
0x2626   :  { %v4961_v17 = vadd.f32 %v2913_v33, %v2905_v9 }
0x2628   :  { %3866 = vtanh.f32 %v4961_v17 }
0x262e   :  { %v3867_v0 = vpop.eup %3866 }
0x262f   :  { %2918 = vrot.lane.b32.xlu0 %v3867_v0, %s3947_s28 }
0x2645   :  { %v2996_v5 = vpop.permute.xlu1 %2995 }
0x2646   :  { %v4966_v13 = vadd.f32 %v2996_v5, %v2988_v35 }
0x2648   :  { %3868 = vtanh.f32 %v4966_v13 }
0x264e   :  { %v3869_v16 = vpop.eup %3868 }
0x264f   :  { %3001 = vrot.lane.b32.xlu2 %v3869_v16, %s3947_s28 }
0x26a1   :  { %v2919_v28 = vpop.permute.xlu0 %2918 }
0x26a2   :  { %v2921_v26 = vmul.f32 %v2919_v28, %v2902_v48 }
0x26a4   :  { %3029 = vrot.lane.b32.xlu1 %v2921_v26, %s3948_s29 }
0x26a9   :  { %v3002_v42 = vpop.permute.xlu2 %3001 }
0x26aa   :  { %v3004_v44 = vmul.f32 %v3002_v42, %v2985_v2  ;;  %v3194_v42 = vpop.f32.mrf.mxu3 }
0x26ac   :  { %3112 = vrot.lane.b32.xlu0 %v3004_v44, %s3948_s29  ;;  %v3195_v44 = vadd.f32 %v4952_v47, %v3194_v42 }
0x2716   :  { %v3030_v22 = vpop.permute.xlu1 %3029 }
0x2717   :  { %3580 = vmatmul.msk.f32.vlgmr.msrb.gmra.mxu0 %vm56_vm7, %v3030_v22  ;;  %3582 = vmatmul.msk.f32.vlgmr.msrb.gmra.mxu2 %vm56_vm7, %v3030_v22 }
0x2718   :  { %3385 = vmatpush.msrb.mxu0 %v3915_v19 }
0x271a   :  { %3386 = vmatpush.msrb.mxu0 %v3916_v27 }
0x271c   :  { %3387 = vmatpush.msrb.mxu0 %v3917_v46 }
0x271e   :  { %v3113_v32 = vpop.permute.xlu0 %3112  ;;  %3388 = vmatpush.msrb.mxu0 %v3918_v30 }
0x271f   :  { %3583 = vmatmul.msk.f32.vlgmr.msrb.gmra.mxu1 %vm56_vm7, %v3113_v32 }
0x2794   :  { %v3050_v58 = vpop.f32.mrf.mxu0 }
0x2795   :  { %v3053_v63 = vadd.f32 %v3050_v58, %v3026_v21 }
0x2797   :  { %3870 = vtanh.f32 %v3053_v63  ;;  %v3581_v43 = vmul.f32 -1.442695, %v3053_v63 }
0x279a   :  { %v3108_v62 = vpop.f32.mrf.mxu2 }
0x279b   :  { %v3109_v3 = vadd.f32 %v4991_v53, %v3108_v62 }
0x279c   :  { %v3133_v23 = vpop.f32.mrf.mxu1 }
0x279d   :  { %v3871_v6 = vpop.eup %3870  ;;  %v3136_v18 = vadd.f32 %v3133_v23, %v3109_v3 }
0x279e   :  { %3076 = vrot.lane.b32.xlu2 %v3871_v6, %s3947_s28 }
0x279f   :  { %3872 = vtanh.f32 %v3136_v18  ;;  %v3584_v41 = vmul.f32 -1.442695, %v3136_v18 }
0x27a0   :  { %3874 = vpow2.f32 %v3581_v43 }
0x27a5   :  { %v3873_v11 = vpop.eup %3872 }
0x27a6   :  { %3159 = vrot.lane.b32.xlu1 %v3873_v11, %s3947_s28  ;;  %v3875_v12 = vpop.eup %3874 }
0x27a7   :  { %v3057_v34 = vadd.f32 1.0, %v3875_v12 }
0x27a9   :  { %3876 = vrcp.f32 %v3057_v34  ;;  %v3069_v38 = vand.u32 2147483648, %v3057_v34  ;;  %vm3063_vm11 = vweird.f32 %v3057_v34  ;;  %v3067_v20 = vand.u32 2147483647, %v3057_v34 }
0x27aa   :  { %3878 = vpow2.f32 %v3584_v41 }
0x27ab   :  { %v3070_v24 = vor.u32 1.1754944e-38, %v3069_v38  ;;  %vm3068_vm1 = vcmp.eq.f32.partialorder %v3067_v20, 8.507059e+37 }
0x27af   :  { %v3877_v50 = vpop.eup %3876 }
0x27b0   :  { %v3059_v14 = vmul.f32 %v3877_v50, %v3057_v34  ;;  %vm3064_vm10 = vweird.f32 %v3877_v50  ;;  %v3879_v1 = vpop.eup %3878 }
0x27b1   :  { %vm3065_vm0 = vmor %vm3063_vm11, %vm3064_vm10  ;;  %v3140_v45 = vadd.f32 1.0, %v3879_v1 }
0x27b2   :  { %v3060_v37 = vsub.f32 1.0, %v3059_v14 }
0x27b3   :  { %3880 = vrcp.f32 %v3140_v45  ;;  %v3152_v48 = vand.u32 2147483648, %v3140_v45  ;;  %vm3146_vm12 = vweird.f32 %v3140_v45  ;;  %v3150_v57 = vand.u32 2147483647, %v3140_v45 }
0x27b4   :  { %v3061_v40 = vmul.f32 %v3877_v50, %v3060_v37 }
0x27b5   :  { %v3153_v60 = vor.u32 1.1754944e-38, %v3152_v48  ;;  %vm3151_vm14 = vcmp.eq.f32.partialorder %v3150_v57, 8.507059e+37 }
0x27b6   :  { %v3062_v15 = vadd.f32 %v3877_v50, %v3061_v40 }
0x27b8   :  { %v3066_v36 = vsel %vm3065_vm0, %v3877_v50, %v3062_v15 }
0x27b9   :  { %v3071_v49 = vsel %vm3068_vm1, %v3070_v24, %v3066_v36  ;;  %v3881_v7 = vpop.eup %3880 }
0x27ba   :  { %v3142_v54 = vmul.f32 %v3881_v7, %v3140_v45  ;;  %vm3147_vm2 = vweird.f32 %v3881_v7  ;;  %v3074_v25 = vmul.f32 %v3071_v49, %v4961_v17 }
0x27bb   :  { %vm3148_vm13 = vmor %vm3146_vm12, %vm3147_vm2 }
0x27bc   :  { %v3143_v55 = vsub.f32 1.0, %v3142_v54 }
0x27be   :  { %v3144_v56 = vmul.f32 %v3881_v7, %v3143_v55 }
0x27c0   :  { %v3145_v39 = vadd.f32 %v3881_v7, %v3144_v56 }
0x27c2   :  { %v3149_v59 = vsel %vm3148_vm13, %v3881_v7, %v3145_v39 }
0x27c3   :  { %v3154_v29 = vsel %vm3151_vm14, %v3153_v60, %v3149_v59 }
0x27c4   :  { %v3157_v10 = vmul.f32 %v3154_v29, %v4966_v13 }
0x27f8   :  { %v3077_v31 = vpop.permute.xlu2 %3076 }
0x27f9   :  { %v3079_v51 = vmul.f32 %v3077_v31, %v3071_v49 }
0x27fb   :  { %3081 = vrot.lane.b32.xlu0 %v3079_v51, %s3948_s29 }
0x2818   :  { %v3160_v4 = vpop.permute.xlu1 %3159 }
0x2819   :  { %v3162_v61 = vmul.f32 %v3160_v4, %v3154_v29 }
0x281b   :  { %3164 = vrot.lane.b32.xlu2 %v3162_v61, %s3948_s29 }
0x286d   :  { %v3082_v52 = vpop.permute.xlu0 %3081 }
0x286e   :  { %v4999_v2 = vadd.f32 %v3082_v52, %v3074_v25 }
0x2870   :  { %3882 = vtanh.f32 %v4999_v2 }
0x2875   :  { %v3165_v9 = vpop.permute.xlu2 %3164 }
0x2876   :  { %v3883_v33 = vpop.eup %3882  ;;  %v5003_v0 = vadd.f32 %v3165_v9, %v3157_v10 }
0x2877   :  { %3087 = vrot.lane.b32.xlu1 %v3883_v33, %s3947_s28 }
0x2878   :  { %3884 = vtanh.f32 %v5003_v0 }
0x287e   :  { %v3885_v35 = vpop.eup %3884 }
0x287f   :  { %3170 = vrot.lane.b32.xlu0 %v3885_v35, %s3947_s28 }
0x28e9   :  { %v3088_v5 = vpop.permute.xlu1 %3087 }
0x28ea   :  { %v3090_v17 = vmul.f32 %v3088_v5, %v3071_v49 }
0x28ec   :  { %3198 = vrot.lane.b32.xlu2 %v3090_v17, %s3948_s29 }
0x28f1   :  { %v3171_v16 = vpop.permute.xlu0 %3170 }
0x28f2   :  { %v3173_v28 = vmul.f32 %v3171_v16, %v3154_v29 }
0x28f4   :  { %3281 = vrot.lane.b32.xlu1 %v3173_v28, %s3948_s29 }
0x2946   :  { %v3199_v13 = vpop.permute.xlu2 %3198 }
0x2947   :  { %3586 = vmatmul.msk.f32.vlgmr.msra.gmra.mxu0 %vm56_vm7, %v3199_v13  ;;  %3588 = vmatmul.msk.f32.vlgmr.msra.gmra.mxu2 %vm56_vm7, %v3199_v13 }
0x2966   :  { %v3282_v26 = vpop.permute.xlu1 %3281 }
0x2967   :  { %3589 = vmatmul.msk.f32.vlgmr.msra.gmra.mxu1 %vm56_vm7, %v3282_v26 }
0x29c4   :  { %v3219_v22 = vpop.f32.mrf.mxu0 }
0x29c5   :  { %v3222_v19 = vadd.f32 %v3219_v22, %v3195_v44 }
0x29c7   :  { %3886 = vtanh.f32 %v3222_v19  ;;  %v3587_v58 = vmul.f32 -1.442695, %v3222_v19 }
0x29ca   :  { %v3277_v46 = vpop.f32.mrf.mxu2 }
0x29cb   :  { %v3278_v32 = vadd.f32 %v4991_v53, %v3277_v46 }
0x29cd   :  { %v3887_v27 = vpop.eup %3886 }
0x29ce   :  { %3245 = vrot.lane.b32.xlu0 %v3887_v27, %s3947_s28 }
0x29e4   :  { %v3302_v30 = vpop.f32.mrf.mxu1 }
0x29e5   :  { %v3305_v8 = vadd.f32 %v3302_v30, %v3278_v32 }
0x29e7   :  { %3888 = vtanh.f32 %v3305_v8  ;;  %v3590_v63 = vmul.f32 -1.442695, %v3305_v8 }
0x29e8   :  { %3890 = vpow2.f32 %v3587_v58 }
0x29e9   :  { %3892 = vpow2.f32 %v3590_v63 }
0x29ed   :  { %v3889_v21 = vpop.eup %3888 }
0x29ee   :  { %3328 = vrot.lane.b32.xlu2 %v3889_v21, %s3947_s28  ;;  %v3891_v62 = vpop.eup %3890 }
0x29ef   :  { %v3226_v47 = vadd.f32 1.0, %v3891_v62  ;;  %v3893_v3 = vpop.eup %3892 }
0x29f0   :  { %v3309_v23 = vadd.f32 1.0, %v3893_v3  ;;  %v3434_v3 = vld [vmem:[%s5054_s2 + $0x138] sm:$0xff] }
0x29f1   :  { %3894 = vrcp.f32 %v3226_v47  ;;  %v3238_v37 = vand.u32 2147483648, %v3226_v47  ;;  %vm3232_vm4 = vweird.f32 %v3226_v47  ;;  %v3236_v41 = vand.u32 2147483647, %v3226_v47  ;;  %3454 = vmatpush.msrb.mxu2 %v3434_v3 }
0x29f2   :  { %3896 = vrcp.f32 %v3309_v23  ;;  %v3321_v45 = vand.u32 2147483648, %v3309_v23  ;;  %vm3315_vm9 = vweird.f32 %v3309_v23  ;;  %v3319_v31 = vand.u32 2147483647, %v3309_v23 }
0x29f3   :  { %v3239_v38 = vor.u32 1.1754944e-38, %v3238_v37  ;;  %vm3237_vm6 = vcmp.eq.f32.partialorder %v3236_v41, 8.507059e+37 }
0x29f4   :  { %v3322_v51 = vor.u32 1.1754944e-38, %v3321_v45  ;;  %vm3320_vm11 = vcmp.eq.f32.partialorder %v3319_v31, 8.507059e+37 }
0x29f7   :  { %v3895_v6 = vpop.eup %3894 }
0x29f8   :  { %v3228_v18 = vmul.f32 %v3895_v6, %v3226_v47  ;;  %v3897_v43 = vpop.eup %3896  ;;  %vm3233_vm15 = vweird.f32 %v3895_v6 }
0x29f9   :  { %v3311_v34 = vmul.f32 %v3897_v43, %v3309_v23  ;;  %vm3234_vm5 = vmor %vm3232_vm4, %vm3233_vm15  ;;  %vm3316_vm8 = vweird.f32 %v3897_v43  ;;  %v3433_v23 = vld [vmem:[%s5054_s2 + $0x130] sm:$0xff] }
0x29fa   :  { %v3229_v11 = vsub.f32 1.0, %v3228_v18  ;;  %vm3317_vm10 = vmor %vm3315_vm9, %vm3316_vm8  ;;  %3455 = vmatpush.msrb.mxu2 %v3433_v23  ;;  %v3431_v18 = vld [vmem:[%s5054_s2 + $0x120] sm:$0xff] }
0x29fb   :  { %v3312_v14 = vsub.f32 1.0, %v3311_v34  ;;  %v3633_v34 = vld [vmem:[%s5054_s2 + $0x140] ss:$0 sm:$0xff] }
0x29fc   :  { %v3230_v12 = vmul.f32 %v3895_v6, %v3229_v11 }
0x29fd   :  { %v3313_v15 = vmul.f32 %v3897_v43, %v3312_v14 }
0x29fe   :  { %v3231_v50 = vadd.f32 %v3895_v6, %v3230_v12 }
0x29ff   :  { %v3314_v24 = vadd.f32 %v3897_v43, %v3313_v15 }
0x2a00   :  { %v3235_v40 = vsel %vm3234_vm5, %v3895_v6, %v3231_v50  ;;  %v3432_v6 = vld [vmem:[%s5054_s2 + $0x128] sm:$0xff] }
0x2a01   :  { %v3240_v1 = vsel %vm3237_vm6, %v3239_v38, %v3235_v40  ;;  %v3318_v49 = vsel %vm3317_vm10, %v3897_v43, %v3314_v24  ;;  %3456 = vmatpush.msrb.mxu2 %v3432_v6 }
0x2a02   :  { %v3323_v54 = vsel %vm3320_vm11, %v3322_v51, %v3318_v49  ;;  %v3243_v56 = vmul.f32 %v3240_v1, %v4999_v2 }
0x2a03   :  { %v3326_v57 = vmul.f32 %v3323_v54, %v5003_v0  ;;  %3457 = vmatpush.msrb.mxu2 %v3431_v18 }
0x2a40   :  { %v3246_v20 = vpop.permute.xlu0 %3245 }
0x2a41   :  { %v3248_v36 = vmul.f32 %v3246_v20, %v3240_v1 }
0x2a43   :  { %3250 = vrot.lane.b32.xlu1 %v3248_v36, %s3948_s29 }
0x2a48   :  { %v3329_v7 = vpop.permute.xlu2 %3328 }
0x2a49   :  { %v3331_v55 = vmul.f32 %v3329_v7, %v3323_v54 }
0x2a4b   :  { %3333 = vrot.lane.b32.xlu0 %v3331_v55, %s3948_s29 }
0x2ab5   :  { %v3251_v39 = vpop.permute.xlu1 %3250 }
0x2ab6   :  { %v3253_v48 = vadd.f32 %v3251_v39, %v3243_v56 }
0x2ab8   :  { %3898 = vtanh.f32 %v3253_v48 }
0x2abd   :  { %v3334_v59 = vpop.permute.xlu0 %3333 }
0x2abe   :  { %v3899_v60 = vpop.eup %3898  ;;  %v3336_v4 = vadd.f32 %v3334_v59, %v3326_v57 }
0x2abf   :  { %3256 = vrot.lane.b32.xlu2 %v3899_v60, %s3947_s28 }
0x2ac0   :  { %3900 = vtanh.f32 %v3336_v4 }
0x2ac6   :  { %v3901_v29 = vpop.eup %3900 }
0x2ac7   :  { %3339 = vrot.lane.b32.xlu1 %v3901_v29, %s3947_s28 }
0x2b19   :  { %v3257_v61 = vpop.permute.xlu2 %3256 }
0x2b1a   :  { %v3259_v25 = vmul.f32 %v3257_v61, %v3240_v1 }
0x2b1c   :  { %3344 = vrot.lane.b32.xlu0 %v3259_v25, %s3948_s29 }
0x2b39   :  { %v3340_v52 = vpop.permute.xlu1 %3339 }
0x2b3a   :  { %v3342_v2 = vmul.f32 %v3340_v52, %v3323_v54 }
0x2b3c   :  { %3369 = vrot.lane.b32.xlu2 %v3342_v2, %s3948_s29 }
0x2b8e   :  { %v3345_v10 = vpop.permute.xlu0 %3344 }
0x2b8f   :  { %3591 = vmatmul.msk.f32.vlgmr.msra.gmra.mxu3 %vm56_vm7, %v3345_v10 }
0x2b96   :  { %v3370_v9 = vpop.permute.xlu2 %3369 }
0x2b97   :  { %3592 = vmatmul.msk.f32.vlgmr.msrb.gmra.mxu0 %vm56_vm7, %v3370_v9 }
0x2c12   :  { %v3365_v33 = vpop.f32.mrf.mxu3 }
0x2c13   :  { %v3366_v0 = vadd.f32 %v4991_v53, %v3365_v33 }
0x2c14   :  { %v3390_v35 = vpop.f32.mrf.mxu0 }
0x2c15   :  { %v3393_v5 = vadd.f32 %v3390_v35, %v3366_v0 }
0x2c17   :  { %3902 = vtanh.f32 %v3393_v5  ;;  %v3593_v16 = vmul.f32 -1.442695, %v3393_v5 }
0x2c19   :  { %3904 = vpow2.f32 %v3593_v16 }
0x2c1d   :  { %v3903_v17 = vpop.eup %3902 }
0x2c1e   :  { %3416 = vrot.lane.b32.xlu1 %v3903_v17, %s3947_s28 }
0x2c1f   :  { %v3905_v28 = vpop.eup %3904 }
0x2c20   :  { %v3397_v13 = vadd.f32 1.0, %v3905_v28 }
0x2c22   :  { %3906 = vrcp.f32 %v3397_v13  ;;  %v3409_v27 = vand.u32 2147483648, %v3397_v13  ;;  %vm3403_vm1 = vweird.f32 %v3397_v13  ;;  %v3407_v53 = vand.u32 2147483647, %v3397_v13 }
0x2c24   :  { %v3410_v32 = vor.u32 1.1754944e-38, %v3409_v27  ;;  %vm3408_vm12 = vcmp.eq.f32.partialorder %v3407_v53, 8.507059e+37 }
0x2c28   :  { %v3907_v26 = vpop.eup %3906 }
0x2c29   :  { %v3399_v42 = vmul.f32 %v3907_v26, %v3397_v13  ;;  %vm3404_vm0 = vweird.f32 %v3907_v26 }
0x2c2a   :  { %vm3405_vm2 = vmor %vm3403_vm1, %vm3404_vm0 }
0x2c2b   :  { %v3400_v44 = vsub.f32 1.0, %v3399_v42 }
0x2c2d   :  { %v3401_v22 = vmul.f32 %v3907_v26, %v3400_v44 }
0x2c2f   :  { %v3402_v19 = vadd.f32 %v3907_v26, %v3401_v22 }
0x2c31   :  { %v3406_v46 = vsel %vm3405_vm2, %v3907_v26, %v3402_v19 }
0x2c32   :  { %v3411_v8 = vsel %vm3408_vm12, %v3410_v32, %v3406_v46 }
0x2c33   :  { %v3414_v58 = vmul.f32 %v3411_v8, %v3336_v4 }
0x2c90   :  { %v3417_v30 = vpop.permute.xlu1 %3416 }
0x2c91   :  { %v3419_v21 = vmul.f32 %v3417_v30, %v3411_v8 }
0x2c93   :  { %3421 = vrot.lane.b32.xlu0 %v3419_v21, %s3948_s29 }
0x2d05   :  { %v3422_v63 = vpop.permute.xlu0 %3421 }
0x2d06   :  { %v3424_v62 = vadd.f32 %v3422_v63, %v3414_v58 }
0x2d08   :  { %3908 = vtanh.f32 %v3424_v62 }
0x2d0e   :  { %v3909_v47 = vpop.eup %3908 }
0x2d0f   :  { %3427 = vrot.lane.b32.xlu2 %v3909_v47, %s3947_s28 }
0x2d69   :  { %v3428_v11 = vpop.permute.xlu2 %3427 }
0x2d6a   :  { %v3430_v43 = vmul.f32 %v3428_v11, %v3411_v8 }
0x2d6c   :  { %3438 = vrot.lane.b32.xlu1 %v3430_v43, %s3948_s29 }
0x2dde   :  { %v3439_v12 = vpop.permute.xlu1 %3438 }
0x2ddf   :  { %3594 = vmatmul.msk.f32.vlgmr.msrb.gmra.mxu2 %vm56_vm7, %v3439_v12 }
0x2e62   :  { %v3459_v50 = vpop.f32.mrf.mxu2 }
0x2e63   :  { %v3460_v14 = vadd.f32 %v3633_v34, %v3459_v50 }
0x2e65   :  { %3462 = vst.msk [vmem:[#allocation3] sm:$0x3] %vm1813_vm3, %v3460_v14 }
0x2e66   :  { %3473 = dma.vmem_to_hbm [thread:$0]  %s3469_s19, 32, %s3471_s22, [#allocation4]  }
0x2e67   :  { %3944 = dma.done.wait [#allocation4], 32  }
0x2e68   :  { %3945 = vsyncadd [#allocation4], 4294967264 }
0x2e69   :  { %3478 = vsyncpa [#allocation4], 1 }

</bundles_post_ra>
